<compile_context>
chip_gen: v5e
topology: v5e:2x2
jax: 0.10.0
libtpu: 0.0.40
codegen_flags: <defaults>
</compile_context>

<pallas_src>
import functools
import jax
import jax.numpy as jnp
from jax.experimental import pallas as pl
from jax.experimental.pallas import tpu as pltpu


def _temporal_conv_kernel(x_ref, w_ref, b_ref, o_ref, *,
                          Kt, c_in, c_out, T, N, Bb, use_merged):
    # x_ref: (Bb, c_in, T*N)   -- Bb batch slabs, flat index (t, n) -> t*N + n, N on lanes
    # w_ref: (Kt, 2*c_out, c_in) bf16   [per-tap path]  or  (2*c_out, Kt*c_in) bf16 [merged]
    # b_ref: (2*c_out, 1) f32  -- conv bias
    # o_ref: (Bb, c_out, To*N) -- gated output, To = T - Kt + 1
    To = T - Kt + 1
    TNo = To * N
    c2 = 2 * c_out

    bias = b_ref[...]                                  # (c2, 1), lane-broadcast once

    for b in range(Bb):                                # small static unroll (Bb <= 8)
        if use_merged:
            # im2col window built directly in bf16: Kt lane-aligned slices (offsets kt*N
            # are multiples of 128 because N is), stacked along the contraction axis.
            window = jnp.concatenate(
                [x_ref[b, :, pl.ds(kt * N, TNo)].astype(jnp.bfloat16) for kt in range(Kt)],
                axis=0)                                           # (Kt*c_in, TNo) bf16
            acc = jnp.dot(w_ref[...], window,
                          preferred_element_type=jnp.float32)     # (c2, TNo) f32
        else:
            # Small c_in: skip the materialized im2col; Kt accumulating bf16 dots on the
            # lane-aligned views (memory/store-bound regime, MXU K-waste is irrelevant).
            acc = jnp.dot(w_ref[0], x_ref[b, :, pl.ds(0, TNo)].astype(jnp.bfloat16),
                          preferred_element_type=jnp.float32)
            for kt in range(1, Kt):
                xs = x_ref[b, :, pl.ds(kt * N, TNo)].astype(jnp.bfloat16)   # (c_in, TNo)
                acc = acc + jnp.dot(w_ref[kt], xs,
                                    preferred_element_type=jnp.float32)
        acc = acc + bias

        # Align residual, explicit and exact in f32: channels [0, c_in) get x time-aligned
        # to tap Kt-1; channels [c_in, c_out) are the zero-padded ones (no residual).
        res = x_ref[b, :, pl.ds((Kt - 1) * N, TNo)].astype(jnp.float32)     # (c_in, TNo)

        p = acc[:c_out]
        sig = jax.nn.sigmoid(acc[c_out:])
        o_ref[b, pl.ds(0, c_in), :] = ((p[:c_in] + res) * sig[:c_in]).astype(o_ref.dtype)
        if c_out > c_in:
            o_ref[b, pl.ds(c_in, c_out - c_in), :] = (
                p[c_in:] * sig[c_in:]).astype(o_ref.dtype)


def temporal_conv_layer(x_nchw, weight, bias, *, Kt, c_in, c_out):
    """x_nchw: (B, c_in, T, N); weight: (2*c_out, c_in, Kt, 1); bias: (2*c_out,)."""
    B, ci, T, N = x_nchw.shape
    assert ci == c_in and c_in <= c_out, "Align residual requires c_in <= c_out"
    # TODO(synk): c_in > c_out is shape-inconsistent in the reference module (torch would
    #             error on the residual add); unsupported here on purpose.
    To = T - Kt + 1
    c2 = 2 * c_out

    # Pad the node axis to a lane multiple so kt*N slice offsets are lane-tile aligned and
    # the output stores stay lane-dense; un-padded at the end.
    Np = ((N + 127) // 128) * 128
    if Np != N:
        x_nchw = jnp.pad(x_nchw, ((0, 0), (0, 0), (0, 0), (0, Np - N)))

    use_merged = c_in > 8
    if use_merged:
        # (c2, c_in, Kt) -> (c2, Kt, c_in) -> (c2, Kt*c_in); column j = kt*c_in + ci.
        w = jnp.transpose(weight[..., 0], (0, 2, 1)).reshape(c2, Kt * c_in)
    else:
        # Per-tap weights (Kt, c2, c_in).
        w = jnp.transpose(weight[..., 0], (2, 0, 1))
    w = w.astype(jnp.bfloat16)                    # bf16 MXU path; residual added in f32
    b = bias.reshape(c2, 1).astype(jnp.float32)

    # Free reshape: stay NCHW, merge the trailing (T, N) dims so the node axis rides the
    # 128-lane axis inside the kernel. No HBM-round-trip transposes.
    x_flat = x_nchw.reshape(B, c_in, T * Np)
    itemsize = x_flat.dtype.itemsize

    # Generation-aware VMEM budget (v7x has only 64 MiB physical VMEM; v5e/v6e 128 MiB).
    try:
        vmem_cap = pltpu.get_tpu_info().vmem_capacity_bytes
    except Exception:
        vmem_cap = 64 << 20
    budget = int(0.75 * vmem_cap)

    def per_step_bytes(bb):
        k = Kt * c_in if use_merged else c_in
        in_blk = bb * c_in * T * Np * itemsize
        out_blk = bb * c_out * To * Np * itemsize
        tmp = (k * To * Np * 2            # bf16 window / tap slice
               + c2 * To * Np * 4         # f32 accumulator
               + c_in * To * Np * 4       # f32 residual
               + c_out * To * Np * 4)     # gated f32 value before the store cast
        return 2 * (in_blk + out_blk) + 2 * tmp   # double-buffered blocks + live temps

    # Batch block: as large as fits the budget (cap 8), but keep >= 2 grid steps so both
    # v7x TensorCores get work (the grid axis is "parallel"; no cross-step reduction).
    Bb = 1
    for d in range(1, min(B, 8) + 1):
        if B % d:
            continue
        if B >= 2 and B // d < 2:
            continue
        if per_step_bytes(d) > budget:
            continue
        Bb = d
    # TODO(synk): if even Bb == 1 exceeds the budget (huge c_in*T*N), tile the node axis
    #             (no halo needed, the conv is along T only) instead of raising the limit.

    est = per_step_bytes(Bb)
    if est > (12 << 20):
        compiler_params = pltpu.CompilerParams(
            dimension_semantics=("parallel",),
            vmem_limit_bytes=min(est + (8 << 20), budget))
    else:
        compiler_params = pltpu.CompilerParams(dimension_semantics=("parallel",))

    kernel = functools.partial(
        _temporal_conv_kernel, Kt=Kt, c_in=c_in, c_out=c_out, T=T, N=Np,
        Bb=Bb, use_merged=use_merged)

    out_flat = pl.pallas_call(
        kernel,
        out_shape=jax.ShapeDtypeStruct((B, c_out, To * Np), x_nchw.dtype),
        grid=(B // Bb,),
        in_specs=[
            # TODO(synk): sweep pipeline_mode=pl.Buffered(3) on this spec if xprof shows
            #             exposed DMA at step boundaries once the blocks are multi-MB.
            pl.BlockSpec((Bb, c_in, T * Np), lambda i: (i, 0, 0)),
            pl.BlockSpec(w.shape, lambda i: (0,) * w.ndim),   # resident, no re-DMA
            pl.BlockSpec((c2, 1), lambda i: (0, 0)),
        ],
        out_specs=pl.BlockSpec((Bb, c_out, To * Np), lambda i: (i, 0, 0)),
        compiler_params=compiler_params,
    )(x_flat, w, b)

    # Free reshape back to (B, c_out, To, Np); drop the node padding.
    return out_flat.reshape(B, c_out, To, Np)[..., :N]


def temporal_conv_layer_ref(x, weight, bias, *, Kt, c_in, c_out):
    """Pure-JAX reference mirroring the PyTorch forward.

    The conv inputs/weights are routed through bf16 (then back to f32) so the reference
    matches the kernel's bf16-in / f32-accumulate MXU path; the Align residual, bias and
    gating stay in f32, exactly as in the kernel (and as in PyTorch structurally).
    """
    B, _, T, N = x.shape
    To = T - Kt + 1
    xc = x.astype(jnp.bfloat16).astype(jnp.float32)
    wc = weight.astype(jnp.bfloat16).astype(jnp.float32)
    conv = jnp.zeros((B, 2 * c_out, To, N), jnp.float32)
    for kt in range(Kt):
        conv = conv + jnp.einsum(
            'oc,bctn->botn', wc[:, :, kt, 0], xc[:, :, kt:kt + To, :],
            precision=jax.lax.Precision.HIGHEST)
    conv = conv + bias[None, :, None, None].astype(jnp.float32)
    x_p = conv[:, :c_out]
    x_q = conv[:, c_out:]
    x_in = x[:, :, Kt - 1:, :].astype(jnp.float32)
    if c_in < c_out:
        x_in = jnp.concatenate(
            [x_in, jnp.zeros((B, c_out - c_in, To, N), jnp.float32)], axis=1)
    return (x_p + x_in) * jax.nn.sigmoid(x_q)


if __name__ == "__main__":
    key = jax.random.PRNGKey(0)

    def run_case(B, c_in, c_out, Kt, T, N, case_key):
        kx, kw, kb = jax.random.split(case_key, 3)
        x = jax.random.normal(kx, (B, c_in, T, N), dtype=jnp.float32)
        weight = 0.1 * jax.random.normal(kw, (2 * c_out, c_in, Kt, 1), dtype=jnp.float32)
        bias = 0.05 * jax.random.normal(kb, (2 * c_out,), dtype=jnp.float32)

        out = temporal_conv_layer(x, weight, bias, Kt=Kt, c_in=c_in, c_out=c_out)
        out = jax.block_until_ready(out)

        ref = temporal_conv_layer_ref(x, weight, bias, Kt=Kt, c_in=c_in, c_out=c_out)
        assert out.shape == (B, c_out, T - Kt + 1, N), out.shape
        err = float(jnp.max(jnp.abs(out - ref)))
        assert jnp.allclose(out, ref, rtol=1e-4, atol=1e-4), err

    k1, k2 = jax.random.split(key)
    # Small-channel path (per-tap dots), batch-blocked (Bb=2 -> 2 parallel grid steps),
    # node count deliberately NOT a multiple of 128 to exercise the lane padding.
    run_case(B=4, c_in=4, c_out=8, Kt=3, T=16, N=200, case_key=k1)
    # Larger-channel path (merged-K bf16 im2col), c_in == c_out (full residual channels).
    run_case(B=2, c_in=16, c_out=16, Kt=2, T=12, N=256, case_key=k2)

    print("KERNEL_OK")
</pallas_src>

<mosaic_0001>
module attributes {stable_mosaic.version = 11 : i64} {
  func.func @_temporal_conv_kernel(%arg0: i32, %arg1: memref<2x4x4096xf32, #tpu.memory_space<vmem>>, %arg2: memref<3x16x4xbf16, #tpu.memory_space<vmem>>, %arg3: memref<16x1xf32, #tpu.memory_space<vmem>>, %arg4: memref<2x8x3584xf32, #tpu.memory_space<vmem>>) attributes {dimension_semantics = [#tpu.dimension_semantics<parallel>], iteration_bounds = array<i64: 2>, scalar_prefetch = 0 : i64, scratch_operands = 0 : i64, tpu.core_type = #tpu.core_type<tc>, window_params = [{transform_indices = @transform_0, window_bounds = array<i64: 2, 4, 4096>}, {pipeline_mode = #tpu.pipeline_mode<synchronous>, transform_indices = @transform_1, window_bounds = array<i64: 3, 16, 4>}, {pipeline_mode = #tpu.pipeline_mode<synchronous>, transform_indices = @transform_2, window_bounds = array<i64: 16, 1>}, {transform_indices = @transform_3, window_bounds = array<i64: 2, 8, 3584>}]} {
    %c0 = arith.constant 0 : index
    %c0_0 = arith.constant 0 : index
    %0 = vector.load %arg3[%c0, %c0_0] : memref<16x1xf32, #tpu.memory_space<vmem>>, vector<16x1xf32>
    %c0_1 = arith.constant 0 : index
    %c0_2 = arith.constant 0 : index
    %c0_3 = arith.constant 0 : index
    %1 = vector.load %arg2[%c0_1, %c0_2, %c0_3] : memref<3x16x4xbf16, #tpu.memory_space<vmem>>, vector<1x16x4xbf16>
    %2 = vector.shape_cast %1 : vector<1x16x4xbf16> to vector<16x4xbf16>
    %c0_4 = arith.constant 0 : index
    %c0_5 = arith.constant 0 : index
    %c0_6 = arith.constant 0 : index
    %3 = vector.load %arg1[%c0_4, %c0_5, %c0_6] : memref<2x4x4096xf32, #tpu.memory_space<vmem>>, vector<1x4x3584xf32>
    %4 = vector.shape_cast %3 : vector<1x4x3584xf32> to vector<4x3584xf32>
    %5 = arith.truncf %4 : vector<4x3584xf32> to vector<4x3584xbf16>
    %cst = arith.constant dense<0.000000e+00> : vector<16x3584xf32>
    %6 = tpu.matmul %2, %5, %cst {dimension_numbers = #tpu.dot_dimension_numbers<[1], [0], [0], [1], [0, 0, 1, 1], [], []>} : vector<16x4xbf16>, vector<4x3584xbf16>, vector<16x3584xf32> -> vector<16x3584xf32>
    %c0_7 = arith.constant 0 : index
    %c0_8 = arith.constant 0 : index
    %c256 = arith.constant 256 : index
    %7 = vector.load %arg1[%c0_7, %c0_8, %c256] : memref<2x4x4096xf32, #tpu.memory_space<vmem>>, vector<1x4x3584xf32>
    %8 = vector.shape_cast %7 : vector<1x4x3584xf32> to vector<4x3584xf32>
    %9 = arith.truncf %8 : vector<4x3584xf32> to vector<4x3584xbf16>
    %c1 = arith.constant 1 : index
    %c0_9 = arith.constant 0 : index
    %c0_10 = arith.constant 0 : index
    %10 = vector.load %arg2[%c1, %c0_9, %c0_10] : memref<3x16x4xbf16, #tpu.memory_space<vmem>>, vector<1x16x4xbf16>
    %11 = vector.shape_cast %10 : vector<1x16x4xbf16> to vector<16x4xbf16>
    %cst_11 = arith.constant dense<0.000000e+00> : vector<16x3584xf32>
    %12 = tpu.matmul %11, %9, %cst_11 {dimension_numbers = #tpu.dot_dimension_numbers<[1], [0], [0], [1], [0, 0, 1, 1], [], []>} : vector<16x4xbf16>, vector<4x3584xbf16>, vector<16x3584xf32> -> vector<16x3584xf32>
    %13 = arith.addf %6, %12 : vector<16x3584xf32>
    %c0_12 = arith.constant 0 : index
    %c0_13 = arith.constant 0 : index
    %c512 = arith.constant 512 : index
    %14 = vector.load %arg1[%c0_12, %c0_13, %c512] : memref<2x4x4096xf32, #tpu.memory_space<vmem>>, vector<1x4x3584xf32>
    %15 = vector.shape_cast %14 : vector<1x4x3584xf32> to vector<4x3584xf32>
    %16 = arith.truncf %15 : vector<4x3584xf32> to vector<4x3584xbf16>
    %c2 = arith.constant 2 : index
    %c0_14 = arith.constant 0 : index
    %c0_15 = arith.constant 0 : index
    %17 = vector.load %arg2[%c2, %c0_14, %c0_15] : memref<3x16x4xbf16, #tpu.memory_space<vmem>>, vector<1x16x4xbf16>
    %18 = vector.shape_cast %17 : vector<1x16x4xbf16> to vector<16x4xbf16>
    %cst_16 = arith.constant dense<0.000000e+00> : vector<16x3584xf32>
    %19 = tpu.matmul %18, %16, %cst_16 {dimension_numbers = #tpu.dot_dimension_numbers<[1], [0], [0], [1], [0, 0, 1, 1], [], []>} : vector<16x4xbf16>, vector<4x3584xbf16>, vector<16x3584xf32> -> vector<16x3584xf32>
    %20 = arith.addf %13, %19 : vector<16x3584xf32>
    %21 = vector.broadcast %0 : vector<16x1xf32> to vector<16x3584xf32>
    %22 = arith.addf %20, %21 : vector<16x3584xf32>
    %c0_17 = arith.constant 0 : index
    %c0_18 = arith.constant 0 : index
    %c512_19 = arith.constant 512 : index
    %23 = vector.load %arg1[%c0_17, %c0_18, %c512_19] : memref<2x4x4096xf32, #tpu.memory_space<vmem>>, vector<1x4x3584xf32>
    %24 = vector.shape_cast %23 : vector<1x4x3584xf32> to vector<4x3584xf32>
    %25 = vector.extract_strided_slice %22 {offsets = [0, 0], sizes = [8, 3584], strides = [1, 1]} : vector<16x3584xf32> to vector<8x3584xf32>
    %26 = vector.extract_strided_slice %22 {offsets = [8, 0], sizes = [8, 3584], strides = [1, 1]} : vector<16x3584xf32> to vector<8x3584xf32>
    %27 = arith.negf %26 : vector<8x3584xf32>
    %28 = math.exp %27 : vector<8x3584xf32>
    %cst_20 = arith.constant 1.000000e+00 : f32
    %29 = vector.broadcast %cst_20 : f32 to vector<8x3584xf32>
    %30 = arith.addf %29, %28 : vector<8x3584xf32>
    %31 = arith.divf %29, %30 : vector<8x3584xf32>
    %32 = vector.extract_strided_slice %25 {offsets = [0, 0], sizes = [4, 3584], strides = [1, 1]} : vector<8x3584xf32> to vector<4x3584xf32>
    %33 = arith.addf %32, %24 : vector<4x3584xf32>
    %34 = vector.extract_strided_slice %31 {offsets = [0, 0], sizes = [4, 3584], strides = [1, 1]} : vector<8x3584xf32> to vector<4x3584xf32>
    %35 = arith.mulf %33, %34 : vector<4x3584xf32>
    %c0_21 = arith.constant 0 : index
    %c0_22 = arith.constant 0 : index
    %c0_23 = arith.constant 0 : index
    %36 = vector.load %arg4[%c0_21, %c0_22, %c0_23] : memref<2x8x3584xf32, #tpu.memory_space<vmem>>, vector<1x4x3584xf32>
    %37 = vector.shape_cast %36 : vector<1x4x3584xf32> to vector<4x3584xf32>
    %38 = vector.shape_cast %35 : vector<4x3584xf32> to vector<1x4x3584xf32>
    tpu.vector_store %arg4[%c0_21, %c0_22, %c0_23], %38 {strides = array<i32>} : memref<2x8x3584xf32, #tpu.memory_space<vmem>>, vector<1x4x3584xf32>,
    %39 = vector.extract_strided_slice %25 {offsets = [4, 0], sizes = [4, 3584], strides = [1, 1]} : vector<8x3584xf32> to vector<4x3584xf32>
    %40 = vector.extract_strided_slice %31 {offsets = [4, 0], sizes = [4, 3584], strides = [1, 1]} : vector<8x3584xf32> to vector<4x3584xf32>
    %41 = arith.mulf %39, %40 : vector<4x3584xf32>
    %c0_24 = arith.constant 0 : index
    %c4 = arith.constant 4 : index
    %c0_25 = arith.constant 0 : index
    %42 = vector.load %arg4[%c0_24, %c4, %c0_25] : memref<2x8x3584xf32, #tpu.memory_space<vmem>>, vector<1x4x3584xf32>
    %43 = vector.shape_cast %42 : vector<1x4x3584xf32> to vector<4x3584xf32>
    %44 = vector.shape_cast %41 : vector<4x3584xf32> to vector<1x4x3584xf32>
    tpu.vector_store %arg4[%c0_24, %c4, %c0_25], %44 {strides = array<i32>} : memref<2x8x3584xf32, #tpu.memory_space<vmem>>, vector<1x4x3584xf32>,
    %c0_26 = arith.constant 0 : index
    %c0_27 = arith.constant 0 : index
    %c0_28 = arith.constant 0 : index
    %45 = vector.load %arg2[%c0_26, %c0_27, %c0_28] : memref<3x16x4xbf16, #tpu.memory_space<vmem>>, vector<1x16x4xbf16>
    %46 = vector.shape_cast %45 : vector<1x16x4xbf16> to vector<16x4xbf16>
    %c1_29 = arith.constant 1 : index
    %c0_30 = arith.constant 0 : index
    %c0_31 = arith.constant 0 : index
    %47 = vector.load %arg1[%c1_29, %c0_30, %c0_31] : memref<2x4x4096xf32, #tpu.memory_space<vmem>>, vector<1x4x3584xf32>
    %48 = vector.shape_cast %47 : vector<1x4x3584xf32> to vector<4x3584xf32>
    %49 = arith.truncf %48 : vector<4x3584xf32> to vector<4x3584xbf16>
    %cst_32 = arith.constant dense<0.000000e+00> : vector<16x3584xf32>
    %50 = tpu.matmul %46, %49, %cst_32 {dimension_numbers = #tpu.dot_dimension_numbers<[1], [0], [0], [1], [0, 0, 1, 1], [], []>} : vector<16x4xbf16>, vector<4x3584xbf16>, vector<16x3584xf32> -> vector<16x3584xf32>
    %c1_33 = arith.constant 1 : index
    %c0_34 = arith.constant 0 : index
    %c256_35 = arith.constant 256 : index
    %51 = vector.load %arg1[%c1_33, %c0_34, %c256_35] : memref<2x4x4096xf32, #tpu.memory_space<vmem>>, vector<1x4x3584xf32>
    %52 = vector.shape_cast %51 : vector<1x4x3584xf32> to vector<4x3584xf32>
    %53 = arith.truncf %52 : vector<4x3584xf32> to vector<4x3584xbf16>
    %c1_36 = arith.constant 1 : index
    %c0_37 = arith.constant 0 : index
    %c0_38 = arith.constant 0 : index
    %54 = vector.load %arg2[%c1_36, %c0_37, %c0_38] : memref<3x16x4xbf16, #tpu.memory_space<vmem>>, vector<1x16x4xbf16>
    %55 = vector.shape_cast %54 : vector<1x16x4xbf16> to vector<16x4xbf16>
    %cst_39 = arith.constant dense<0.000000e+00> : vector<16x3584xf32>
    %56 = tpu.matmul %55, %53, %cst_39 {dimension_numbers = #tpu.dot_dimension_numbers<[1], [0], [0], [1], [0, 0, 1, 1], [], []>} : vector<16x4xbf16>, vector<4x3584xbf16>, vector<16x3584xf32> -> vector<16x3584xf32>
    %57 = arith.addf %50, %56 : vector<16x3584xf32>
    %c1_40 = arith.constant 1 : index
    %c0_41 = arith.constant 0 : index
    %c512_42 = arith.constant 512 : index
    %58 = vector.load %arg1[%c1_40, %c0_41, %c512_42] : memref<2x4x4096xf32, #tpu.memory_space<vmem>>, vector<1x4x3584xf32>
    %59 = vector.shape_cast %58 : vector<1x4x3584xf32> to vector<4x3584xf32>
    %60 = arith.truncf %59 : vector<4x3584xf32> to vector<4x3584xbf16>
    %c2_43 = arith.constant 2 : index
    %c0_44 = arith.constant 0 : index
    %c0_45 = arith.constant 0 : index
    %61 = vector.load %arg2[%c2_43, %c0_44, %c0_45] : memref<3x16x4xbf16, #tpu.memory_space<vmem>>, vector<1x16x4xbf16>
    %62 = vector.shape_cast %61 : vector<1x16x4xbf16> to vector<16x4xbf16>
    %cst_46 = arith.constant dense<0.000000e+00> : vector<16x3584xf32>
    %63 = tpu.matmul %62, %60, %cst_46 {dimension_numbers = #tpu.dot_dimension_numbers<[1], [0], [0], [1], [0, 0, 1, 1], [], []>} : vector<16x4xbf16>, vector<4x3584xbf16>, vector<16x3584xf32> -> vector<16x3584xf32>
    %64 = arith.addf %57, %63 : vector<16x3584xf32>
    %65 = vector.broadcast %0 : vector<16x1xf32> to vector<16x3584xf32>
    %66 = arith.addf %64, %65 : vector<16x3584xf32>
    %c1_47 = arith.constant 1 : index
    %c0_48 = arith.constant 0 : index
    %c512_49 = arith.constant 512 : index
    %67 = vector.load %arg1[%c1_47, %c0_48, %c512_49] : memref<2x4x4096xf32, #tpu.memory_space<vmem>>, vector<1x4x3584xf32>
    %68 = vector.shape_cast %67 : vector<1x4x3584xf32> to vector<4x3584xf32>
    %69 = vector.extract_strided_slice %66 {offsets = [0, 0], sizes = [8, 3584], strides = [1, 1]} : vector<16x3584xf32> to vector<8x3584xf32>
    %70 = vector.extract_strided_slice %66 {offsets = [8, 0], sizes = [8, 3584], strides = [1, 1]} : vector<16x3584xf32> to vector<8x3584xf32>
    %71 = arith.negf %70 : vector<8x3584xf32>
    %72 = math.exp %71 : vector<8x3584xf32>
    %cst_50 = arith.constant 1.000000e+00 : f32
    %73 = vector.broadcast %cst_50 : f32 to vector<8x3584xf32>
    %74 = arith.addf %73, %72 : vector<8x3584xf32>
    %75 = arith.divf %73, %74 : vector<8x3584xf32>
    %76 = vector.extract_strided_slice %69 {offsets = [0, 0], sizes = [4, 3584], strides = [1, 1]} : vector<8x3584xf32> to vector<4x3584xf32>
    %77 = arith.addf %76, %68 : vector<4x3584xf32>
    %78 = vector.extract_strided_slice %75 {offsets = [0, 0], sizes = [4, 3584], strides = [1, 1]} : vector<8x3584xf32> to vector<4x3584xf32>
    %79 = arith.mulf %77, %78 : vector<4x3584xf32>
    %c1_51 = arith.constant 1 : index
    %c0_52 = arith.constant 0 : index
    %c0_53 = arith.constant 0 : index
    %80 = vector.load %arg4[%c1_51, %c0_52, %c0_53] : memref<2x8x3584xf32, #tpu.memory_space<vmem>>, vector<1x4x3584xf32>
    %81 = vector.shape_cast %80 : vector<1x4x3584xf32> to vector<4x3584xf32>
    %82 = vector.shape_cast %79 : vector<4x3584xf32> to vector<1x4x3584xf32>
    tpu.vector_store %arg4[%c1_51, %c0_52, %c0_53], %82 {strides = array<i32>} : memref<2x8x3584xf32, #tpu.memory_space<vmem>>, vector<1x4x3584xf32>,
    %83 = vector.extract_strided_slice %69 {offsets = [4, 0], sizes = [4, 3584], strides = [1, 1]} : vector<8x3584xf32> to vector<4x3584xf32>
    %84 = vector.extract_strided_slice %75 {offsets = [4, 0], sizes = [4, 3584], strides = [1, 1]} : vector<8x3584xf32> to vector<4x3584xf32>
    %85 = arith.mulf %83, %84 : vector<4x3584xf32>
    %c1_54 = arith.constant 1 : index
    %c4_55 = arith.constant 4 : index
    %c0_56 = arith.constant 0 : index
    %86 = vector.load %arg4[%c1_54, %c4_55, %c0_56] : memref<2x8x3584xf32, #tpu.memory_space<vmem>>, vector<1x4x3584xf32>
    %87 = vector.shape_cast %86 : vector<1x4x3584xf32> to vector<4x3584xf32>
    %88 = vector.shape_cast %85 : vector<4x3584xf32> to vector<1x4x3584xf32>
    tpu.vector_store %arg4[%c1_54, %c4_55, %c0_56], %88 {strides = array<i32>} : memref<2x8x3584xf32, #tpu.memory_space<vmem>>, vector<1x4x3584xf32>,
    return
  }
  func.func @transform_0(%arg0: i32) -> (i32, i32, i32) {
    %c0_i32 = arith.constant 0 : i32
    %c0_i32_0 = arith.constant 0 : i32
    %c0_i32_1 = arith.constant 0 : i32
    return %arg0, %c0_i32, %c0_i32_0 : i32, i32, i32
  }
  func.func @transform_1(%arg0: i32) -> (i32, i32, i32) {
    %c0_i32 = arith.constant 0 : i32
    %c0_i32_0 = arith.constant 0 : i32
    %c0_i32_1 = arith.constant 0 : i32
    %c0_i32_2 = arith.constant 0 : i32
    return %c0_i32, %c0_i32_0, %c0_i32_1 : i32, i32, i32
  }
  func.func @transform_2(%arg0: i32) -> (i32, i32) {
    %c0_i32 = arith.constant 0 : i32
    %c0_i32_0 = arith.constant 0 : i32
    %c0_i32_1 = arith.constant 0 : i32
    return %c0_i32, %c0_i32_0 : i32, i32
  }
  func.func @transform_3(%arg0: i32) -> (i32, i32, i32) {
    %c0_i32 = arith.constant 0 : i32
    %c0_i32_0 = arith.constant 0 : i32
    %c0_i32_1 = arith.constant 0 : i32
    return %arg0, %c0_i32, %c0_i32_0 : i32, i32, i32
  }
}

</mosaic_0001>

<bundles_post_ra>
// kernel: tpu_custom_call.1
= control target key start
LH: loop header
LB: loop body
LE: loop exit
PB: predicated region body
PF: predicated region fallthrough
CT: control target
= control target key end

     0   :  { %8 = vsyncpa [#allocation3], 0  ;;  %s10242_s0 = inlined_call_operand.hbm [shape: f32[4,4,4096], index: 0, kind: input, shape index: {}]   ;;  %s10243_s1 = inlined_call_operand.vmem [shape: bf16[3,16,4], index: 1, kind: input, shape index: {}]   ;;  %s10244_s2 = inlined_call_operand.vmem [shape: f32[16,1], index: 2, kind: input, shape index: {}]   ;;  %s10245_s3 = inlined_call_operand.hbm [shape: f32[4,8,3584], index: 3, kind: output, shape index: {}]  }
   0x1   :  { %10 = vsyncpa [#allocation3 + $0x1], 0 }
   0x2   :  { %11 = vsyncpa [#allocation4], 0 }
   0x3   :  { %13 = vsyncpa [#allocation4 + $0x1], 0  ;;  %s6486_s12 = smov 0   ;;  %s6488_s13 = smov 0  }
   0x4   :  { %s6490_s14 = smov 0   ;;  %s6492_s15 = smov 0  }
   0x5 LB: > { %s6507_s16 = sadd.s32 4294967295, %s6459_s15   ;;  %s5707_s17 = sadd.s32 4294967294, %s6459_s15   ;;  %s6459_s15 = sphi %s6492_s15, %s10780_s15   ;;  %s6455_s14 = sphi %s6490_s14, %s10779_s14   ;;  %s6451_s13 = sphi %s6488_s13, %s10778_s13   ;;  %s6447_s12 = sphi %s6486_s12, %s10777_s12  }
   0x6   : > { %s6511_s18 = sadd.s32 1, %s6459_s15   ;;  %s26_s19 = sadd.s32 1, %s6455_s14 }
   0x7   : > { %s23_s20 = ssub.s32 %s6459_s15, %s6511_s18  ;;  %p33_p0 = scmp.ne.s32.totalorder %s6455_s14, %s6451_s13 }
   0x8   : > { %p24_p1 = scmp.eq.s32.totalorder %s23_s20, 0  ;;  %p34_p2 = scmp.eq.s32.totalorder %s6459_s15, 0 }
   0x9   : > { %p39_p3 = scmp.ne.s32.totalorder %s6451_s13, %s6447_s12  ;;  %p40_p4 = scmp.eq.s32.totalorder %s6507_s16, 0 }
   0xa   : > { %s6523_s21 = scalar_select %p24_p1, %s6455_s14, %s26_s19  }
   0xb   : > { %p6525_p5 = por %p34_p2, %p33_p0  ;;  %p6529_p6 = por %p40_p4, %p39_p3 }
   0xc   : > { %p105_p7 = scmp.eq.s32.totalorder %s6507_s16, 1  ;;  %p111_p8 = scmp.eq.s32.totalorder %s5707_s17, 1 }
   0xd   : > { %p6097_p10 = scmp.lt.s32.totalorder %s6459_s15, 2  ;;  %s137_s26 = sand.u32 1, %s6455_s14  }
   0xe   : > { %p6536_p11 = por %p105_p7, %p33_p0  ;;  %p6540_p12 = por %p111_p8, %p39_p3 }
   0xf   : > { %s6076_s27 = sshll.u32 %s6459_s15, 8  ;;  %s5710_s28 = sshll.u32 %s137_s26, 8 }
  0x10   : > { %s147_s4 = scalar_lea.hbm %s10242_s0, %s6076_s27  ;;  %s141_s6 = scalar_lea.vmem [#allocation2], %s5710_s28 }
  0x11   : > { %s148_s5 = sshll.u32 %s147_s4, 4  ;;  %s150_s7 = sshll.u32 %s141_s6, 4  ;;  %s149_s5 = int_to_ptr.hbm [resolvable:$true] %s148_s5  ;;  %s151_s7 = int_to_ptr.vmem [resolvable:$true] %s150_s7 }
  0x12   : > { %p6551_p13 = pnand %p6097_p10, %p6525_p5  ;;  %p5714_p0 = scmp.ge.s32.totalorder %s6459_s15, 1 }
  0x13   : > { %p158_p1 = scmp.lt.s32.totalorder %s6459_s15, 3  ;;  %s138_s9 = scalar_lea.sflag [#allocation3], %s137_s26 }
  0x14   : > { %s6363_s10 = sshra.s32 %s149_s5, 4  ;;  %p6367_p3 = pneg %p6551_p13  ;;  %s6364_s10 = int_to_ptr.hbm [resolvable:$true] %s6363_s10 }
  0x15   : > { %s6365_s11 = scalar_lea.hbm %s6364_s10, 256  ;;  %s6370_s20 = scalar_lea.hbm %s10242_s0, 512 }
  0x16   : > { %p6366_p2 = scmp.ne.s32.totalorder %s6364_s10, %s6365_s11  ;;  %p6371_p5 = scmp.lt.s32.totalorder %s6364_s10, %s10242_s0 }
  0x17   : > { %p6372_p8 = scmp.lt.s32.totalorder %s6370_s20, %s6365_s11 }
  0x18   : > { %p6368_p4 = pnand %p6367_p3, %p6366_p2 }
  0x19   : > { %p6373_p10 = por %p6372_p8, %p6371_p5 }
  0x1a   : > { %p6369_p7 = pneg %p6368_p4 }
  0x1c   : > { %p6374_p9 = pnand %p6373_p10, %p6369_p7 }
  0x1e   : > { %6377 = shalt.err (!%p6374_p9)
}
  0x1f   : > { %s6461_s26 = smov 2048   ;;  %s6462_s28 = smov 128  }
  0x20   : > { %6092 = dma.hbm_to_vmem [thread:$0]  (!%p6551_p13), %s149_s5, 4096, %s151_s7, %s138_s9, %s6461_s26, %s6461_s26, %s6462_s28  }
  0x21   : > { %p159_p2 = pnand %p5714_p0, %p158_p1 }
  0x23   : > { %162 = sbr.rel (%p159_p2) target bundleno = 1051 (0x41b), region = 32 }
  0x28   : > { %s6572_s29 = sand.u32 1, %s6451_s13  }
  0x29   : > { %s5715_s30 = sshll.u32 %s6572_s29, 8  ;;  %s165_s4 = scalar_lea.sflag [#allocation3], %s6572_s29 }
  0x2a   : > { %s6576_s6 = scalar_lea.vmem [#allocation2], %s5715_s30 }
  0x2b   : > { %6438 = dma.done.wait (%p6529_p6), %s165_s4, 4096  }
  0x2c   : > { %6440 = vsyncadd (%p6529_p6), %s165_s4, 4294963200  ;;  %v199_v0 = vld [vmem:[%s6576_s6] sm:$0xff]  ;;  %v328_v1 = vld [vmem:[%s6576_s6 + $0x8] sm:$0xff]  ;;  %vm469_vm0 = vcmask 1041408   ;;  %vm465_vm1 = vcmask 31744   ;;  %s6083_s26 = smul.u32 448, %s6572_s29 }
  0x2d   : > { %227 = vst [vmem:[#allocation1] ss:$2 sm:$0xff] %v199_v0  ;;  %v6585_v2 = vld [vmem:[%s6576_s6 + $0x10] sm:$0xff]  ;;  %v6588_v3 = vld [vmem:[%s6576_s6 + $0x18] sm:$0xff]  ;;  %v6593_v4 = vld [vmem:[%s6576_s6 + $0x20] sm:$0xff]  ;;  %s5618_s22 = scalar_lea.sflag [#allocation4], %s6572_s29 }
  0x2e   : > { %229 = vst [vmem:[#allocation1 + $0x10] ss:$2 sm:$0xff] %v328_v1  ;;  %v6596_v5 = vld [vmem:[%s6576_s6 + $0x28] sm:$0xff]  ;;  %v6608_v10 = vld [vmem:[%s6576_s6 + $0x38] sm:$0xff]  ;;  %v6614_v12 = vld [vmem:[%s6576_s6 + $0x30] sm:$0xff]  ;;  %s7868_s28 = scalar_lea.vmem [#allocation5], %s6083_s26 }
  0x2f   : > { %231 = vst [vmem:[#allocation1 + $0x20] ss:$2 sm:$0xff] %v6585_v2  ;;  %v207_v16 = vld [vmem:[%s6576_s6 + $0x40] sm:$0xff]  ;;  %v6626_v17 = vld [vmem:[%s6576_s6 + $0x48] sm:$0xff]  ;;  %v6633_v20 = vld [vmem:[%s6576_s6 + $0x58] sm:$0xff]  ;;  %s5631_s19 = sshll.u32 %s7868_s28, 4  ;;  %s5632_s19 = int_to_ptr.vmem [resolvable:$true] %s5631_s19 }
  0x30   : > { %233 = vst [vmem:[#allocation1 + $0x30] ss:$2 sm:$0xff] %v6588_v3  ;;  %v6641_v23 = vld [vmem:[%s6576_s6 + $0x50] sm:$0xff]  ;;  %v6651_v27 = vld [vmem:[%s6576_s6 + $0x60] sm:$0xff]  ;;  %v6656_v29 = vld [vmem:[%s6576_s6 + $0x68] sm:$0xff]  ;;  %s6413_s23 = scalar_lea.hbm %s10245_s3, 896 }
  0x31   : > { %v6697_v62 = vld [vmem:[%s10243_s1 + $0x8] sm:$0xff] }
  0x34   : > { %v6598_v6 = vld.sshfl [vmem:[#allocation1] sm:$0xff pattern:$0x75316420]  ;;  %v6600_v7 = vld.sshfl [vmem:[#allocation1 + $0x8] sm:$0xff pattern:$0x75316420] }
  0x35   : > { %242 = vst [vmem:[#allocation1] ss:$2 sm:$0xff] %v6593_v4  ;;  %v6603_v8 = vld.sshfl [vmem:[#allocation1 + $0x10] sm:$0xff pattern:$0x75316420] }
  0x36   : > { %v6605_v9 = vld.sshfl [vmem:[#allocation1 + $0x18] sm:$0xff pattern:$0x75316420]  ;;  %v6618_v14 = vld.sshfl [vmem:[#allocation1 + $0x20] sm:$0xff pattern:$0x75316420] }
  0x37   : > { %243 = vst [vmem:[#allocation1 + $0x10] ss:$2 sm:$0xff] %v6596_v5  ;;  %v6611_v11 = vld.sshfl [vmem:[#allocation1 + $0x30] sm:$0xff pattern:$0x75316420] }
  0x38   : > { %v6616_v13 = vld.sshfl [vmem:[#allocation1 + $0x38] sm:$0xff pattern:$0x75316420]  ;;  %v6621_v15 = vld.sshfl [vmem:[#allocation1 + $0x28] sm:$0xff pattern:$0x75316420] }
  0x39   : > { %245 = vst [vmem:[#allocation1 + $0x30] ss:$2 sm:$0xff] %v6608_v10 }
  0x3a   : > { %244 = vst [vmem:[#allocation1 + $0x20] ss:$2 sm:$0xff] %v6614_v12 }
  0x3c   : > { %v6628_v18 = vld.sshfl [vmem:[#allocation1] sm:$0xff pattern:$0x75316420]  ;;  %v6630_v19 = vld.sshfl [vmem:[#allocation1 + $0x8] sm:$0xff pattern:$0x75316420] }
  0x3d   : > { %254 = vst [vmem:[#allocation1] ss:$2 sm:$0xff] %v207_v16 }
  0x3e   : > { %v6635_v21 = vld.sshfl [vmem:[#allocation1 + $0x10] sm:$0xff pattern:$0x75316420]  ;;  %v6637_v22 = vld.sshfl [vmem:[#allocation1 + $0x18] sm:$0xff pattern:$0x75316420] }
  0x3f   : > { %255 = vst [vmem:[#allocation1 + $0x10] ss:$2 sm:$0xff] %v6626_v17 }
  0x40   : > { %v6643_v24 = vld.sshfl [vmem:[#allocation1 + $0x30] sm:$0xff pattern:$0x75316420]  ;;  %v6645_v25 = vld.sshfl [vmem:[#allocation1 + $0x38] sm:$0xff pattern:$0x75316420] }
  0x41   : > { %257 = vst [vmem:[#allocation1 + $0x30] ss:$2 sm:$0xff] %v6633_v20  ;;  %v6648_v26 = vld.sshfl [vmem:[#allocation1 + $0x20] sm:$0xff pattern:$0x75316420] }
  0x42   : > { %v6653_v28 = vld.sshfl [vmem:[#allocation1 + $0x28] sm:$0xff pattern:$0x75316420] }
  0x43   : > { %256 = vst [vmem:[#allocation1 + $0x20] ss:$2 sm:$0xff] %v6641_v23 }
  0x44   : > { %v6659_v30 = vld.sshfl [vmem:[#allocation1] sm:$0xff pattern:$0x75316420]  ;;  %v6661_v31 = vld.sshfl [vmem:[#allocation1 + $0x8] sm:$0xff pattern:$0x75316420] }
  0x45   : > { %266 = vst [vmem:[#allocation1] ss:$2 sm:$0xff] %v6651_v27 }
  0x46   : > { %v6664_v32 = vld.sshfl [vmem:[#allocation1 + $0x10] sm:$0xff pattern:$0x75316420]  ;;  %v6666_v33 = vld.sshfl [vmem:[#allocation1 + $0x18] sm:$0xff pattern:$0x75316420] }
  0x47   : > { %267 = vst [vmem:[#allocation1 + $0x10] ss:$2 sm:$0xff] %v6656_v29 }
  0x48   : > { %v6669_v34 = vld.sshfl [vmem:[#allocation1 + $0x30] sm:$0xff pattern:$0x75316420]  ;;  %v6671_v35 = vld.sshfl [vmem:[#allocation1 + $0x38] sm:$0xff pattern:$0x75316420] }
  0x49   : > { %362 = vst [vmem:[#allocation1 + $0x30] ss:$2 sm:$0xff] %v6593_v4 }
  0x4a   : > { %v6674_v36 = vld.sshfl [vmem:[#allocation1 + $0x20] sm:$0xff pattern:$0x75316420]  ;;  %v6676_v37 = vld.sshfl [vmem:[#allocation1 + $0x28] sm:$0xff pattern:$0x75316420] }
  0x4b   : > { %360 = vst [vmem:[#allocation1 + $0x20] ss:$2 sm:$0xff] %v6588_v3 }
  0x4c   : > { %v6679_v38 = vld.sshfl [vmem:[#allocation1] sm:$0xff pattern:$0x75316420]  ;;  %v6681_v39 = vld.sshfl [vmem:[#allocation1 + $0x8] sm:$0xff pattern:$0x75316420] }
  0x4d   : > { %356 = vst [vmem:[#allocation1] ss:$2 sm:$0xff] %v328_v1 }
  0x4e   : > { %v6683_v40 = vld.sshfl [vmem:[#allocation1 + $0x10] sm:$0xff pattern:$0x75316420]  ;;  %v6685_v41 = vld.sshfl [vmem:[#allocation1 + $0x18] sm:$0xff pattern:$0x75316420] }
  0x4f   : > { %358 = vst [vmem:[#allocation1 + $0x10] ss:$2 sm:$0xff] %v6585_v2 }
  0x50   : > { %v369_v42 = vld.sshfl [vmem:[#allocation1 + $0x30] sm:$0xff pattern:$0x75316420]  ;;  %v370_v43 = vld.sshfl [vmem:[#allocation1 + $0x38] sm:$0xff pattern:$0x75316420] }
  0x51   : > { %374 = vst [vmem:[#allocation1 + $0x30] ss:$2 sm:$0xff] %v207_v16  ;;  %v435_v50 = vpack.c.bf16 %v369_v42, %v369_v42  ;;  %v436_v51 = vpack.c.bf16 %v370_v43, %v370_v43 }
  0x52   : > { %v367_v44 = vld.sshfl [vmem:[#allocation1 + $0x20] sm:$0xff pattern:$0x75316420]  ;;  %v368_v45 = vld.sshfl [vmem:[#allocation1 + $0x28] sm:$0xff pattern:$0x75316420] }
  0x53   : > { %v433_v46 = vpack.c.bf16 %v367_v44, %v367_v44  ;;  %v434_v47 = vpack.c.bf16 %v368_v45, %v368_v45  ;;  %373 = vst [vmem:[#allocation1 + $0x20] ss:$2 sm:$0xff] %v6608_v10  ;;  %v489_v1 = vsel %vm469_vm0, %v435_v50, 0  ;;  %v492_v16 = vsel %vm469_vm0, %v436_v51, 0 }
  0x54   : > { %v363_v48 = vld.sshfl [vmem:[#allocation1] sm:$0xff pattern:$0x75316420]  ;;  %v364_v49 = vld.sshfl [vmem:[#allocation1 + $0x8] sm:$0xff pattern:$0x75316420] }
  0x55   : > { %v429_v52 = vpack.c.bf16 %v363_v48, %v363_v48  ;;  %v430_v53 = vpack.c.bf16 %v364_v49, %v364_v49  ;;  %v483_v54 = vsel %vm469_vm0, %v433_v46, 0  ;;  %v486_v55 = vsel %vm469_vm0, %v434_v47, 0  ;;  %371 = vst [vmem:[#allocation1] ss:$2 sm:$0xff] %v6596_v5 }
  0x56   : > { %v365_v56 = vld.sshfl [vmem:[#allocation1 + $0x10] sm:$0xff pattern:$0x75316420]  ;;  %v366_v57 = vld.sshfl [vmem:[#allocation1 + $0x18] sm:$0xff pattern:$0x75316420] }
  0x57   : > { %v471_v58 = vsel %vm469_vm0, %v429_v52, 0  ;;  %v474_v59 = vsel %vm469_vm0, %v430_v53, 0  ;;  %v431_v60 = vpack.c.bf16 %v365_v56, %v365_v56  ;;  %v432_v61 = vpack.c.bf16 %v366_v57, %v366_v57  ;;  %372 = vst [vmem:[#allocation1 + $0x10] ss:$2 sm:$0xff] %v6614_v12 }
  0x58   : > { %561 = vmatpush.bf16.msra.mxu0 %v471_v58  ;;  %575 = vmatpush.bf16.msra.mxu1 %v474_v59  ;;  %v381_v52 = vld.sshfl [vmem:[#allocation1 + $0x30] sm:$0xff pattern:$0x75316420]  ;;  %v382_v53 = vld.sshfl [vmem:[#allocation1 + $0x38] sm:$0xff pattern:$0x75316420] }
  0x59   : > { %v477_v63 = vsel %vm469_vm0, %v431_v60, 0  ;;  %v480_v0 = vsel %vm469_vm0, %v432_v61, 0  ;;  %386 = vst [vmem:[#allocation1 + $0x30] ss:$2 sm:$0xff] %v6651_v27  ;;  %v443_v60 = vpack.c.bf16 %v381_v52, %v381_v52  ;;  %v444_v61 = vpack.c.bf16 %v382_v53, %v382_v53 }
  0x5a   : > { %589 = vmatpush.bf16.msra.mxu2 %v477_v63  ;;  %603 = vmatpush.bf16.msra.mxu3 %v480_v0  ;;  %v380_v57 = vld.sshfl [vmem:[#allocation1 + $0x28] sm:$0xff pattern:$0x75316420] }
  0x5b   : > { %5722 = vmatmul.msk.bf16.vlgmr.msra.gmra.mxu0 %vm465_vm1, %v6697_v62  ;;  %5723 = vmatmul.msk.bf16.vlgmr.msra.gmra.mxu1 %vm465_vm1, %v6697_v62  ;;  %v442_v59 = vpack.c.bf16 %v380_v57, %v380_v57  ;;  %v516_v27 = vsel %vm469_vm0, %v444_v61, 0 }
  0x5c   : > { %617 = vmatpush.bf16.msrb.mxu0 %v483_v54  ;;  %631 = vmatpush.bf16.msrb.mxu1 %v486_v55  ;;  %v375_v42 = vld.sshfl [vmem:[#allocation1] sm:$0xff pattern:$0x75316420]  ;;  %v376_v43 = vld.sshfl [vmem:[#allocation1 + $0x8] sm:$0xff pattern:$0x75316420] }
  0x5d   : > { %5724 = vmatmul.msk.bf16.vlgmr.msra.gmra.mxu2 %vm465_vm1, %v6697_v62  ;;  %5725 = vmatmul.msk.bf16.vlgmr.msra.gmra.mxu3 %vm465_vm1, %v6697_v62  ;;  %v437_v44 = vpack.c.bf16 %v375_v42, %v375_v42  ;;  %v438_v45 = vpack.c.bf16 %v376_v43, %v376_v43  ;;  %v379_v54 = vld.sshfl [vmem:[#allocation1 + $0x20] sm:$0xff pattern:$0x75316420]  ;;  %383 = vst [vmem:[#allocation1] ss:$2 sm:$0xff] %v6626_v17  ;;  %v510_v0 = vsel %vm469_vm0, %v442_v59, 0 }
  0x5e   : > { %645 = vmatpush.bf16.msrb.mxu2 %v489_v1  ;;  %659 = vmatpush.bf16.msrb.mxu3 %v492_v16  ;;  %v377_v46 = vld.sshfl [vmem:[#allocation1 + $0x10] sm:$0xff pattern:$0x75316420]  ;;  %v378_v47 = vld.sshfl [vmem:[#allocation1 + $0x18] sm:$0xff pattern:$0x75316420]  ;;  %v441_v58 = vpack.c.bf16 %v379_v54, %v379_v54 }
  0x5f   : > { %v439_v48 = vpack.c.bf16 %v377_v46, %v377_v46  ;;  %v440_v49 = vpack.c.bf16 %v378_v47, %v378_v47  ;;  %v495_v50 = vsel %vm469_vm0, %v437_v44, 0  ;;  %v498_v51 = vsel %vm469_vm0, %v438_v45, 0  ;;  %384 = vst [vmem:[#allocation1 + $0x10] ss:$2 sm:$0xff] %v6641_v23 }
  0x60   : > { %673 = vmatpush.bf16.msra.mxu0 %v495_v50  ;;  %687 = vmatpush.bf16.msra.mxu1 %v498_v51  ;;  %385 = vst [vmem:[#allocation1 + $0x20] ss:$2 sm:$0xff] %v6633_v20  ;;  %v507_v63 = vsel %vm469_vm0, %v441_v58, 0  ;;  %v513_v1 = vsel %vm469_vm0, %v443_v60, 0 }
  0x61   : > { %v501_v55 = vsel %vm469_vm0, %v439_v48, 0  ;;  %v504_v56 = vsel %vm469_vm0, %v440_v49, 0  ;;  %v393_v52 = vld.sshfl [vmem:[#allocation1 + $0x30] sm:$0xff pattern:$0x75316420] }
  0x62   : > { %701 = vmatpush.bf16.msra.mxu2 %v501_v55  ;;  %715 = vmatpush.bf16.msra.mxu3 %v504_v56  ;;  %v394_v53 = vld.sshfl [vmem:[#allocation1 + $0x38] sm:$0xff pattern:$0x75316420]  ;;  %v451_v58 = vpack.c.bf16 %v393_v52, %v393_v52  ;;  %v301_v52 = vpack.c.bf16 %v6600_v7, %v6600_v7 }
  0x63   : > { %1464 = vst [vmem:[#allocation1 + $0x30] ss:$2 sm:$0xff] %v6596_v5  ;;  %v452_v59 = vpack.c.bf16 %v394_v53, %v394_v53  ;;  %v302_v53 = vpack.c.bf16 %v6603_v8, %v6603_v8  ;;  %v304_v8 = vpack.c.bf16 %v6618_v14, %v6618_v14 }
  0x64   : > { %v387_v16 = vld.sshfl [vmem:[#allocation1] sm:$0xff pattern:$0x75316420]  ;;  %v388_v42 = vld.sshfl [vmem:[#allocation1 + $0x8] sm:$0xff pattern:$0x75316420] }
  0x65   : > { %395 = vst [vmem:[#allocation1] ss:$2 sm:$0xff] %v6656_v29  ;;  %v445_v45 = vpack.c.bf16 %v387_v16, %v387_v16  ;;  %v446_v46 = vpack.c.bf16 %v388_v42, %v388_v42 }
  0x66   : > { %v389_v43 = vld.sshfl [vmem:[#allocation1 + $0x10] sm:$0xff pattern:$0x75316420]  ;;  %v390_v44 = vld.sshfl [vmem:[#allocation1 + $0x18] sm:$0xff pattern:$0x75316420] }
  0x67   : > { %v447_v47 = vpack.c.bf16 %v389_v43, %v389_v43  ;;  %v448_v48 = vpack.c.bf16 %v390_v44, %v390_v44  ;;  %v519_v49 = vsel %vm469_vm0, %v445_v45, 0  ;;  %v522_v50 = vsel %vm469_vm0, %v446_v46, 0  ;;  %v391_v54 = vld.sshfl [vmem:[#allocation1 + $0x20] sm:$0xff pattern:$0x75316420] }
  0x68   : > { %v392_v55 = vld.sshfl [vmem:[#allocation1 + $0x28] sm:$0xff pattern:$0x75316420]  ;;  %v449_v56 = vpack.c.bf16 %v391_v54, %v391_v54  ;;  %v303_v54 = vpack.c.bf16 %v6605_v9, %v6605_v9  ;;  %v305_v9 = vpack.c.bf16 %v6621_v15, %v6621_v15 }
  0x69   : > { %v525_v51 = vsel %vm469_vm0, %v447_v47, 0  ;;  %v528_v29 = vsel %vm469_vm0, %v448_v48, 0  ;;  %1462 = vst [vmem:[#allocation1 + $0x20] ss:$2 sm:$0xff] %v6593_v4  ;;  %v450_v57 = vpack.c.bf16 %v392_v55, %v392_v55 }
  0x6a   : > { %v531_v60 = vsel %vm469_vm0, %v449_v56, 0  ;;  %v958_v56 = vsel %vm469_vm0, %v301_v52, 0  ;;  %v964_v7 = vsel %vm469_vm0, %v303_v54, 0 }
  0x6b   : > { %5726 = vmatmul.msk.bf16.vlgmr.msrb.gmra.mxu0 %vm465_vm1, %v6697_v62  ;;  %5727 = vmatmul.msk.bf16.vlgmr.msrb.gmra.mxu1 %vm465_vm1, %v6697_v62  ;;  %v534_v61 = vsel %vm469_vm0, %v450_v57, 0  ;;  %v306_v57 = vpack.c.bf16 %v6611_v11, %v6611_v11  ;;  %v308_v11 = vpack.c.bf16 %v6628_v18, %v6628_v18 }
  0x6c   : > { %729 = vmatpush.bf16.msrb.mxu0 %v507_v63  ;;  %743 = vmatpush.bf16.msrb.mxu1 %v510_v0  ;;  %v537_v63 = vsel %vm469_vm0, %v451_v58, 0  ;;  %v540_v0 = vsel %vm469_vm0, %v452_v59, 0  ;;  %v398_v16 = vld.sshfl [vmem:[#allocation1 + $0x8] sm:$0xff pattern:$0x75316420]  ;;  %v307_v58 = vpack.c.bf16 %v6616_v13, %v6616_v13  ;;  %v967_v59 = vsel %vm469_vm0, %v304_v8, 0 }
  0x6d   : > { %5728 = vmatmul.msk.bf16.vlgmr.msrb.gmra.mxu2 %vm465_vm1, %v6697_v62  ;;  %5729 = vmatmul.msk.bf16.vlgmr.msrb.gmra.mxu3 %vm465_vm1, %v6697_v62  ;;  %v454_v45 = vpack.c.bf16 %v398_v16, %v398_v16  ;;  %v973_v14 = vsel %vm469_vm0, %v306_v57, 0  ;;  %v309_v13 = vpack.c.bf16 %v6630_v19, %v6630_v19  ;;  %v314_v16 = vpack.c.bf16 %v6643_v24, %v6643_v24 }
  0x6e   : > { %757 = vmatpush.bf16.msrb.mxu2 %v513_v1  ;;  %771 = vmatpush.bf16.msrb.mxu3 %v516_v27  ;;  %v6760_v1 = vld [vmem:[%s6576_s6 + $0x70] sm:$0xff]  ;;  %v397_v27 = vld.sshfl [vmem:[#allocation1] sm:$0xff pattern:$0x75316420]  ;;  %v976_v15 = vsel %vm469_vm0, %v307_v58, 0  ;;  %v321_v57 = vpack.c.bf16 %v6676_v37, %v6676_v37  ;;  %v322_v58 = vpack.c.bf16 %v6669_v34, %v6669_v34 }
  0x6f   : > { %396 = vst [vmem:[#allocation1 + $0x10] ss:$2 sm:$0xff] %v6760_v1  ;;  %v453_v44 = vpack.c.bf16 %v397_v27, %v397_v27  ;;  %v982_v27 = vsel %vm469_vm0, %v309_v13, 0 }
  0x70   : > { %1458 = vst [vmem:[#allocation1] ss:$2 sm:$0xff] %v6585_v2  ;;  %v1021_v34 = vsel %vm469_vm0, %v322_v58, 0 }
  0x71   : > { %v543_v48 = vsel %vm469_vm0, %v453_v44, 0 }
  0x76   : > { %v399_v42 = vld.sshfl [vmem:[#allocation1 + $0x10] sm:$0xff pattern:$0x75316420]  ;;  %v400_v43 = vld.sshfl [vmem:[#allocation1 + $0x18] sm:$0xff pattern:$0x75316420] }
  0x77   : > { %1460 = vst [vmem:[#allocation1 + $0x10] ss:$2 sm:$0xff] %v6588_v3  ;;  %v455_v46 = vpack.c.bf16 %v399_v42, %v399_v42  ;;  %v456_v47 = vpack.c.bf16 %v400_v43, %v400_v43  ;;  %v315_v42 = vpack.c.bf16 %v6645_v25, %v6645_v25 }
  0x79   : > { %v1000_v24 = vsel %vm469_vm0, %v315_v42, 0 }
  0x7b   : > { %5730 = vmatmul.msk.bf16.vlgmr.msra.gmra.mxu0 %vm465_vm1, %v6697_v62  ;;  %5731 = vmatmul.msk.bf16.vlgmr.msra.gmra.mxu1 %vm465_vm1, %v6697_v62 }
  0x7c   : > { %785 = vmatpush.bf16.msra.mxu0 %v519_v49  ;;  %799 = vmatpush.bf16.msra.mxu1 %v522_v50  ;;  %v546_v49 = vsel %vm469_vm0, %v454_v45, 0  ;;  %v549_v50 = vsel %vm469_vm0, %v455_v46, 0 }
  0x7d   : > { %5732 = vmatmul.msk.bf16.vlgmr.msra.gmra.mxu2 %vm465_vm1, %v6697_v62  ;;  %5733 = vmatmul.msk.bf16.vlgmr.msra.gmra.mxu3 %vm465_vm1, %v6697_v62 }
  0x7e   : > { %813 = vmatpush.bf16.msra.mxu2 %v525_v51  ;;  %827 = vmatpush.bf16.msra.mxu3 %v528_v29  ;;  %v552_v51 = vsel %vm469_vm0, %v456_v47, 0  ;;  %v300_v29 = vpack.c.bf16 %v6598_v6, %v6598_v6  ;;  %v961_v6 = vsel %vm469_vm0, %v302_v53, 0 }
  0x80   : > { %v955_v55 = vsel %vm469_vm0, %v300_v29, 0  ;;  %v319_v29 = vpack.c.bf16 %v6666_v33, %v6666_v33 }
  0x8b   : > { %5734 = vmatmul.msk.bf16.vlgmr.msrb.gmra.mxu0 %vm465_vm1, %v6697_v62  ;;  %5735 = vmatmul.msk.bf16.vlgmr.msrb.gmra.mxu1 %vm465_vm1, %v6697_v62 }
  0x8c   : > { %841 = vmatpush.bf16.msrb.mxu0 %v531_v60  ;;  %855 = vmatpush.bf16.msrb.mxu1 %v534_v61  ;;  %v970_v60 = vsel %vm469_vm0, %v305_v9, 0  ;;  %v6824_v61 = vld [vmem:[%s10243_s1] sm:$0xff]  ;;  %v320_v9 = vpack.c.bf16 %v6674_v36, %v6674_v36  ;;  %v1018_v36 = vsel %vm469_vm0, %v321_v57, 0 }
  0x8d   : > { %5736 = vmatmul.msk.bf16.vlgmr.msrb.gmra.mxu2 %vm465_vm1, %v6697_v62  ;;  %5737 = vmatmul.msk.bf16.vlgmr.msrb.gmra.mxu3 %vm465_vm1, %v6697_v62 }
  0x8e   : > { %869 = vmatpush.bf16.msrb.mxu2 %v537_v63  ;;  %883 = vmatpush.bf16.msrb.mxu3 %v540_v0  ;;  %v310_v63 = vpack.c.bf16 %v6635_v21, %v6635_v21  ;;  %v311_v0 = vpack.c.bf16 %v6637_v22, %v6637_v22  ;;  %v312_v21 = vpack.c.bf16 %v6648_v26, %v6648_v26  ;;  %v997_v26 = vsel %vm469_vm0, %v314_v16, 0 }
  0x8f   : > { %v313_v22 = vpack.c.bf16 %v6653_v28, %v6653_v28  ;;  %v1015_v13 = vsel %vm469_vm0, %v320_v9, 0 }
  0x90   : > { %v985_v18 = vsel %vm469_vm0, %v310_v63, 0  ;;  %v988_v19 = vsel %vm469_vm0, %v311_v0, 0  ;;  %v991_v45 = vsel %vm469_vm0, %v312_v21, 0  ;;  %v327_v21 = vpack.c.bf16 %v6685_v41, %v6685_v41  ;;  %v1467_v41 = vld.sshfl [vmem:[#allocation1 + $0x10] sm:$0xff pattern:$0x75316420] }
  0x91   : > { %v994_v46 = vsel %vm469_vm0, %v313_v22, 0 }
  0x9b   : > { %5738 = vmatmul.msk.bf16.vlgmr.msra.gmra.mxu0 %vm465_vm1, %v6697_v62  ;;  %5739 = vmatmul.msk.bf16.vlgmr.msra.gmra.mxu1 %vm465_vm1, %v6697_v62 }
  0x9c   : > { %897 = vmatpush.bf16.msra.mxu0 %v543_v48  ;;  %911 = vmatpush.bf16.msra.mxu1 %v546_v49  ;;  %v316_v49 = vpack.c.bf16 %v6659_v30, %v6659_v30 }
  0x9d   : > { %5740 = vmatmul.msk.bf16.vlgmr.msra.gmra.mxu2 %vm465_vm1, %v6697_v62  ;;  %5741 = vmatmul.msk.bf16.vlgmr.msra.gmra.mxu3 %vm465_vm1, %v6697_v62 }
  0x9e   : > { %925 = vmatpush.bf16.msra.mxu2 %v549_v50  ;;  %939 = vmatpush.bf16.msra.mxu3 %v552_v51  ;;  %v317_v50 = vpack.c.bf16 %v6661_v31, %v6661_v31  ;;  %v318_v51 = vpack.c.bf16 %v6664_v32, %v6664_v32  ;;  %v1012_v32 = vsel %vm469_vm0, %v319_v29, 0  ;;  %v1465_v29 = vld.sshfl [vmem:[#allocation1] sm:$0xff pattern:$0x75316420] }
  0xa0   : > { %v1006_v30 = vsel %vm469_vm0, %v317_v50, 0  ;;  %v1009_v31 = vsel %vm469_vm0, %v318_v51, 0 }
  0xab   : > { %5742 = vmatmul.msk.bf16.vlgmr.msrb.gmra.mxu0 %vm465_vm1, %v6697_v62  ;;  %5743 = vmatmul.msk.bf16.vlgmr.msrb.gmra.mxu1 %vm465_vm1, %v6697_v62 }
  0xac   : > { %1045 = vmatpush.bf16.msrb.mxu0 %v955_v55  ;;  %1059 = vmatpush.bf16.msrb.mxu1 %v958_v56  ;;  %v1003_v56 = vsel %vm469_vm0, %v316_v49, 0 }
  0xad   : > { %5744 = vmatmul.msk.bf16.vlgmr.msrb.gmra.mxu2 %vm465_vm1, %v6697_v62  ;;  %5745 = vmatmul.msk.bf16.vlgmr.msrb.gmra.mxu3 %vm465_vm1, %v6697_v62 }
  0xae   : > { %1073 = vmatpush.bf16.msrb.mxu2 %v961_v6  ;;  %1087 = vmatpush.bf16.msrb.mxu3 %v964_v7 }
  0xbb   : > { %5746 = vmatmul.msk.bf16.vlgmr.msra.gmra.mxu0 %vm465_vm1, %v6697_v62  ;;  %5747 = vmatmul.msk.bf16.vlgmr.msra.gmra.mxu1 %vm465_vm1, %v6697_v62 }
  0xbc   : > { %1101 = vmatpush.bf16.msra.mxu0 %v967_v59  ;;  %1115 = vmatpush.bf16.msra.mxu1 %v970_v60  ;;  %v323_v59 = vpack.c.bf16 %v6671_v35, %v6671_v35 }
  0xbd   : > { %5748 = vmatmul.msk.bf16.vlgmr.msra.gmra.mxu2 %vm465_vm1, %v6697_v62  ;;  %5749 = vmatmul.msk.bf16.vlgmr.msra.gmra.mxu3 %vm465_vm1, %v6697_v62  ;;  %v979_v62 = vsel %vm469_vm0, %v308_v11, 0 }
  0xbe   : > { %1129 = vmatpush.bf16.msra.mxu2 %v973_v14  ;;  %1143 = vmatpush.bf16.msra.mxu3 %v976_v15  ;;  %v1024_v35 = vsel %vm469_vm0, %v323_v59, 0 }
  0xcb   : > { %5754 = vmatmul.msk.bf16.vlgmr.msrb.gmra.mxu0 %vm465_vm1, %v6824_v61  ;;  %5755 = vmatmul.msk.bf16.vlgmr.msrb.gmra.mxu1 %vm465_vm1, %v6824_v61 }
  0xcc   : > { %1157 = vmatpush.bf16.msrb.mxu0 %v979_v62  ;;  %1171 = vmatpush.bf16.msrb.mxu1 %v982_v27  ;;  %v324_v27 = vpack.c.bf16 %v6679_v38, %v6679_v38 }
  0xcd   : > { %5756 = vmatmul.msk.bf16.vlgmr.msrb.gmra.mxu2 %vm465_vm1, %v6824_v61  ;;  %5757 = vmatmul.msk.bf16.vlgmr.msrb.gmra.mxu3 %vm465_vm1, %v6824_v61 }
  0xce   : > { %1185 = vmatpush.bf16.msrb.mxu2 %v985_v18  ;;  %1199 = vmatpush.bf16.msrb.mxu3 %v988_v19  ;;  %v325_v18 = vpack.c.bf16 %v6681_v39, %v6681_v39  ;;  %v326_v19 = vpack.c.bf16 %v6683_v40, %v6683_v40  ;;  %v1036_v40 = vsel %vm469_vm0, %v327_v21, 0 }
  0xd0   : > { %v1030_v38 = vsel %vm469_vm0, %v325_v18, 0  ;;  %v1033_v39 = vsel %vm469_vm0, %v326_v19, 0  ;;  %v1471_v18 = vld.sshfl [vmem:[#allocation1 + $0x30] sm:$0xff pattern:$0x75316420] }
  0xd1   : > { %v1472_v19 = vld.sshfl [vmem:[#allocation1 + $0x38] sm:$0xff pattern:$0x75316420] }
  0xd2   : > { %1476 = vst [vmem:[#allocation1 + $0x30] ss:$2 sm:$0xff] %v6626_v17 }
  0xd8   : > { %v6850_v43 = vpop.f32.mrf.mxu0  ;;  %v6852_v44 = vpop.f32.mrf.mxu1 }
  0xdb   : > { %5758 = vmatmul.msk.bf16.vlgmr.msra.gmra.mxu0 %vm465_vm1, %v6824_v61  ;;  %5759 = vmatmul.msk.bf16.vlgmr.msra.gmra.mxu1 %vm465_vm1, %v6824_v61 }
  0xdc   : > { %1213 = vmatpush.bf16.msra.mxu0 %v991_v45  ;;  %1227 = vmatpush.bf16.msra.mxu1 %v994_v46  ;;  %v1027_v46 = vsel %vm469_vm0, %v324_v27, 0 }
  0xdd   : > { %5760 = vmatmul.msk.bf16.vlgmr.msra.gmra.mxu2 %vm465_vm1, %v6824_v61  ;;  %5761 = vmatmul.msk.bf16.vlgmr.msra.gmra.mxu3 %vm465_vm1, %v6824_v61 }
  0xde   : > { %1241 = vmatpush.bf16.msra.mxu2 %v997_v26  ;;  %1255 = vmatpush.bf16.msra.mxu3 %v1000_v24  ;;  %v1468_v26 = vld.sshfl [vmem:[#allocation1 + $0x18] sm:$0xff pattern:$0x75316420] }
  0xdf   : > { %1474 = vst [vmem:[#allocation1 + $0x10] ss:$2 sm:$0xff] %v6608_v10  ;;  %v1534_v9 = vpack.c.bf16 %v1468_v26, %v1468_v26  ;;  %v1469_v26 = vld.sshfl [vmem:[#allocation1 + $0x20] sm:$0xff pattern:$0x75316420] }
  0xe0   : > { %v6866_v25 = vpop.f32.mrf.mxu2  ;;  %v6868_v28 = vpop.f32.mrf.mxu3 }
  0xe1   : > { %v6870_v47 = vpop.f32.mrf.mxu0  ;;  %v6872_v48 = vpop.f32.mrf.mxu1  ;;  %v1580_v27 = vsel %vm469_vm0, %v1534_v9, 0 }
  0xe8   : > { %v6882_v52 = vpop.f32.mrf.mxu2  ;;  %v6884_v53 = vpop.f32.mrf.mxu3 }
  0xe9   : > { %v6886_v54 = vpop.f32.mrf.mxu0  ;;  %v6888_v55 = vpop.f32.mrf.mxu1 }
  0xeb   : > { %5762 = vmatmul.msk.bf16.vlgmr.msrb.gmra.mxu0 %vm465_vm1, %v6824_v61  ;;  %5763 = vmatmul.msk.bf16.vlgmr.msrb.gmra.mxu1 %vm465_vm1, %v6824_v61 }
  0xec   : > { %1269 = vmatpush.bf16.msrb.mxu0 %v1003_v56  ;;  %1283 = vmatpush.bf16.msrb.mxu1 %v1006_v30  ;;  %v1466_v56 = vld.sshfl [vmem:[#allocation1 + $0x8] sm:$0xff pattern:$0x75316420]  ;;  %v1531_v30 = vpack.c.bf16 %v1465_v29, %v1465_v29 }
  0xed   : > { %5764 = vmatmul.msk.bf16.vlgmr.msrb.gmra.mxu2 %vm465_vm1, %v6824_v61  ;;  %5765 = vmatmul.msk.bf16.vlgmr.msrb.gmra.mxu3 %vm465_vm1, %v6824_v61  ;;  %1473 = vst [vmem:[#allocation1] ss:$2 sm:$0xff] %v6614_v12  ;;  %v1470_v29 = vld.sshfl [vmem:[#allocation1 + $0x28] sm:$0xff pattern:$0x75316420] }
  0xee   : > { %1297 = vmatpush.bf16.msrb.mxu2 %v1009_v31  ;;  %1311 = vmatpush.bf16.msrb.mxu3 %v1012_v32  ;;  %v1532_v31 = vpack.c.bf16 %v1466_v56, %v1466_v56  ;;  %v1533_v32 = vpack.c.bf16 %v1467_v41, %v1467_v41  ;;  %v196_v41 = vld [vmem:[%s10244_s2 + $0x8] sm:$0xff]  ;;  %v1535_v56 = vpack.c.bf16 %v1469_v26, %v1469_v26  ;;  %v1479_v26 = vld.sshfl [vmem:[#allocation1 + $0x10] sm:$0xff pattern:$0x75316420] }
  0xf0   : > { %v6902_v33 = vpop.f32.mrf.mxu2  ;;  %v6904_v6 = vpop.f32.mrf.mxu3 }
  0xf1   : > { %v6906_v7 = vpop.f32.mrf.mxu0  ;;  %v6908_v8 = vpop.f32.mrf.mxu1 }
  0xf8   : > { %v6918_v60 = vpop.f32.mrf.mxu2  ;;  %v6920_v14 = vpop.f32.mrf.mxu3 }
  0xf9   : > { %v6922_v15 = vpop.f32.mrf.mxu0  ;;  %v6924_v11 = vpop.f32.mrf.mxu1 }
  0xfb   : > { %5766 = vmatmul.msk.bf16.vlgmr.msra.gmra.mxu0 %vm465_vm1, %v6824_v61  ;;  %5767 = vmatmul.msk.bf16.vlgmr.msra.gmra.mxu1 %vm465_vm1, %v6824_v61 }
  0xfc   : > { %1325 = vmatpush.bf16.msra.mxu0 %v1015_v13  ;;  %1339 = vmatpush.bf16.msra.mxu1 %v1018_v36  ;;  %v1571_v36 = vsel %vm469_vm0, %v1531_v30, 0  ;;  %v1536_v30 = vpack.c.bf16 %v1470_v29, %v1470_v29  ;;  %v1480_v29 = vld.sshfl [vmem:[#allocation1 + $0x18] sm:$0xff pattern:$0x75316420] }
  0xfd   : > { %5768 = vmatmul.msk.bf16.vlgmr.msra.gmra.mxu2 %vm465_vm1, %v6824_v61  ;;  %5769 = vmatmul.msk.bf16.vlgmr.msra.gmra.mxu3 %vm465_vm1, %v6824_v61  ;;  %1486 = vst [vmem:[#allocation1 + $0x10] ss:$2 sm:$0xff] %v6633_v20 }
  0xfe   : > { %1353 = vmatpush.bf16.msra.mxu2 %v1021_v34  ;;  %1367 = vmatpush.bf16.msra.mxu3 %v1024_v35  ;;  %v1574_v34 = vsel %vm469_vm0, %v1532_v31, 0  ;;  %v1577_v35 = vsel %vm469_vm0, %v1533_v32, 0  ;;  %v1537_v31 = vpack.c.bf16 %v1471_v18, %v1471_v18  ;;  %v1538_v32 = vpack.c.bf16 %v1472_v19, %v1472_v19 }
 0x100   : > { %v6938_v37 = vpop.f32.mrf.mxu2  ;;  %v6940_v63 = vpop.f32.mrf.mxu3  ;;  %v1589_v18 = vsel %vm469_vm0, %v1537_v31, 0  ;;  %v1592_v19 = vsel %vm469_vm0, %v1538_v32, 0 }
 0x101   : > { %v6942_v0 = vpop.f32.mrf.mxu0  ;;  %v6944_v62 = vpop.f32.mrf.mxu1 }
 0x108   : > { %v6954_v22 = vpop.f32.mrf.mxu2  ;;  %v6956_v16 = vpop.f32.mrf.mxu3 }
 0x109   : > { %10259 = vst [vmem:[#allocation8_spill] sm:$0xff] %v6954_v22  ;;  %v6958_v42 = vpop.f32.mrf.mxu0  ;;  %v6960_v45 = vpop.f32.mrf.mxu1 }
 0x10a   : > { %10260 = vst [vmem:[#allocation9_spill] sm:$0xff] %v6956_v16  ;;  %v7318_v16 = vld [vmem:[%s6576_s6 + $0xc0] sm:$0xff] }
 0x10b   : > { %10261 = vst [vmem:[#allocation10_spill] sm:$0xff] %v6958_v42  ;;  %5770 = vmatmul.msk.bf16.vlgmr.msrb.gmra.mxu0 %vm465_vm1, %v6824_v61  ;;  %5771 = vmatmul.msk.bf16.vlgmr.msrb.gmra.mxu1 %vm465_vm1, %v6824_v61 }
 0x10c   : > { %10262 = vst [vmem:[#allocation11_spill] sm:$0xff] %v6960_v45  ;;  %1381 = vmatpush.bf16.msrb.mxu0 %v1027_v46  ;;  %1395 = vmatpush.bf16.msrb.mxu1 %v1030_v38 }
 0x10d   : > { %5772 = vmatmul.msk.bf16.vlgmr.msrb.gmra.mxu2 %vm465_vm1, %v6824_v61  ;;  %5773 = vmatmul.msk.bf16.vlgmr.msrb.gmra.mxu3 %vm465_vm1, %v6824_v61 }
 0x10e   : > { %1409 = vmatpush.bf16.msrb.mxu2 %v1033_v39  ;;  %1423 = vmatpush.bf16.msrb.mxu3 %v1036_v40  ;;  %v6463_v40 = vmov 0  }
 0x10f   : > { %6136 = vset.pattern.permute.xlu0 %v6463_v40  ;;  %v1586_v40 = vsel %vm469_vm0, %v1536_v30, 0  ;;  %v1478_v30 = vld.sshfl [vmem:[#allocation1 + $0x8] sm:$0xff pattern:$0x75316420] }
 0x110   : > { %v6975_v24 = vpop.f32.mrf.mxu2  ;;  %v6977_v49 = vpop.f32.mrf.mxu3  ;;  %2109 = vperm.xlu0 %6136, %v196_v41   ;;  %v195_v41 = vld [vmem:[%s10244_s2] sm:$0xff] }
 0x111   : > { %10263 = vst [vmem:[#allocation12_spill] sm:$0xff] %v6975_v24  ;;  %v6979_v50 = vpop.f32.mrf.mxu0  ;;  %v6981_v51 = vpop.f32.mrf.mxu1 }
 0x112   : > { %10264 = vst [vmem:[#allocation13_spill] sm:$0xff] %v6977_v49 }
 0x113   : > { %10265 = vst [vmem:[#allocation14_spill] sm:$0xff] %v6979_v50 }
 0x114   : > { %10266 = vst [vmem:[#allocation15_spill] sm:$0xff] %v6981_v51 }
 0x118   : > { %v6984_v57 = vpop.f32.mrf.mxu2  ;;  %v6986_v58 = vpop.f32.mrf.mxu3  ;;  %2104 = vperm.xlu0 %6136, %v195_v41  }
 0x119   : > { %10267 = vst [vmem:[#allocation16_spill] sm:$0xff] %v6984_v57  ;;  %v6988_v59 = vpop.f32.mrf.mxu0  ;;  %v6990_v13 = vpop.f32.mrf.mxu1 }
 0x11a   : > { %10268 = vst [vmem:[#allocation17_spill] sm:$0xff] %v6986_v58 }
 0x11b   : > { %10269 = vst [vmem:[#allocation18_spill] sm:$0xff] %v6988_v59  ;;  %5774 = vmatmul.msk.bf16.vlgmr.msra.gmra.mxu0 %vm465_vm1, %v6824_v61  ;;  %5775 = vmatmul.msk.bf16.vlgmr.msra.gmra.mxu1 %vm465_vm1, %v6824_v61 }
 0x11c   : > { %10270 = vst [vmem:[#allocation19_spill] sm:$0xff] %v6990_v13  ;;  %1661 = vmatpush.bf16.msra.mxu0 %v1571_v36  ;;  %1675 = vmatpush.bf16.msra.mxu1 %v1574_v34 }
 0x11d   : > { %5776 = vmatmul.msk.bf16.vlgmr.msra.gmra.mxu2 %vm465_vm1, %v6824_v61  ;;  %5777 = vmatmul.msk.bf16.vlgmr.msra.gmra.mxu3 %vm465_vm1, %v6824_v61 }
 0x11e   : > { %1689 = vmatpush.bf16.msra.mxu2 %v1577_v35  ;;  %1703 = vmatpush.bf16.msra.mxu3 %v1580_v27  ;;  %v1583_v27 = vsel %vm469_vm0, %v1535_v56, 0  ;;  %v1477_v56 = vld.sshfl [vmem:[#allocation1] sm:$0xff pattern:$0x75316420] }
 0x11f   : > { %1485 = vst [vmem:[#allocation1] ss:$2 sm:$0xff] %v6641_v23 }
 0x120   : > { %v7005_v21 = vpop.f32.mrf.mxu2  ;;  %v7007_v46 = vpop.f32.mrf.mxu3 }
 0x121   : > { %10271 = vst [vmem:[#allocation20_spill] sm:$0xff] %v7005_v21  ;;  %v7009_v38 = vpop.f32.mrf.mxu0  ;;  %v7011_v39 = vpop.f32.mrf.mxu1 }
 0x122   : > { %10272 = vst [vmem:[#allocation21_spill] sm:$0xff] %v7007_v46 }
 0x123   : > { %10273 = vst [vmem:[#allocation22_spill] sm:$0xff] %v7009_v38 }
 0x124   : > { %10274 = vst [vmem:[#allocation23_spill] sm:$0xff] %v7011_v39 }
 0x128   : > { %v7016_v9 = vpop.f32.mrf.mxu2  ;;  %v7018_v36 = vpop.f32.mrf.mxu3 }
 0x129   : > { %10275 = vst [vmem:[#allocation24_spill] sm:$0xff] %v7016_v9  ;;  %v7020_v34 = vpop.f32.mrf.mxu0  ;;  %v7022_v35 = vpop.f32.mrf.mxu1  ;;  %v7067_v9 = vld [vmem:[%s6576_s6 + $0x78] sm:$0xff] }
 0x12a   : > { %10276 = vst [vmem:[#allocation25_spill] sm:$0xff] %v7018_v36  ;;  %v7060_v36 = vld.sshfl [vmem:[#allocation1 + $0x8] sm:$0xff pattern:$0x75316420] }
 0x12b   : > { %10277 = vst [vmem:[#allocation26_spill] sm:$0xff] %v7020_v34  ;;  %5778 = vmatmul.msk.bf16.vlgmr.msrb.gmra.mxu0 %vm465_vm1, %v6824_v61  ;;  %5779 = vmatmul.msk.bf16.vlgmr.msrb.gmra.mxu1 %vm465_vm1, %v6824_v61  ;;  %v1542_v34 = vpack.c.bf16 %v1480_v29, %v1480_v29 }
 0x12c   : > { %10278 = vst [vmem:[#allocation27_spill] sm:$0xff] %v7022_v35  ;;  %1717 = vmatpush.bf16.msrb.mxu0 %v1583_v27  ;;  %1731 = vmatpush.bf16.msrb.mxu1 %v1586_v40  ;;  %v1539_v40 = vpack.c.bf16 %v1477_v56, %v1477_v56  ;;  %v7056_v35 = vld.sshfl [vmem:[#allocation1 + $0x18] sm:$0xff pattern:$0x75316420] }
 0x12d   : > { %5780 = vmatmul.msk.bf16.vlgmr.msrb.gmra.mxu2 %vm465_vm1, %v6824_v61  ;;  %5781 = vmatmul.msk.bf16.vlgmr.msrb.gmra.mxu3 %vm465_vm1, %v6824_v61  ;;  %v7052_v61 = vld [vmem:[%s10243_s1 + $0x10] sm:$0xff] }
 0x12e   : > { %1745 = vmatpush.bf16.msrb.mxu2 %v1589_v18  ;;  %1759 = vmatpush.bf16.msrb.mxu3 %v1592_v19  ;;  %v1540_v18 = vpack.c.bf16 %v1478_v30, %v1478_v30  ;;  %v7054_v19 = vld.sshfl [vmem:[#allocation1 + $0x10] sm:$0xff pattern:$0x75316420] }
 0x12f   : > { %1498 = vst [vmem:[#allocation1 + $0x10] ss:$2 sm:$0xff] %v7067_v9 }
 0x130   : > { %v7040_v41 = vpop.f32.mrf.mxu2  ;;  %v7042_v31 = vpop.f32.mrf.mxu3  ;;  %v1598_v29 = vsel %vm469_vm0, %v1540_v18, 0 }
 0x131   : > { %10279 = vst [vmem:[#allocation28_spill] sm:$0xff] %v7040_v41  ;;  %v7045_v32 = vpop.f32.mrf.mxu0  ;;  %v7047_v27 = vpop.f32.mrf.mxu1  ;;  %v1541_v41 = vpack.c.bf16 %v1479_v26, %v1479_v26  ;;  %v1595_v26 = vsel %vm469_vm0, %v1539_v40, 0  ;;  %v7088_v40 = vld [vmem:[%s6576_s6 + $0x40] sm:$0xff] }
 0x132   : > { %10280 = vst [vmem:[#allocation29_spill] sm:$0xff] %v7042_v31  ;;  %v7058_v31 = vld.sshfl [vmem:[#allocation1] sm:$0xff pattern:$0x75316420] }
 0x133   : > { %10281 = vst [vmem:[#allocation30_spill] sm:$0xff] %v7045_v32 }
 0x134   : > { %10282 = vst [vmem:[#allocation31_spill] sm:$0xff] %v7047_v27 }
 0x135   : > { %1497 = vst [vmem:[#allocation1] ss:$2 sm:$0xff] %v6760_v1 }
 0x136   : > { %1475 = vst [vmem:[#allocation1 + $0x20] ss:$2 sm:$0xff] %v7088_v40 }
 0x138   : > { %v7062_v32 = vpop.f32.mrf.mxu2  ;;  %v7064_v27 = vpop.f32.mrf.mxu3 }
 0x139   : > { %10283 = vst [vmem:[#allocation32_spill] sm:$0xff] %v7062_v32  ;;  %v7070_v56 = vpop.f32.mrf.mxu0  ;;  %v7072_v30 = vpop.f32.mrf.mxu1  ;;  %v1604_v32 = vsel %vm469_vm0, %v1542_v34, 0 }
 0x13a   : > { %10284 = vst [vmem:[#allocation33_spill] sm:$0xff] %v7064_v27  ;;  %v1601_v27 = vsel %vm469_vm0, %v1541_v41, 0  ;;  %v7095_v41 = vld.sshfl [vmem:[#allocation1 + $0x10] sm:$0xff pattern:$0x75316420] }
 0x13b   : > { %10285 = vst [vmem:[#allocation34_spill] sm:$0xff] %v7070_v56  ;;  %5788 = vmatmul.msk.bf16.vlgmr.msra.gmra.mxu0 %vm465_vm1, %v7052_v61  ;;  %5789 = vmatmul.msk.bf16.vlgmr.msra.gmra.mxu1 %vm465_vm1, %v7052_v61  ;;  %v7103_v56 = vld.sshfl [vmem:[#allocation1 + $0x18] sm:$0xff pattern:$0x75316420] }
 0x13c   : > { %10286 = vst [vmem:[#allocation35_spill] sm:$0xff] %v7072_v30  ;;  %1773 = vmatpush.bf16.msra.mxu0 %v1595_v26  ;;  %1787 = vmatpush.bf16.msra.mxu1 %v1598_v29  ;;  %v7097_v34 = vld.sshfl [vmem:[#allocation1] sm:$0xff pattern:$0x75316420] }
 0x13d   : > { %5790 = vmatmul.msk.bf16.vlgmr.msra.gmra.mxu2 %vm465_vm1, %v7052_v61  ;;  %5791 = vmatmul.msk.bf16.vlgmr.msra.gmra.mxu3 %vm465_vm1, %v7052_v61  ;;  %2702 = vst [vmem:[#allocation1 + $0x10] ss:$2 sm:$0xff] %v6588_v3  ;;  %v1482_v38 = vld.sshfl [vmem:[#allocation1 + $0x28] sm:$0xff pattern:$0x75316420] }
 0x13e   : > { %1801 = vmatpush.bf16.msra.mxu2 %v1601_v27  ;;  %1815 = vmatpush.bf16.msra.mxu3 %v1604_v32  ;;  %v7105_v27 = vld.sshfl [vmem:[#allocation1 + $0x8] sm:$0xff pattern:$0x75316420]  ;;  %v1483_v32 = vld.sshfl [vmem:[#allocation1 + $0x30] sm:$0xff pattern:$0x75316420]  ;;  %v1544_v13 = vpack.c.bf16 %v1482_v38, %v1482_v38 }
 0x13f   : > { %2700 = vst [vmem:[#allocation1] ss:$2 sm:$0xff] %v6585_v2  ;;  %v1545_v39 = vpack.c.bf16 %v1483_v32, %v1483_v32 }
 0x140   : > { %v7091_v18 = vpop.f32.mrf.mxu2  ;;  %v7093_v30 = vpop.f32.mrf.mxu3  ;;  %v1610_v2 = vsel %vm469_vm0, %v1544_v13, 0 }
 0x141   : > { %10287 = vst [vmem:[#allocation36_spill] sm:$0xff] %v7091_v18  ;;  %v7099_v26 = vpop.f32.mrf.mxu0  ;;  %v7101_v29 = vpop.f32.mrf.mxu1  ;;  %v1484_v18 = vld.sshfl [vmem:[#allocation1 + $0x38] sm:$0xff pattern:$0x75316420]  ;;  %v1613_v57 = vsel %vm469_vm0, %v1545_v39, 0 }
 0x142   : > { %10288 = vst [vmem:[#allocation37_spill] sm:$0xff] %v7093_v30  ;;  %v1481_v30 = vld.sshfl [vmem:[#allocation1 + $0x20] sm:$0xff pattern:$0x75316420]  ;;  %v1546_v46 = vpack.c.bf16 %v1484_v18, %v1484_v18 }
 0x143   : > { %10289 = vst [vmem:[#allocation38_spill] sm:$0xff] %v7099_v26  ;;  %v1543_v21 = vpack.c.bf16 %v1481_v30, %v1481_v30 }
 0x144   : > { %10290 = vst [vmem:[#allocation39_spill] sm:$0xff] %v7101_v29  ;;  %v7120_v32 = vld.sshfl [vmem:[#allocation1 + $0x10] sm:$0xff pattern:$0x75316420]  ;;  %v1616_v38 = vsel %vm469_vm0, %v1546_v46, 0 }
 0x145   : > { %v1607_v3 = vsel %vm469_vm0, %v1543_v21, 0  ;;  %10293 = vst [vmem:[#allocation42_spill] sm:$0xff] %v7120_v32  ;;  %v7122_v51 = vld.sshfl [vmem:[#allocation1 + $0x18] sm:$0xff pattern:$0x75316420] }
 0x146   : > { %10294 = vst [vmem:[#allocation43_spill] sm:$0xff] %v7122_v51  ;;  %v7124_v30 = vld.sshfl [vmem:[#allocation1] sm:$0xff pattern:$0x75316420] }
 0x147   : > { %10295 = vst [vmem:[#allocation44_spill] sm:$0xff] %v7124_v30  ;;  %v7132_v39 = vld.sshfl [vmem:[#allocation1 + $0x8] sm:$0xff pattern:$0x75316420] }
 0x148   : > { %v7109_v59 = vpop.f32.mrf.mxu2  ;;  %v7111_v26 = vpop.f32.mrf.mxu3  ;;  %2716 = vst [vmem:[#allocation1 + $0x10] ss:$2 sm:$0xff] %v6608_v10 }
 0x149   : > { %10291 = vst [vmem:[#allocation40_spill] sm:$0xff] %v7109_v59  ;;  %v7113_v29 = vpop.f32.mrf.mxu0  ;;  %v7115_v58 = vpop.f32.mrf.mxu1  ;;  %v7165_v59 = vld [vmem:[%s6576_s6 + $0x60] sm:$0xff] }
 0x14a   : > { %10292 = vst [vmem:[#allocation41_spill] sm:$0xff] %v7111_v26  ;;  %v7162_v26 = vld [vmem:[%s6576_s6 + $0x68] sm:$0xff] }
 0x14b   : > { %5792 = vmatmul.msk.bf16.vlgmr.msrb.gmra.mxu0 %vm465_vm1, %v7052_v61  ;;  %5793 = vmatmul.msk.bf16.vlgmr.msrb.gmra.mxu1 %vm465_vm1, %v7052_v61  ;;  %10296 = vst [vmem:[#allocation45_spill] sm:$0xff] %v7132_v39 }
 0x14c   : > { %1829 = vmatpush.bf16.msrb.mxu0 %v1607_v3  ;;  %1843 = vmatpush.bf16.msrb.mxu1 %v1610_v2  ;;  %2715 = vst [vmem:[#allocation1] ss:$2 sm:$0xff] %v6614_v12 }
 0x14d   : > { %5794 = vmatmul.msk.bf16.vlgmr.msrb.gmra.mxu2 %vm465_vm1, %v7052_v61  ;;  %5795 = vmatmul.msk.bf16.vlgmr.msrb.gmra.mxu3 %vm465_vm1, %v7052_v61  ;;  %1488 = vst [vmem:[#allocation1 + $0x30] ss:$2 sm:$0xff] %v7162_v26 }
 0x14e   : > { %1857 = vmatpush.bf16.msrb.mxu2 %v1613_v57  ;;  %1871 = vmatpush.bf16.msrb.mxu3 %v1616_v38  ;;  %v1547_v57 = vpack.c.bf16 %v7058_v31, %v7058_v31  ;;  %v1548_v38 = vpack.c.bf16 %v7060_v36, %v7060_v36  ;;  %1487 = vst [vmem:[#allocation1 + $0x20] ss:$2 sm:$0xff] %v7165_v59 }
 0x14f   : > { %v7147_v18 = vld.sshfl [vmem:[#allocation1 + $0x10] sm:$0xff pattern:$0x75316420]  ;;  %v7149_v12 = vld.sshfl [vmem:[#allocation1 + $0x18] sm:$0xff pattern:$0x75316420] }
 0x150   : > { %v7139_v13 = vpop.f32.mrf.mxu2  ;;  %v7141_v21 = vpop.f32.mrf.mxu3  ;;  %10297 = vst [vmem:[#allocation46_spill] sm:$0xff] %v7147_v18 }
 0x151   : > { %v7143_v10 = vpop.f32.mrf.mxu0  ;;  %v7145_v46 = vpop.f32.mrf.mxu1  ;;  %10298 = vst [vmem:[#allocation47_spill] sm:$0xff] %v7149_v12  ;;  %v1549_v12 = vpack.c.bf16 %v7054_v19, %v7054_v19 }
 0x152   : > { %2728 = vst [vmem:[#allocation1 + $0x10] ss:$2 sm:$0xff] %v6633_v20  ;;  %v1550_v20 = vpack.c.bf16 %v7056_v35, %v7056_v35 }
 0x153   : > { %v7152_v3 = vld.sshfl [vmem:[#allocation1] sm:$0xff pattern:$0x75316420]  ;;  %v7154_v2 = vld.sshfl [vmem:[#allocation1 + $0x8] sm:$0xff pattern:$0x75316420] }
 0x154   : > { %10299 = vst [vmem:[#allocation48_spill] sm:$0xff] %v7152_v3  ;;  %v1622_v3 = vsel %vm469_vm0, %v1548_v38, 0  ;;  %v1625_v35 = vsel %vm469_vm0, %v1549_v12, 0  ;;  %v1628_v30 = vsel %vm469_vm0, %v1550_v20, 0 }
 0x155   : > { %10300 = vst [vmem:[#allocation49_spill] sm:$0xff] %v7154_v2  ;;  %v1619_v2 = vsel %vm469_vm0, %v1547_v57, 0  ;;  %v1495_v12 = vld.sshfl [vmem:[#allocation1 + $0x30] sm:$0xff pattern:$0x75316420] }
 0x156   : > { %2727 = vst [vmem:[#allocation1] ss:$2 sm:$0xff] %v6641_v23  ;;  %v1553_v49 = vpack.c.bf16 %v1495_v12, %v1495_v12 }
 0x158   : > { %v7172_v18 = vpop.f32.mrf.mxu2  ;;  %v7174_v31 = vpop.f32.mrf.mxu3 }
 0x159   : > { %v7177_v36 = vpop.f32.mrf.mxu0  ;;  %v7179_v23 = vpop.f32.mrf.mxu1  ;;  %v7183_v19 = vld.sshfl [vmem:[#allocation1 + $0x10] sm:$0xff pattern:$0x75316420]  ;;  %v7185_v39 = vld.sshfl [vmem:[#allocation1 + $0x18] sm:$0xff pattern:$0x75316420] }
 0x15a   : > { %10301 = vst [vmem:[#allocation50_spill] sm:$0xff] %v7183_v19  ;;  %v7209_v19 = vld [vmem:[%s6576_s6 + $0x88] sm:$0xff] }
 0x15b   : > { %10302 = vst [vmem:[#allocation51_spill] sm:$0xff] %v7185_v39  ;;  %5796 = vmatmul.msk.bf16.vlgmr.msra.gmra.mxu0 %vm465_vm1, %v7052_v61  ;;  %5797 = vmatmul.msk.bf16.vlgmr.msra.gmra.mxu1 %vm465_vm1, %v7052_v61  ;;  %v1494_v39 = vld.sshfl [vmem:[#allocation1 + $0x28] sm:$0xff pattern:$0x75316420] }
 0x15c   : > { %2740 = vst [vmem:[#allocation1 + $0x10] ss:$2 sm:$0xff] %v7067_v9  ;;  %1885 = vmatpush.bf16.msra.mxu0 %v1619_v2  ;;  %1899 = vmatpush.bf16.msra.mxu1 %v1622_v3  ;;  %v1496_v9 = vld.sshfl [vmem:[#allocation1 + $0x38] sm:$0xff pattern:$0x75316420]  ;;  %v1552_v24 = vpack.c.bf16 %v1494_v39, %v1494_v39  ;;  %v7250_v39 = vld [vmem:[%s6576_s6 + $0xa0] sm:$0xff] }
 0x15d   : > { %v7194_v57 = vld.sshfl [vmem:[#allocation1] sm:$0xff pattern:$0x75316420]  ;;  %v7196_v38 = vld.sshfl [vmem:[#allocation1 + $0x8] sm:$0xff pattern:$0x75316420]  ;;  %5798 = vmatmul.msk.bf16.vlgmr.msra.gmra.mxu2 %vm465_vm1, %v7052_v61  ;;  %5799 = vmatmul.msk.bf16.vlgmr.msra.gmra.mxu3 %vm465_vm1, %v7052_v61 }
 0x15e   : > { %10303 = vst [vmem:[#allocation52_spill] sm:$0xff] %v7194_v57  ;;  %1913 = vmatpush.bf16.msra.mxu2 %v1625_v35  ;;  %1927 = vmatpush.bf16.msra.mxu3 %v1628_v30  ;;  %v1493_v3 = vld.sshfl [vmem:[#allocation1 + $0x20] sm:$0xff pattern:$0x75316420]  ;;  %v1634_v12 = vsel %vm469_vm0, %v1552_v24, 0 }
 0x15f   : > { %10304 = vst [vmem:[#allocation53_spill] sm:$0xff] %v7196_v38 }
 0x160   : > { %2739 = vst [vmem:[#allocation1] ss:$2 sm:$0xff] %v6760_v1  ;;  %v7204_v2 = vpop.f32.mrf.mxu2  ;;  %v7206_v20 = vpop.f32.mrf.mxu3  ;;  %v5844_v1 = vld [vmem:[%s6576_s6 + $0x80] sm:$0xff] }
 0x161   : > { %2706 = vst [vmem:[#allocation1 + $0x30] ss:$2 sm:$0xff] %v6596_v5  ;;  %v7211_v38 = vpop.f32.mrf.mxu0  ;;  %v7213_v57 = vpop.f32.mrf.mxu1 }
 0x162   : > { %2704 = vst [vmem:[#allocation1 + $0x20] ss:$2 sm:$0xff] %v6593_v4  ;;  %v1554_v4 = vpack.c.bf16 %v1496_v9, %v1496_v9 }
 0x163   : > { %v7217_v30 = vld.sshfl [vmem:[#allocation1 + $0x10] sm:$0xff pattern:$0x75316420]  ;;  %v7219_v35 = vld.sshfl [vmem:[#allocation1 + $0x18] sm:$0xff pattern:$0x75316420] }
 0x164   : > { %10305 = vst [vmem:[#allocation54_spill] sm:$0xff] %v7217_v30  ;;  %v1551_v30 = vpack.c.bf16 %v1493_v3, %v1493_v3  ;;  %v1640_v24 = vsel %vm469_vm0, %v1554_v4, 0  ;;  %v7278_v4 = vld [vmem:[%s6576_s6 + $0xc8] sm:$0xff] }
 0x165   : > { %10306 = vst [vmem:[#allocation55_spill] sm:$0xff] %v7219_v35 }
 0x166   : > { %2946 = vst [vmem:[#allocation1 + $0x10] ss:$2 sm:$0xff] %v7209_v19 }
 0x167   : > { %v7222_v5 = vld.sshfl [vmem:[#allocation1] sm:$0xff pattern:$0x75316420]  ;;  %v7224_v51 = vld.sshfl [vmem:[#allocation1 + $0x8] sm:$0xff pattern:$0x75316420] }
 0x168   : > { %10307 = vst [vmem:[#allocation56_spill] sm:$0xff] %v7222_v5  ;;  %v7226_v32 = vld.sshfl [vmem:[#allocation1 + $0x30] sm:$0xff pattern:$0x75316420]  ;;  %v7231_v35 = vpop.f32.mrf.mxu2  ;;  %v7233_v45 = vpop.f32.mrf.mxu3 }
 0x169   : > { %10308 = vst [vmem:[#allocation57_spill] sm:$0xff] %v7224_v51  ;;  %v7228_v50 = vld.sshfl [vmem:[#allocation1 + $0x38] sm:$0xff pattern:$0x75316420] }
 0x16a   : > { %2944 = vst [vmem:[#allocation1] ss:$2 sm:$0xff] %v5844_v1  ;;  %v7235_v5 = vld.sshfl [vmem:[#allocation1 + $0x20] sm:$0xff pattern:$0x75316420]  ;;  %v7239_v1 = vpop.f32.mrf.mxu0 }
 0x16b   : > { %10309 = vst [vmem:[#allocation58_spill] sm:$0xff] %v7226_v32  ;;  %v7237_v51 = vld.sshfl [vmem:[#allocation1 + $0x28] sm:$0xff pattern:$0x75316420]  ;;  %v7241_v32 = vpop.f32.mrf.mxu1  ;;  %5800 = vmatmul.msk.bf16.vlgmr.msrb.gmra.mxu0 %vm465_vm1, %v7052_v61  ;;  %5801 = vmatmul.msk.bf16.vlgmr.msrb.gmra.mxu1 %vm465_vm1, %v7052_v61 }
 0x16c   : > { %10310 = vst [vmem:[#allocation59_spill] sm:$0xff] %v7228_v50  ;;  %v1631_v50 = vsel %vm469_vm0, %v1551_v30, 0  ;;  %v1637_v30 = vsel %vm469_vm0, %v1553_v49, 0  ;;  %1955 = vmatpush.bf16.msrb.mxu1 %v1634_v12 }
 0x16d   : > { %2718 = vst [vmem:[#allocation1 + $0x30] ss:$2 sm:$0xff] %v6626_v17  ;;  %v7247_v17 = vld [vmem:[%s6576_s6 + $0xa8] sm:$0xff]  ;;  %v7254_v3 = vld.sshfl [vmem:[#allocation1 + $0x18] sm:$0xff pattern:$0x75316420]  ;;  %1941 = vmatpush.bf16.msrb.mxu0 %v1631_v50  ;;  %5802 = vmatmul.msk.bf16.vlgmr.msrb.gmra.mxu2 %vm465_vm1, %v7052_v61 }
 0x16e   : > { %10311 = vst [vmem:[#allocation60_spill] sm:$0xff] %v7235_v5  ;;  %v7252_v9 = vld.sshfl [vmem:[#allocation1 + $0x10] sm:$0xff pattern:$0x75316420]  ;;  %5803 = vmatmul.msk.bf16.vlgmr.msrb.gmra.mxu3 %vm465_vm1, %v7052_v61  ;;  %1969 = vmatpush.bf16.msrb.mxu2 %v1637_v30 }
 0x16f   : > { %10312 = vst [vmem:[#allocation61_spill] sm:$0xff] %v7237_v51  ;;  %1983 = vmatpush.bf16.msrb.mxu3 %v1640_v24  ;;  %v5846_v51 = vld [vmem:[%s6576_s6 + $0x90] sm:$0xff] }
 0x170   : > { %2717 = vst [vmem:[#allocation1 + $0x20] ss:$2 sm:$0xff] %v7088_v40  ;;  %v7280_v12 = vpop.f32.mrf.mxu2 }
 0x171   : > { %10313 = vst [vmem:[#allocation62_spill] sm:$0xff] %v7252_v9  ;;  %v7263_v40 = vld.sshfl [vmem:[#allocation1] sm:$0xff pattern:$0x75316420] }
 0x172   : > { %10314 = vst [vmem:[#allocation63_spill] sm:$0xff] %v7254_v3  ;;  %v7265_v9 = vld.sshfl [vmem:[#allocation1 + $0x8] sm:$0xff pattern:$0x75316420]  ;;  %v7288_v30 = vpop.f32.mrf.mxu0 }
 0x173   : > { %2960 = vst [vmem:[#allocation1 + $0x10] ss:$2 sm:$0xff] %v7247_v17  ;;  %v7290_v24 = vpop.f32.mrf.mxu1 }
 0x174   : > { %10315 = vst [vmem:[#allocation64_spill] sm:$0xff] %v7263_v40  ;;  %v7272_v49 = vld.sshfl [vmem:[#allocation1 + $0x30] sm:$0xff pattern:$0x75316420] }
 0x175   : > { %10316 = vst [vmem:[#allocation65_spill] sm:$0xff] %v7265_v9  ;;  %v7274_v50 = vld.sshfl [vmem:[#allocation1 + $0x38] sm:$0xff pattern:$0x75316420]  ;;  %v7282_v9 = vpop.f32.mrf.mxu3 }
 0x176   : > { %2959 = vst [vmem:[#allocation1] ss:$2 sm:$0xff] %v7250_v39 }
 0x177   : > { %10317 = vst [vmem:[#allocation66_spill] sm:$0xff] %v7272_v49  ;;  %v7284_v40 = vld.sshfl [vmem:[#allocation1 + $0x20] sm:$0xff pattern:$0x75316420] }
 0x178   : > { %10318 = vst [vmem:[#allocation67_spill] sm:$0xff] %v7274_v50  ;;  %v7286_v3 = vld.sshfl [vmem:[#allocation1 + $0x28] sm:$0xff pattern:$0x75316420]  ;;  %v7299_v49 = vld [vmem:[%s6576_s6 + $0x98] sm:$0xff] }
 0x179   : > { %2730 = vst [vmem:[#allocation1 + $0x30] ss:$2 sm:$0xff] %v7162_v26 }
 0x17a   : > { %10319 = vst [vmem:[#allocation68_spill] sm:$0xff] %v7284_v40  ;;  %v7293_v50 = vld.sshfl [vmem:[#allocation1 + $0x10] sm:$0xff pattern:$0x75316420]  ;;  %v1555_v40 = vpack.c.bf16 %v7097_v34, %v7097_v34  ;;  %v7330_v22 = vpop.f32.mrf.mxu0 }
 0x17b   : > { %10320 = vst [vmem:[#allocation69_spill] sm:$0xff] %v7286_v3  ;;  %v7295_v26 = vld.sshfl [vmem:[#allocation1 + $0x18] sm:$0xff pattern:$0x75316420]  ;;  %v1556_v3 = vpack.c.bf16 %v7105_v27, %v7105_v27  ;;  %v7322_v27 = vpop.f32.mrf.mxu2  ;;  %5804 = vmatmul.msk.bf16.vlgmr.msra.gmra.mxu0 %vm465_vm1, %v7052_v61  ;;  %5805 = vmatmul.msk.bf16.vlgmr.msra.gmra.mxu1 %vm465_vm1, %v7052_v61 }
 0x17c   : > { %10321 = vst [vmem:[#allocation70_spill] sm:$0xff] %v7290_v24  ;;  %v7332_v24 = vpop.f32.mrf.mxu1 }
 0x17d   : > { %2729 = vst [vmem:[#allocation1 + $0x20] ss:$2 sm:$0xff] %v7165_v59  ;;  %v7306_v5 = vld.sshfl [vmem:[#allocation1] sm:$0xff pattern:$0x75316420]  ;;  %5806 = vmatmul.msk.bf16.vlgmr.msra.gmra.mxu2 %vm465_vm1, %v7052_v61 }
 0x17e   : > { %10322 = vst [vmem:[#allocation71_spill] sm:$0xff] %v7293_v50  ;;  %v1558_v50 = vpack.c.bf16 %v7103_v56, %v7103_v56  ;;  %v7320_v34 = vld.sshfl [vmem:[#allocation1 + $0x8] sm:$0xff pattern:$0x75316420]  ;;  %v1643_v56 = vsel %vm469_vm0, %v1555_v40, 0  ;;  %v7349_v40 = vld [vmem:[%s6576_s6 + $0xb8] sm:$0xff]  ;;  %5807 = vmatmul.msk.bf16.vlgmr.msra.gmra.mxu3 %vm465_vm1, %v7052_v61 }
 0x17f   : > { %10323 = vst [vmem:[#allocation72_spill] sm:$0xff] %v7295_v26  ;;  %v1557_v26 = vpack.c.bf16 %v7095_v41, %v7095_v41  ;;  %v1646_v41 = vsel %vm469_vm0, %v1556_v3, 0  ;;  %1997 = vmatpush.bf16.msra.mxu0 %v1643_v56  ;;  %v5850_v3 = vld [vmem:[%s6576_s6 + $0xb0] sm:$0xff] }
 0x180   : > { %2972 = vst [vmem:[#allocation1 + $0x10] ss:$2 sm:$0xff] %v7278_v4  ;;  %v7308_v42 = vld.sshfl [vmem:[#allocation1 + $0x30] sm:$0xff pattern:$0x75316420]  ;;  %2011 = vmatpush.bf16.msra.mxu1 %v1646_v41 }
 0x181   : > { %10324 = vst [vmem:[#allocation73_spill] sm:$0xff] %v7306_v5  ;;  %v7310_v59 = vld.sshfl [vmem:[#allocation1 + $0x38] sm:$0xff pattern:$0x75316420]  ;;  %v7324_v5 = vpop.f32.mrf.mxu3 }
 0x182   : > { %10325 = vst [vmem:[#allocation74_spill] sm:$0xff] %v7308_v42 }
 0x183   : > { %10326 = vst [vmem:[#allocation75_spill] sm:$0xff] %v7310_v59 }
 0x184   : > { %2950 = vst [vmem:[#allocation1 + $0x30] ss:$2 sm:$0xff] %v7299_v49  ;;  %v7326_v42 = vld.sshfl [vmem:[#allocation1 + $0x20] sm:$0xff pattern:$0x75316420] }
 0x185   : > { %10327 = vst [vmem:[#allocation76_spill] sm:$0xff] %v7320_v34  ;;  %v7328_v59 = vld.sshfl [vmem:[#allocation1 + $0x28] sm:$0xff pattern:$0x75316420]  ;;  %v5857_v34 = vld [vmem:[%s6576_s6 + $0xe8] sm:$0xff] }
 0x186   : > { %10328 = vst [vmem:[#allocation77_spill] sm:$0xff] %v7322_v27 }
 0x187   : > { %10329 = vst [vmem:[#allocation78_spill] sm:$0xff] %v7324_v5  ;;  %v7338_v27 = vld.sshfl [vmem:[#allocation1 + $0x10] sm:$0xff pattern:$0x75316420] }
 0x188   : > { %10330 = vst [vmem:[#allocation79_spill] sm:$0xff] %v7326_v42  ;;  %v1652_v42 = vsel %vm469_vm0, %v1558_v50, 0  ;;  %v7361_v50 = vpop.f32.mrf.mxu2 }
 0x189   : > { %10331 = vst [vmem:[#allocation80_spill] sm:$0xff] %v7328_v59  ;;  %v1649_v59 = vsel %vm469_vm0, %v1557_v26, 0  ;;  %2039 = vmatpush.bf16.msra.mxu3 %v1652_v42 }
 0x18a   : > { %10332 = vst [vmem:[#allocation81_spill] sm:$0xff] %v7330_v22  ;;  %2025 = vmatpush.bf16.msra.mxu2 %v1649_v59  ;;  %v7371_v22 = vpop.f32.mrf.mxu1 }
 0x18b   : > { %10333 = vst [vmem:[#allocation82_spill] sm:$0xff] %v7332_v24  ;;  %v7346_v24 = vld.sshfl [vmem:[#allocation1 + $0x18] sm:$0xff pattern:$0x75316420]  ;;  %5808 = vmatmul.msk.bf16.vlgmr.msrb.gmra.mxu0 %vm465_vm1, %v7052_v61  ;;  %5809 = vmatmul.msk.bf16.vlgmr.msrb.gmra.mxu1 %vm465_vm1, %v7052_v61 }
 0x18c   : > { %2948 = vst [vmem:[#allocation1 + $0x20] ss:$2 sm:$0xff] %v5846_v51  ;;  %v7358_v26 = vld.sshfl [vmem:[#allocation1 + $0x38] sm:$0xff pattern:$0x75316420] }
 0x18d   : > { %2971 = vst [vmem:[#allocation1] ss:$2 sm:$0xff] %v7318_v16  ;;  %5810 = vmatmul.msk.bf16.vlgmr.msrb.gmra.mxu2 %vm465_vm1, %v7052_v61 }
 0x18e   : > { %10334 = vst [vmem:[#allocation83_spill] sm:$0xff] %v7338_v27  ;;  %v7356_v27 = vld.sshfl [vmem:[#allocation1 + $0x30] sm:$0xff pattern:$0x75316420]  ;;  %5811 = vmatmul.msk.bf16.vlgmr.msrb.gmra.mxu3 %vm465_vm1, %v7052_v61 }
 0x18f   : > { %10335 = vst [vmem:[#allocation84_spill] sm:$0xff] %v7346_v24  ;;  %v7369_v24 = vpop.f32.mrf.mxu0 }
 0x190   : > { %2984 = vst [vmem:[#allocation1 + $0x10] ss:$2 sm:$0xff] %v5857_v34  ;;  %v7363_v34 = vpop.f32.mrf.mxu3 }
 0x191   : > { %10336 = vst [vmem:[#allocation85_spill] sm:$0xff] %v7356_v27 }
 0x192   : > { %10337 = vst [vmem:[#allocation86_spill] sm:$0xff] %v7358_v26  ;;  %v7374_v26 = vld [vmem:[%s6576_s6 + $0xe0] sm:$0xff] }
 0x193   : > { %2962 = vst [vmem:[#allocation1 + $0x30] ss:$2 sm:$0xff] %v7349_v40  ;;  %v7365_v56 = vld.sshfl [vmem:[#allocation1 + $0x20] sm:$0xff pattern:$0x75316420] }
 0x194   : > { %10338 = vst [vmem:[#allocation87_spill] sm:$0xff] %v7361_v50  ;;  %v7367_v41 = vld.sshfl [vmem:[#allocation1 + $0x28] sm:$0xff pattern:$0x75316420] }
 0x195   : > { %10339 = vst [vmem:[#allocation88_spill] sm:$0xff] %v7363_v34  ;;  %v7376_v59 = vld.sshfl [vmem:[#allocation1] sm:$0xff pattern:$0x75316420] }
 0x196   : > { %10340 = vst [vmem:[#allocation89_spill] sm:$0xff] %v7365_v56  ;;  %v7378_v42 = vld.sshfl [vmem:[#allocation1 + $0x8] sm:$0xff pattern:$0x75316420]  ;;  %v5855_v34 = vld [vmem:[%s6576_s6 + $0xd8] sm:$0xff]  ;;  %v7386_v56 = vld [vmem:[%s6576_s6 + $0xd0] sm:$0xff] }
 0x197   : > { %10341 = vst [vmem:[#allocation90_spill] sm:$0xff] %v7367_v41  ;;  %v7380_v27 = vld.sshfl [vmem:[#allocation1 + $0x10] sm:$0xff pattern:$0x75316420] }
 0x198   : > { %10342 = vst [vmem:[#allocation91_spill] sm:$0xff] %v7369_v24  ;;  %v7382_v50 = vld.sshfl [vmem:[#allocation1 + $0x18] sm:$0xff pattern:$0x75316420] }
 0x199   : > { %10343 = vst [vmem:[#allocation92_spill] sm:$0xff] %v7371_v22 }
 0x19a   : > { %2961 = vst [vmem:[#allocation1 + $0x20] ss:$2 sm:$0xff] %v5850_v3  ;;  %v7389_v41 = vld.sshfl [vmem:[#allocation1 + $0x30] sm:$0xff pattern:$0x75316420] }
 0x19b   : > { %10344 = vst [vmem:[#allocation93_spill] sm:$0xff] %v7376_v59  ;;  %v7391_v22 = vld.sshfl [vmem:[#allocation1 + $0x38] sm:$0xff pattern:$0x75316420]  ;;  %5812 = vmatmul.msk.bf16.vlgmr.msra.gmra.mxu0 %vm465_vm1, %v7052_v61  ;;  %5813 = vmatmul.msk.bf16.vlgmr.msra.gmra.mxu1 %vm465_vm1, %v7052_v61 }
 0x19c   : > { %10345 = vst [vmem:[#allocation94_spill] sm:$0xff] %v7378_v42  ;;  %v7397_v42 = vpop.f32.mrf.mxu2 }
 0x19d   : > { %10346 = vst [vmem:[#allocation95_spill] sm:$0xff] %v7380_v27  ;;  %v7399_v27 = vpop.f32.mrf.mxu3  ;;  %5814 = vmatmul.msk.bf16.vlgmr.msra.gmra.mxu2 %vm465_vm1, %v7052_v61 }
 0x19e   : > { %10347 = vst [vmem:[#allocation96_spill] sm:$0xff] %v7382_v50  ;;  %v7404_v50 = vpop.f32.mrf.mxu1  ;;  %5815 = vmatmul.msk.bf16.vlgmr.msra.gmra.mxu3 %vm465_vm1, %v7052_v61  ;;  %v7476_v61 = vld [vmem:[%s10243_s1 + $0x8] sm:$0xff] }
 0x19f   : > { %3075 = vst [vmem:[#allocation1 + $0x10] ss:$2 sm:$0xff] %v5846_v51  ;;  %v7402_v51 = vpop.f32.mrf.mxu0 }
 0x1a0   : > { %2983 = vst [vmem:[#allocation1] ss:$2 sm:$0xff] %v7374_v26 }
 0x1a1   : > { %10348 = vst [vmem:[#allocation97_spill] sm:$0xff] %v7389_v41  ;;  %v7393_v24 = vld.sshfl [vmem:[#allocation1 + $0x20] sm:$0xff pattern:$0x75316420] }
 0x1a2   : > { %10349 = vst [vmem:[#allocation98_spill] sm:$0xff] %v7391_v22  ;;  %v7395_v59 = vld.sshfl [vmem:[#allocation1 + $0x28] sm:$0xff pattern:$0x75316420] }
 0x1a3   : > { %2974 = vst [vmem:[#allocation1 + $0x30] ss:$2 sm:$0xff] %v5855_v34 }
 0x1a4   : > { %10350 = vst [vmem:[#allocation99_spill] sm:$0xff] %v7393_v24 }
 0x1a5   : > { %10351 = vst [vmem:[#allocation100_spill] sm:$0xff] %v7395_v59 }
 0x1a6   : > { %10352 = vst [vmem:[#allocation101_spill] sm:$0xff] %v7397_v42  ;;  %v3082_v34 = vld.sshfl [vmem:[#allocation1 + $0x10] sm:$0xff pattern:$0x75316420] }
 0x1a7   : > { %10353 = vst [vmem:[#allocation102_spill] sm:$0xff] %v7399_v27  ;;  %v3083_v24 = vld.sshfl [vmem:[#allocation1 + $0x18] sm:$0xff pattern:$0x75316420]  ;;  %v3148_v22 = vpack.c.bf16 %v3082_v34, %v3082_v34  ;;  %v7425_v34 = vpop.f32.mrf.mxu2 }
 0x1a8   : > { %2973 = vst [vmem:[#allocation1 + $0x20] ss:$2 sm:$0xff] %v7386_v56  ;;  %v3149_v59 = vpack.c.bf16 %v3083_v24, %v3083_v24  ;;  %v7410_v41 = vld.sshfl [vmem:[#allocation1] sm:$0xff pattern:$0x75316420] }
 0x1a9   : > { %10354 = vst [vmem:[#allocation103_spill] sm:$0xff] %v7402_v51  ;;  %v7412_v42 = vld.sshfl [vmem:[#allocation1 + $0x8] sm:$0xff pattern:$0x75316420] }
 0x1aa   : > { %10355 = vst [vmem:[#allocation104_spill] sm:$0xff] %v7404_v50  ;;  %v3191_v50 = vsel %vm469_vm0, %v3148_v22, 0  ;;  %v3194_v51 = vsel %vm469_vm0, %v3149_v59, 0  ;;  %v7421_v27 = vld.sshfl [vmem:[#allocation1 + $0x30] sm:$0xff pattern:$0x75316420]  ;;  %v7434_v22 = vpop.f32.mrf.mxu1 }
 0x1ab   : > { %10356 = vst [vmem:[#allocation105_spill] sm:$0xff] %v7410_v41  ;;  %3303 = vmatpush.bf16.msrb.mxu2 %v3191_v50  ;;  %3317 = vmatpush.bf16.msrb.mxu3 %v3194_v51  ;;  %v7423_v24 = vld.sshfl [vmem:[#allocation1 + $0x38] sm:$0xff pattern:$0x75316420] }
 0x1ac   : > { %10357 = vst [vmem:[#allocation106_spill] sm:$0xff] %v7412_v42  ;;  %v7427_v42 = vpop.f32.mrf.mxu3 }
 0x1ad   : > { %3073 = vst [vmem:[#allocation1] ss:$2 sm:$0xff] %v7209_v19  ;;  %v7432_v19 = vpop.f32.mrf.mxu0 }
 0x1ae   : > { %10358 = vst [vmem:[#allocation107_spill] sm:$0xff] %v7421_v27  ;;  %5880 = vmatmul.msk.bf16.vlgmr.msrb.gmra.mxu2 %vm465_vm1, %v7476_v61  ;;  %5881 = vmatmul.msk.bf16.vlgmr.msrb.gmra.mxu3 %vm465_vm1, %v7476_v61 }
 0x1af   : > { %10359 = vst [vmem:[#allocation108_spill] sm:$0xff] %v7423_v24  ;;  %v7430_v41 = vld.sshfl [vmem:[#allocation1 + $0x20] sm:$0xff pattern:$0x75316420] }
 0x1b0   : > { %3089 = vst [vmem:[#allocation1 + $0x10] ss:$2 sm:$0xff] %v5850_v3  ;;  %v7436_v59 = vld.sshfl [vmem:[#allocation1 + $0x28] sm:$0xff pattern:$0x75316420] }
 0x1b1   : > { %10360 = vst [vmem:[#allocation109_spill] sm:$0xff] %v7425_v34 }
 0x1b2   : > { %10361 = vst [vmem:[#allocation110_spill] sm:$0xff] %v7427_v42  ;;  %v7448_v34 = vpop.f32.mrf.mxu1 }
 0x1b3   : > { %3079 = vst [vmem:[#allocation1 + $0x30] ss:$2 sm:$0xff] %v7250_v39 }
 0x1b4   : > { %10362 = vst [vmem:[#allocation111_spill] sm:$0xff] %v7430_v41  ;;  %v3080_v50 = vld.sshfl [vmem:[#allocation1] sm:$0xff pattern:$0x75316420]  ;;  %v7442_v41 = vpop.f32.mrf.mxu2 }
 0x1b5   : > { %10363 = vst [vmem:[#allocation112_spill] sm:$0xff] %v7432_v19  ;;  %v3081_v51 = vld.sshfl [vmem:[#allocation1 + $0x8] sm:$0xff pattern:$0x75316420]  ;;  %v3146_v24 = vpack.c.bf16 %v3080_v50, %v3080_v50  ;;  %v7444_v19 = vpop.f32.mrf.mxu3 }
 0x1b6   : > { %10364 = vst [vmem:[#allocation113_spill] sm:$0xff] %v7434_v22  ;;  %v3147_v3 = vpack.c.bf16 %v3081_v51, %v3081_v51 }
 0x1b7   : > { %10365 = vst [vmem:[#allocation114_spill] sm:$0xff] %v7436_v59  ;;  %v3185_v27 = vsel %vm469_vm0, %v3146_v24, 0 }
 0x1b8   : > { %3077 = vst [vmem:[#allocation1 + $0x20] ss:$2 sm:$0xff] %v7299_v49  ;;  %v3188_v39 = vsel %vm469_vm0, %v3147_v3, 0  ;;  %3275 = vmatpush.bf16.msrb.mxu0 %v3185_v27  ;;  %v7446_v49 = vpop.f32.mrf.mxu0  ;;  %v3094_v3 = vld.sshfl [vmem:[#allocation1 + $0x10] sm:$0xff pattern:$0x75316420] }
 0x1b9   : > { %3088 = vst [vmem:[#allocation1] ss:$2 sm:$0xff] %v7247_v17  ;;  %3289 = vmatpush.bf16.msrb.mxu1 %v3188_v39  ;;  %v3095_v39 = vld.sshfl [vmem:[#allocation1 + $0x18] sm:$0xff pattern:$0x75316420] }
 0x1ba   : > { %v3086_v42 = vld.sshfl [vmem:[#allocation1 + $0x30] sm:$0xff pattern:$0x75316420]  ;;  %v3087_v22 = vld.sshfl [vmem:[#allocation1 + $0x38] sm:$0xff pattern:$0x75316420] }
 0x1bb   : > { %v3152_v59 = vpack.c.bf16 %v3086_v42, %v3086_v42  ;;  %v3153_v50 = vpack.c.bf16 %v3087_v22, %v3087_v22  ;;  %3091 = vst [vmem:[#allocation1 + $0x30] ss:$2 sm:$0xff] %v7318_v16  ;;  %5878 = vmatmul.msk.bf16.vlgmr.msrb.gmra.mxu0 %vm465_vm1, %v7476_v61 }
 0x1bc   : > { %3101 = vst [vmem:[#allocation1 + $0x10] ss:$2 sm:$0xff] %v7386_v56  ;;  %5879 = vmatmul.msk.bf16.vlgmr.msrb.gmra.mxu1 %vm465_vm1, %v7476_v61 }
 0x1bd   : > { %v3203_v27 = vsel %vm469_vm0, %v3152_v59, 0  ;;  %v3206_v42 = vsel %vm469_vm0, %v3153_v50, 0  ;;  %v7465_v59 = vpop.f32.mrf.mxu2  ;;  %v7471_v50 = vpop.f32.mrf.mxu1 }
 0x1be   : > { %3359 = vmatpush.bf16.msra.mxu2 %v3203_v27  ;;  %3373 = vmatpush.bf16.msra.mxu3 %v3206_v42 }
 0x1bf   : > { %v3084_v51 = vld.sshfl [vmem:[#allocation1 + $0x20] sm:$0xff pattern:$0x75316420]  ;;  %v3085_v17 = vld.sshfl [vmem:[#allocation1 + $0x28] sm:$0xff pattern:$0x75316420] }
 0x1c0   : > { %v3150_v5 = vpack.c.bf16 %v3084_v51, %v3084_v51  ;;  %v3151_v24 = vpack.c.bf16 %v3085_v17, %v3085_v17  ;;  %3090 = vst [vmem:[#allocation1 + $0x20] ss:$2 sm:$0xff] %v7349_v40  ;;  %v7467_v40 = vpop.f32.mrf.mxu3  ;;  %v3156_v51 = vpack.c.bf16 %v3094_v3, %v3094_v3  ;;  %v3157_v17 = vpack.c.bf16 %v3095_v39, %v3095_v39  ;;  %v3092_v56 = vld.sshfl [vmem:[#allocation1] sm:$0xff pattern:$0x75316420] }
 0x1c1   : > { %10366 = vst [vmem:[#allocation115_spill] sm:$0xff] %v7467_v40  ;;  %5884 = vmatmul.msk.bf16.vlgmr.msra.gmra.mxu2 %vm465_vm1, %v7476_v61  ;;  %5885 = vmatmul.msk.bf16.vlgmr.msra.gmra.mxu3 %vm465_vm1, %v7476_v61 }
 0x1c2   : > { %v3197_v22 = vsel %vm469_vm0, %v3150_v5, 0  ;;  %v3200_v16 = vsel %vm469_vm0, %v3151_v24, 0  ;;  %v7469_v5 = vpop.f32.mrf.mxu0  ;;  %v3093_v24 = vld.sshfl [vmem:[#allocation1 + $0x8] sm:$0xff pattern:$0x75316420]  ;;  %v3215_v3 = vsel %vm469_vm0, %v3156_v51, 0 }
 0x1c3   : > { %3331 = vmatpush.bf16.msra.mxu0 %v3197_v22  ;;  %3345 = vmatpush.bf16.msra.mxu1 %v3200_v16  ;;  %10367 = vst [vmem:[#allocation116_spill] sm:$0xff] %v7469_v5  ;;  %v3154_v5 = vpack.c.bf16 %v3092_v56, %v3092_v56  ;;  %v3155_v40 = vpack.c.bf16 %v3093_v24, %v3093_v24  ;;  %v3218_v39 = vsel %vm469_vm0, %v3157_v17, 0 }
 0x1c4   : > { %3100 = vst [vmem:[#allocation1] ss:$2 sm:$0xff] %v7278_v4  ;;  %3415 = vmatpush.bf16.msrb.mxu2 %v3215_v3  ;;  %3429 = vmatpush.bf16.msrb.mxu3 %v3218_v39 }
 0x1c5   : > { %v7478_v27 = vpop.f32.mrf.mxu2  ;;  %v7484_v16 = vpop.f32.mrf.mxu1 }
 0x1c6   : > { %10370 = vst [vmem:[#allocation119_spill] sm:$0xff] %v7484_v16  ;;  %v3099_v16 = vld.sshfl [vmem:[#allocation1 + $0x38] sm:$0xff pattern:$0x75316420] }
 0x1c7   : > { %v3161_v39 = vpack.c.bf16 %v3099_v16, %v3099_v16  ;;  %v7536_v16 = vadd.f32 %v7141_v21, %v6868_v28  ;;  %v1092_v28 = vadd.f32 %v7174_v31, %v6884_v53  ;;  %v7566_v21 = vadd.f32 %v7206_v20, %v6904_v6 }
 0x1c8   : > { %v7480_v42 = vpop.f32.mrf.mxu3  ;;  %v7570_v53 = vadd.f32 %v7211_v38, %v6906_v7  ;;  %v7582_v6 = vadd.f32 %v7233_v45, %v6920_v14  ;;  %v7586_v7 = vadd.f32 %v7239_v1, %v6922_v15  ;;  %v7596_v14 = vadd.f32 %v7280_v12, %v6938_v37  ;;  %v10378_v37 = vld [vmem:[#allocation8_spill] sm:$0xff] }
 0x1c9   : > { %10368 = vst [vmem:[#allocation117_spill] sm:$0xff] %v7480_v42  ;;  %v3209_v42 = vsel %vm469_vm0, %v3154_v5, 0  ;;  %v7600_v15 = vadd.f32 %v7282_v9, %v6940_v63  ;;  %v7604_v45 = vadd.f32 %v7288_v30, %v6942_v0  ;;  %v10380_v63 = vld [vmem:[#allocation9_spill] sm:$0xff]  ;;  %v10381_v9 = vld [vmem:[#allocation78_spill] sm:$0xff]  ;;  %v10384_v30 = vld [vmem:[#allocation11_spill] sm:$0xff] }
 0x1ca   : > { %v7482_v22 = vpop.f32.mrf.mxu0  ;;  %3387 = vmatpush.bf16.msrb.mxu0 %v3209_v42  ;;  %v7618_v12 = vadd.f32 %v10381_v9, %v10380_v63  ;;  %v10396_v9 = vld [vmem:[#allocation17_spill] sm:$0xff] }
 0x1cb   : > { %10369 = vst [vmem:[#allocation118_spill] sm:$0xff] %v7482_v22  ;;  %v3212_v22 = vsel %vm469_vm0, %v3155_v40, 0  ;;  %5882 = vmatmul.msk.bf16.vlgmr.msra.gmra.mxu0 %vm465_vm1, %v7476_v61 }
 0x1cc   : > { %3401 = vmatpush.bf16.msrb.mxu1 %v3212_v22  ;;  %v3098_v22 = vld.sshfl [vmem:[#allocation1 + $0x30] sm:$0xff pattern:$0x75316420] }
 0x1cd   : > { %v7499_v4 = vpop.f32.mrf.mxu2  ;;  %v7505_v17 = vpop.f32.mrf.mxu1  ;;  %v3160_v3 = vpack.c.bf16 %v3098_v22, %v3098_v22  ;;  %3103 = vst [vmem:[#allocation1 + $0x30] ss:$2 sm:$0xff] %v7374_v26  ;;  %5883 = vmatmul.msk.bf16.vlgmr.msra.gmra.mxu1 %vm465_vm1, %v7476_v61  ;;  %v7528_v22 = vadd.f32 %v7115_v58, %v6852_v44  ;;  %v7532_v26 = vadd.f32 %v7139_v13, %v6866_v25  ;;  %v3097_v13 = vld.sshfl [vmem:[#allocation1 + $0x28] sm:$0xff pattern:$0x75316420] }
 0x1ce   : > { %10371 = vst [vmem:[#allocation120_spill] sm:$0xff] %v7499_v4  ;;  %v1064_v44 = vadd.f32 %v7145_v46, %v6872_v48  ;;  %v1078_v25 = vadd.f32 %v7172_v18, %v6882_v52  ;;  %v7552_v58 = vadd.f32 %v7177_v36, %v6886_v54  ;;  %v7562_v48 = vpop.permute.xlu0 %2109  ;;  %v3096_v52 = vld.sshfl [vmem:[#allocation1 + $0x20] sm:$0xff pattern:$0x75316420]  ;;  %v3159_v46 = vpack.c.bf16 %v3097_v13, %v3097_v13  ;;  %v10389_v13 = vld [vmem:[#allocation88_spill] sm:$0xff] }
 0x1cf   : > { %10374 = vst [vmem:[#allocation123_spill] sm:$0xff] %v7505_v17  ;;  %v3227_v4 = vsel %vm469_vm0, %v3160_v3, 0  ;;  %v7578_v18 = vadd.f32 %v7231_v35, %v6918_v60  ;;  %v7592_v60 = vadd.f32 %v7241_v32, %v6924_v11  ;;  %v10379_v35 = vld [vmem:[#allocation77_spill] sm:$0xff]  ;;  %v10385_v3 = vld [vmem:[#allocation82_spill] sm:$0xff]  ;;  %v10410_v17 = vld [vmem:[#allocation112_spill] sm:$0xff] }
 0x1d0   : > { %v7501_v56 = vpop.f32.mrf.mxu3  ;;  %3471 = vmatpush.bf16.msra.mxu2 %v3227_v4  ;;  %v7614_v1 = vadd.f32 %v10379_v35, %v10378_v37  ;;  %v10382_v4 = vld [vmem:[#allocation10_spill] sm:$0xff]  ;;  %v10394_v37 = vld [vmem:[#allocation16_spill] sm:$0xff]  ;;  %v10395_v35 = vld [vmem:[#allocation101_spill] sm:$0xff] }
 0x1d1   : > { %10372 = vst [vmem:[#allocation121_spill] sm:$0xff] %v7501_v56  ;;  %v7522_v56 = vadd.f32 %v7113_v29, %v6850_v43  ;;  %v1050_v43 = vadd.f32 %v7143_v10, %v6870_v47  ;;  %v7556_v29 = vadd.f32 %v7179_v23, %v6888_v55  ;;  %v7560_v47 = vadd.f32 %v7204_v2, %v6902_v33 }
 0x1d2   : > { %v7503_v51 = vpop.f32.mrf.mxu0  ;;  %v3158_v55 = vpack.c.bf16 %v3096_v52, %v3096_v52  ;;  %v7574_v33 = vadd.f32 %v7213_v57, %v6908_v8  ;;  %v3224_v8 = vsel %vm469_vm0, %v3159_v46, 0  ;;  %v10377_v57 = vld [vmem:[#allocation70_spill] sm:$0xff]  ;;  %v10388_v52 = vld [vmem:[#allocation13_spill] sm:$0xff]  ;;  %v7646_v63 = vadd.f32 %v10395_v35, %v10394_v37  ;;  %5888 = vmatmul.msk.bf16.vlgmr.msrb.gmra.mxu2 %vm465_vm1, %v7476_v61  ;;  %5889 = vmatmul.msk.bf16.vlgmr.msrb.gmra.mxu3 %vm465_vm1, %v7476_v61 }
 0x1d3   : > { %10373 = vst [vmem:[#allocation122_spill] sm:$0xff] %v7503_v51  ;;  %3457 = vmatpush.bf16.msra.mxu1 %v3224_v8  ;;  %v7608_v20 = vadd.f32 %v10377_v57, %v6944_v62  ;;  %v7626_v62 = vadd.f32 %v10385_v3, %v10384_v30  ;;  %v10393_v8 = vld [vmem:[#allocation92_spill] sm:$0xff]  ;;  %v10398_v30 = vld [vmem:[#allocation18_spill] sm:$0xff]  ;;  %v10399_v3 = vld [vmem:[#allocation103_spill] sm:$0xff] }
 0x1d4   : > { %v3221_v2 = vsel %vm469_vm0, %v3158_v55, 0  ;;  %v7634_v55 = vadd.f32 %v10389_v13, %v10388_v52  ;;  %v10403_v52 = vld [vmem:[#allocation20_spill] sm:$0xff]  ;;  %v10404_v13 = vld [vmem:[#allocation109_spill] sm:$0xff]  ;;  %v10407_v37 = vld [vmem:[#allocation110_spill] sm:$0xff] }
 0x1d5   : > { %v7507_v5 = vpop.f32.mrf.mxu2  ;;  %v7513_v24 = vpop.f32.mrf.mxu1  ;;  %3443 = vmatpush.bf16.msra.mxu0 %v3221_v2  ;;  %v10392_v2 = vld [vmem:[#allocation15_spill] sm:$0xff] }
 0x1d6   : > { %10375 = vst [vmem:[#allocation124_spill] sm:$0xff] %v7507_v5  ;;  %v7642_v57 = vadd.f32 %v10393_v8, %v10392_v2  ;;  %v10406_v8 = vld [vmem:[#allocation21_spill] sm:$0xff]  ;;  %v10409_v5 = vld [vmem:[#allocation22_spill] sm:$0xff] }
 0x1d7   : > { %v7666_v35 = vadd.f32 %v10407_v37, %v10406_v8 }
 0x1d8   : > { %v7509_v40 = vpop.f32.mrf.mxu3 }
 0x1d9   : > { %10376 = vst [vmem:[#allocation125_spill] sm:$0xff] %v7509_v40  ;;  %v3230_v40 = vsel %vm469_vm0, %v3161_v39, 0  ;;  %v10386_v39 = vld [vmem:[#allocation12_spill] sm:$0xff] }
 0x1da   : > { %v7511_v42 = vpop.f32.mrf.mxu0  ;;  %3485 = vmatpush.bf16.msra.mxu3 %v3230_v40  ;;  %v10383_v40 = vld [vmem:[#allocation81_spill] sm:$0xff]  ;;  %10408 = vst [vmem:[#allocation77_spill] sm:$0xff] %v7666_v35 }
 0x1db   : > { %v7622_v0 = vadd.f32 %v10383_v40, %v10382_v4  ;;  %v10397_v4 = vld [vmem:[#allocation102_spill] sm:$0xff]  ;;  %5886 = vmatmul.msk.bf16.vlgmr.msrb.gmra.mxu0 %vm465_vm1, %v7476_v61 }
 0x1dc   : > { %v7650_v40 = vadd.f32 %v10397_v4, %v10396_v9 }
 0x1dd   : > { %v1691_v54 = vpop.f32.mrf.mxu2  ;;  %v1679_v36 = vpop.f32.mrf.mxu1  ;;  %5887 = vmatmul.msk.bf16.vlgmr.msrb.gmra.mxu1 %vm465_vm1, %v7476_v61 }
 0x1de   : > { %v2075_v38 = vadd.f32 %v1679_v36, %v1064_v44  ;;  %v10390_v36 = vld [vmem:[#allocation14_spill] sm:$0xff] }
 0x1e0   : > { %v1705_v10 = vpop.f32.mrf.mxu3  ;;  %v2141_v32 = vadd.f32 %v7562_v48, %v2075_v38 }
 0x1e2   : > { %v1665_v31 = vpop.f32.mrf.mxu0  ;;  %5892 = vmatmul.msk.bf16.vlgmr.msra.gmra.mxu2 %vm465_vm1, %v7476_v61  ;;  %5893 = vmatmul.msk.bf16.vlgmr.msra.gmra.mxu3 %vm465_vm1, %v7476_v61 }
 0x1e3   : > { %v2074_v23 = vadd.f32 %v1665_v31, %v1050_v43  ;;  %v10387_v43 = vld [vmem:[#allocation87_spill] sm:$0xff]  ;;  %v5817_v31 = vmul.f32 -1.442695, %v2141_v32 }
 0x1e4   : > { %v7630_v44 = vadd.f32 %v10387_v43, %v10386_v39  ;;  %v10400_v32 = vld [vmem:[#allocation19_spill] sm:$0xff]  ;;  %v10401_v39 = vld [vmem:[#allocation104_spill] sm:$0xff] }
 0x1e5   : > { %v2140_v11 = vadd.f32 %v7562_v48, %v2074_v23  ;;  %v10391_v23 = vld [vmem:[#allocation91_spill] sm:$0xff]  ;;  %v7658_v43 = vadd.f32 %v10401_v39, %v10400_v32  ;;  %v7670_v32 = vadd.f32 %v10410_v17, %v10409_v5  ;;  %v2046_v39 = vadd.f32 %v7511_v42, %v7522_v56  ;;  %v10414_v17 = vld [vmem:[#allocation113_spill] sm:$0xff]  ;;  %v10416_v42 = vld [vmem:[#allocation24_spill] sm:$0xff] }
 0x1e6   : > { %v7638_v38 = vadd.f32 %v10391_v23, %v10390_v36  ;;  %v7662_v36 = vadd.f32 %v10404_v13, %v10403_v52  ;;  %v1693_v23 = vpop.f32.mrf.mxu2  ;;  %v2048_v52 = vadd.f32 %v1691_v54, %v7532_v26  ;;  %v7677_v13 = vpop.permute.xlu0 %2104  ;;  %v10413_v56 = vld [vmem:[#allocation23_spill] sm:$0xff]  ;;  %v10420_v54 = vld [vmem:[#allocation26_spill] sm:$0xff] }
 0x1e7   : > { %v5816_v46 = vmul.f32 -1.442695, %v2140_v11  ;;  %v7654_v11 = vadd.f32 %v10399_v3, %v10398_v30  ;;  %10402 = vst [vmem:[#allocation70_spill] sm:$0xff] %v7658_v43  ;;  %v2076_v9 = vadd.f32 %v1693_v23, %v1078_v25  ;;  %v1733_v3 = vpop.f32.mrf.mxu1  ;;  %v7688_v5 = vadd.f32 %v10414_v17, %v10413_v56  ;;  %v10422_v23 = vld [vmem:[#allocation27_spill] sm:$0xff] }
 0x1e8   : > { %10405 = vst [vmem:[#allocation8_spill] sm:$0xff] %v7662_v36  ;;  %v1707_v2 = vpop.f32.mrf.mxu3 }
 0x1e9   : > { %6137 = vpow2.f32 %v5816_v46  ;;  %v2077_v4 = vadd.f32 %v1707_v2, %v1092_v28  ;;  %10411 = vst [vmem:[#allocation9_spill] sm:$0xff] %v7670_v32  ;;  %v2047_v46 = vadd.f32 %v7513_v24, %v7528_v22  ;;  %v2142_v25 = vadd.f32 %v7562_v48, %v2076_v9  ;;  %v10418_v22 = vld [vmem:[#allocation25_spill] sm:$0xff] }
 0x1ea   : > { %6139 = vpow2.f32 %v5817_v31  ;;  %v1719_v30 = vpop.f32.mrf.mxu0  ;;  %10412 = vst [vmem:[#allocation78_spill] sm:$0xff] %v7677_v13  ;;  %v2049_v31 = vadd.f32 %v1705_v10, %v7536_v16  ;;  %v7692_v24 = vadd.f32 %v7442_v41, %v10416_v42  ;;  %v7696_v26 = vadd.f32 %v7444_v19, %v10418_v22  ;;  %v10424_v19 = vld [vmem:[#allocation28_spill] sm:$0xff]  ;;  %v10426_v9 = vld [vmem:[#allocation29_spill] sm:$0xff] }
 0x1eb   : > { %v2143_v28 = vadd.f32 %v7562_v48, %v2077_v4  ;;  %10415 = vst [vmem:[#allocation10_spill] sm:$0xff] %v7688_v5  ;;  %v2050_v16 = vadd.f32 %v1719_v30, %v7552_v58  ;;  %v7701_v10 = vadd.f32 %v7446_v49, %v10420_v54  ;;  %v7705_v2 = vadd.f32 %v7448_v34, %v10422_v23  ;;  %v10427_v49 = vld [vmem:[#allocation115_spill] sm:$0xff]  ;;  %v10429_v54 = vld [vmem:[#allocation30_spill] sm:$0xff]  ;;  %v10430_v23 = vld [vmem:[#allocation116_spill] sm:$0xff] }
 0x1ec   : > { %10417 = vst [vmem:[#allocation81_spill] sm:$0xff] %v7692_v24  ;;  %v5818_v8 = vmul.f32 -1.442695, %v2142_v25  ;;  %v7713_v58 = vadd.f32 %v7465_v59, %v10424_v19  ;;  %v7717_v4 = vadd.f32 %v10427_v49, %v10426_v9  ;;  %v7720_v34 = vadd.f32 %v7677_v13, %v2046_v39  ;;  %v10432_v19 = vld [vmem:[#allocation31_spill] sm:$0xff]  ;;  %v10436_v9 = vld [vmem:[#allocation33_spill] sm:$0xff]  ;;  %v10439_v49 = vld [vmem:[#allocation34_spill] sm:$0xff]  ;;  %5890 = vmatmul.msk.bf16.vlgmr.msra.gmra.mxu0 %vm465_vm1, %v7476_v61 }
 0x1ed   : > { %10419 = vst [vmem:[#allocation11_spill] sm:$0xff] %v7696_v26  ;;  %v5819_v37 = vmul.f32 -1.442695, %v2143_v28  ;;  %v7723_v30 = vadd.f32 %v7677_v13, %v2047_v46  ;;  %v7726_v28 = vadd.f32 %v7677_v13, %v2048_v52  ;;  %v7729_v56 = vadd.f32 %v7677_v13, %v2049_v31  ;;  %5891 = vmatmul.msk.bf16.vlgmr.msra.gmra.mxu1 %vm465_vm1, %v7476_v61 }
 0x1ee   : > { %10421 = vst [vmem:[#allocation82_spill] sm:$0xff] %v7701_v10  ;;  %6141 = vpow2.f32 %v5818_v8  ;;  %v7736_v42 = vadd.f32 %v7677_v13, %v2050_v16  ;;  %v2051_v39 = vadd.f32 %v1733_v3, %v7556_v29  ;;  %v1747_v46 = vpop.f32.mrf.mxu2  ;;  %v7741_v52 = vadd.f32 %v10430_v23, %v10429_v54  ;;  %v10437_v29 = vld [vmem:[#allocation117_spill] sm:$0xff]  ;;  %v10442_v23 = vld [vmem:[#allocation35_spill] sm:$0xff] }
 0x1ef   : > { %10423 = vst [vmem:[#allocation12_spill] sm:$0xff] %v7705_v2  ;;  %v6138_v41 = vpop.eup %6137  ;;  %6143 = vpow2.f32 %v5819_v37  ;;  %v7745_v31 = vadd.f32 %v7471_v50, %v10432_v19  ;;  %v1735_v37 = vpop.f32.mrf.mxu1  ;;  %v7754_v3 = vadd.f32 %v10437_v29, %v10436_v9  ;;  %v10447_v9 = vld [vmem:[#allocation44_spill] sm:$0xff] }
 0x1f0   : > { %10425 = vst [vmem:[#allocation87_spill] sm:$0xff] %v7713_v58  ;;  %v6140_v25 = vpop.eup %6139  ;;  %v7731_v17 = vadd.f32 1.0, %v6138_v41  ;;  %v1761_v22 = vpop.f32.mrf.mxu3  ;;  %v10434_v41 = vld [vmem:[#allocation32_spill] sm:$0xff]  ;;  %v7775_v29 = vadd.f32 %v10447_v9, %v7720_v34 }
 0x1f1   : > { %10428 = vst [vmem:[#allocation13_spill] sm:$0xff] %v7717_v4  ;;  %v7733_v59 = vadd.f32 1.0, %v6140_v25  ;;  %v7749_v8 = vadd.f32 %v7478_v27, %v10434_v41  ;;  %v10440_v25 = vld [vmem:[#allocation118_spill] sm:$0xff]  ;;  %v10443_v4 = vld [vmem:[#allocation119_spill] sm:$0xff] }
 0x1f2   : > { %10431 = vst [vmem:[#allocation88_spill] sm:$0xff] %v7741_v52  ;;  %6145 = vrcp.f32 %v7731_v17  ;;  %v1721_v16 = vpop.f32.mrf.mxu0  ;;  %v7758_v54 = vadd.f32 %v10440_v25, %v10439_v49  ;;  %v7762_v50 = vadd.f32 %v10443_v4, %v10442_v23  ;;  %v10445_v27 = vld [vmem:[#allocation42_spill] sm:$0xff]  ;;  %v10446_v41 = vld [vmem:[#allocation43_spill] sm:$0xff]  ;;  %v10448_v49 = vld [vmem:[#allocation45_spill] sm:$0xff]  ;;  %v2289_v9 = vand.u32 2147483647, %v7731_v17 }
 0x1f3   : > { %10433 = vst [vmem:[#allocation14_spill] sm:$0xff] %v7745_v31  ;;  %6147 = vrcp.f32 %v7733_v59  ;;  %v7767_v19 = vadd.f32 %v10445_v27, %v7726_v28  ;;  %v7779_v25 = vadd.f32 %v10448_v49, %v7723_v30  ;;  %v3106_v4 = vld.sshfl [vmem:[#allocation1 + $0x10] sm:$0xff pattern:$0x75316420]  ;;  %v10449_v23 = vld [vmem:[#allocation60_spill] sm:$0xff]  ;;  %v7786_v27 = vadd.f32 %v7677_v13, %v2051_v39 }
 0x1f4   : > { %10435 = vst [vmem:[#allocation91_spill] sm:$0xff] %v7749_v8  ;;  %v7771_v8 = vadd.f32 %v10446_v41, %v7729_v56  ;;  %v2079_v41 = vadd.f32 %v1735_v37, %v7574_v33  ;;  %v2291_v58 = vand.u32 2147483648, %v7731_v17  ;;  %v2304_v49 = vand.u32 2147483647, %v7733_v59 }
 0x1f5   : > { %10438 = vst [vmem:[#allocation15_spill] sm:$0xff] %v7754_v3  ;;  %v6142_v3 = vpop.eup %6141  ;;  %v3164_v31 = vpack.c.bf16 %v3106_v4, %v3106_v4  ;;  %vm2285_vm2 = vweird.f32 %v7731_v17  ;;  %v2052_v39 = vadd.f32 %v1747_v46, %v7560_v47  ;;  %vm2300_vm3 = vweird.f32 %v7733_v59  ;;  %v7807_v47 = vld.sshfl [vmem:[#allocation1 + $0x18] sm:$0xff pattern:$0x75316420] }
 0x1f6   : > { %10441 = vst [vmem:[#allocation92_spill] sm:$0xff] %v7758_v54  ;;  %v2078_v54 = vadd.f32 %v1721_v16, %v7570_v53  ;;  %v6144_v52 = vpop.eup %6143  ;;  %v7795_v51 = vadd.f32 1.0, %v6142_v3  ;;  %v2053_v16 = vadd.f32 %v1761_v22, %v7566_v21  ;;  %v2145_v3 = vadd.f32 %v7562_v48, %v2079_v41  ;;  %v1749_v41 = vpop.f32.mrf.mxu2 }
 0x1f7   : > { %10444 = vst [vmem:[#allocation16_spill] sm:$0xff] %v7762_v50  ;;  %v7783_v50 = vadd.f32 %v10449_v23, %v7736_v42  ;;  %v2306_v23 = vand.u32 2147483648, %v7733_v59  ;;  %v7799_v33 = vadd.f32 1.0, %v6144_v52  ;;  %v3239_v37 = vsel %vm469_vm0, %v3164_v31, 0  ;;  %v1789_v32 = vpop.f32.mrf.mxu1 }
 0x1f8   : > { %v6146_v53 = vpop.eup %6145  ;;  %6149 = vrcp.f32 %v7795_v51  ;;  %v2144_v10 = vadd.f32 %v7562_v48, %v2078_v54  ;;  %3527 = vmatpush.bf16.msrb.mxu2 %v3239_v37  ;;  %vm7809_vm4 = vcmp.eq.f32.partialorder %v2289_v9, 8.507059e+37  ;;  %v2292_v52 = vor.u32 1.1754944e-38, %v2291_v58  ;;  %v1763_v24 = vpop.f32.mrf.mxu3 }
 0x1f9   : > { %v6148_v2 = vpop.eup %6147  ;;  %v2281_v4 = vmul.f32 %v6146_v53, %v7731_v17  ;;  %vm7814_vm5 = vcmp.eq.f32.partialorder %v2304_v49, 8.507059e+37  ;;  %v2307_v26 = vor.u32 1.1754944e-38, %v2306_v23  ;;  %6151 = vrcp.f32 %v7799_v33 }
 0x1fa   : > { %v2296_v21 = vmul.f32 %v6148_v2, %v7733_v59  ;;  %v7820_v54 = vadd.f32 %v7677_v13, %v2052_v39  ;;  %v2319_v37 = vand.u32 2147483647, %v7795_v51  ;;  %v7824_v58 = vadd.f32 %v7677_v13, %v2053_v16 }
 0x1fb   : > { %v2282_v31 = vsub.f32 1.0, %v2281_v4  ;;  %v3165_v49 = vpack.c.bf16 %v7807_v47, %v7807_v47  ;;  %vm2286_vm6 = vweird.f32 %v6146_v53  ;;  %v5820_v39 = vmul.f32 -1.442695, %v2144_v10  ;;  %5896 = vmatmul.msk.bf16.vlgmr.msrb.gmra.mxu2 %vm465_vm1, %v7476_v61 }
 0x1fc   : > { %v2297_v9 = vsub.f32 1.0, %v2296_v21  ;;  %v5821_v4 = vmul.f32 -1.442695, %v2145_v3  ;;  %vm2301_vm7 = vweird.f32 %v6148_v2  ;;  %vm2315_vm8 = vweird.f32 %v7795_v51  ;;  %vm2287_vm9 = vmor %vm2285_vm2, %vm2286_vm6 }
 0x1fd   : > { %v2283_v23 = vmul.f32 %v6146_v53, %v2282_v31  ;;  %v2321_v16 = vand.u32 2147483648, %v7795_v51  ;;  %v2080_v5 = vadd.f32 %v1749_v41, %v7578_v18  ;;  %6153 = vpow2.f32 %v5820_v39  ;;  %vm2302_vm12 = vmor %vm2300_vm3, %vm2301_vm7 }
 0x1fe   : > { %v2298_v21 = vmul.f32 %v6148_v2, %v2297_v9  ;;  %v6150_v47 = vpop.eup %6149  ;;  %v2081_v3 = vadd.f32 %v1763_v24, %v7582_v6  ;;  %vm7846_vm10 = vcmp.eq.f32.partialorder %v2319_v37, 8.507059e+37  ;;  %vm2330_vm11 = vweird.f32 %v7799_v33 }
 0x1ff   : > { %v2284_v31 = vadd.f32 %v6146_v53, %v2283_v23  ;;  %v2311_v18 = vmul.f32 %v6150_v47, %v7795_v51  ;;  %6155 = vpow2.f32 %v5821_v4  ;;  %v1775_v23 = vpop.f32.mrf.mxu0  ;;  %v6152_v10 = vpop.eup %6151  ;;  %vm2316_vm13 = vweird.f32 %v6150_v47 }
 0x200   : > { %v2299_v9 = vadd.f32 %v6148_v2, %v2298_v21  ;;  %v2336_v6 = vand.u32 2147483648, %v7799_v33  ;;  %v2146_v24 = vadd.f32 %v7562_v48, %v2080_v5  ;;  %v2326_v4 = vmul.f32 %v6152_v10, %v7799_v33  ;;  %vm2317_vm15 = vmor %vm2315_vm8, %vm2316_vm13 }
 0x201   : > { %v2288_v39 = vsel %vm2287_vm9, %v6146_v53, %v2284_v31  ;;  %v2312_v21 = vsub.f32 1.0, %v2311_v18  ;;  %v2147_v31 = vadd.f32 %v7562_v48, %v2081_v3  ;;  %vm2331_vm14 = vweird.f32 %v6152_v10 }
 0x202   : > { %v2293_v17 = vsel %vm7809_vm4, %v2292_v52, %v2288_v39  ;;  %v2303_v37 = vsel %vm2302_vm12, %v6148_v2, %v2299_v9  ;;  %v2327_v46 = vsub.f32 1.0, %v2326_v4  ;;  %v5822_v2 = vmul.f32 -1.442695, %v2146_v24  ;;  %vm2332_vm2 = vmor %vm2330_vm11, %vm2331_vm14 }
 0x203   : > { %v2801_v35 = vmul.f32 %v7775_v29, %v2293_v17  ;;  %v2857_v53 = vmul.f32 %v2293_v17, %v7720_v34  ;;  %v2308_v59 = vsel %vm7814_vm5, %v2307_v26, %v2303_v37  ;;  %v2313_v43 = vmul.f32 %v6150_v47, %v2312_v21  ;;  %v6154_v52 = vpop.eup %6153  ;;  %v1791_v17 = vpop.f32.mrf.mxu1  ;;  %v10457_v21 = vld [vmem:[#allocation61_spill] sm:$0xff] }
 0x204   : > { %v2802_v36 = vmul.f32 %v7779_v25, %v2308_v59  ;;  %v2858_v5 = vmul.f32 %v2308_v59, %v7723_v30  ;;  %v2054_v26 = vadd.f32 %v1775_v23, %v7586_v7  ;;  %v2055_v34 = vadd.f32 %v1789_v32, %v7592_v60  ;;  %v1803_v32 = vpop.f32.mrf.mxu2  ;;  %v1817_v23 = vpop.f32.mrf.mxu3 }
 0x205   : > { %2829 = vst [vmem:[%s7868_s28] sm:$0xf] %v2801_v35  ;;  %v6156_v29 = vpop.eup %6155  ;;  %v2314_v30 = vadd.f32 %v6150_v47, %v2313_v43  ;;  %v2328_v25 = vmul.f32 %v6152_v10, %v2327_v46  ;;  %v7874_v22 = vadd.f32 1.0, %v6154_v52  ;;  %v3242_v3 = vsel %vm469_vm0, %v3165_v49, 0  ;;  %v5868_v49 = vld [vmem:[%s6576_s6 + $0xd8] sm:$0xff] }
 0x206   : > { %2885 = vst [vmem:[%s7868_s28] sm:$0xf0] %v2857_v53  ;;  %v2322_v35 = vor.u32 1.1754944e-38, %v2321_v16  ;;  %v2337_v9 = vor.u32 1.1754944e-38, %v2336_v6  ;;  %v7881_v18 = vadd.f32 1.0, %v6156_v29  ;;  %6157 = vpow2.f32 %v5822_v2  ;;  %3541 = vmatpush.bf16.msrb.mxu3 %v3242_v3  ;;  %v10458_v53 = vld [vmem:[#allocation58_spill] sm:$0xff]  ;;  %v10459_v46 = vld [vmem:[#allocation59_spill] sm:$0xff] }
 0x207   : > { %2830 = vst [vmem:[%s7868_s28 + $0x8] sm:$0xf] %v2802_v36  ;;  %v2318_v7 = vsel %vm2317_vm15, %v6150_v47, %v2314_v30  ;;  %v2329_v60 = vadd.f32 %v6152_v10, %v2328_v25  ;;  %6159 = vrcp.f32 %v7874_v22  ;;  %v5823_v43 = vmul.f32 -1.442695, %v2147_v31  ;;  %v1777_v24 = vpop.f32.mrf.mxu0  ;;  %v10460_v2 = vld [vmem:[#allocation48_spill] sm:$0xff] }
 0x208   : > { %2886 = vst [vmem:[%s7868_s28 + $0x8] sm:$0xf0] %v2858_v5  ;;  %v2323_v36 = vsel %vm7846_vm10, %v2322_v35, %v2318_v7  ;;  %6161 = vrcp.f32 %v7881_v18  ;;  %v7893_v51 = vadd.f32 %v7677_v13, %v2054_v26  ;;  %v7896_v16 = vadd.f32 %v7677_v13, %v2055_v34  ;;  %v10461_v34 = vld [vmem:[#allocation49_spill] sm:$0xff] }
 0x209   : > { %3102 = vst [vmem:[#allocation1 + $0x20] ss:$2 sm:$0xff] %v5868_v49  ;;  %v2803_v47 = vmul.f32 %v7767_v19, %v2323_v36  ;;  %v2859_v39 = vmul.f32 %v2323_v36, %v7726_v28  ;;  %v2333_v41 = vsel %vm2332_vm2, %v6152_v10, %v2329_v60  ;;  %v10456_v6 = vand.u32 2147483647, %v7799_v33  ;;  %5897 = vmatmul.msk.bf16.vlgmr.msrb.gmra.mxu3 %vm465_vm1, %v7476_v61 }
 0x20a   : > { %v7904_v4 = vadd.f32 %v10457_v21, %v7786_v27  ;;  %v7908_v59 = vadd.f32 %v10458_v53, %v7820_v54  ;;  %v2349_v19 = vand.u32 2147483647, %v7874_v22  ;;  %v3104_v28 = vld.sshfl [vmem:[#allocation1] sm:$0xff pattern:$0x75316420]  ;;  %v2351_v31 = vand.u32 2147483648, %v7874_v22 }
 0x20b   : > { %vm2335_vm3 = vcmp.eq.f32.partialorder %v10456_v6, 8.507059e+37  ;;  %2831 = vst [vmem:[%s7868_s28 + $0x10] sm:$0xf] %v2803_v47  ;;  %6163 = vpow2.f32 %v5823_v43  ;;  %v7918_v52 = vadd.f32 %v10459_v46, %v7824_v58  ;;  %v7922_v26 = vadd.f32 %v10460_v2, %v7893_v51  ;;  %v3105_v43 = vld.sshfl [vmem:[#allocation1 + $0x8] sm:$0xff pattern:$0x75316420] }
 0x20c   : > { %v2338_v37 = vsel %vm2335_vm3, %v2337_v9, %v2333_v41  ;;  %v6158_v5 = vpop.eup %6157  ;;  %2887 = vst [vmem:[%s7868_s28 + $0x10] sm:$0xf0] %v2859_v39  ;;  %v7926_v29 = vadd.f32 %v10461_v34, %v7896_v16  ;;  %v2083_v25 = vadd.f32 %v1791_v17, %v7608_v20  ;;  %v3162_v3 = vpack.c.bf16 %v3104_v28, %v3104_v28  ;;  %v1805_v17 = vpop.f32.mrf.mxu2 }
 0x20d   : > { %v2804_v10 = vmul.f32 %v7771_v8, %v2338_v37  ;;  %v2860_v33 = vmul.f32 %v2338_v37, %v7729_v56  ;;  %v2082_v56 = vadd.f32 %v1777_v24, %v7604_v45  ;;  %v6160_v8 = vpop.eup %6159  ;;  %v7930_v30 = vadd.f32 1.0, %v6158_v5  ;;  %v1819_v37 = vpop.f32.mrf.mxu3 }
 0x20e   : > { %v6162_v35 = vpop.eup %6161  ;;  %v2341_v9 = vmul.f32 %v6160_v8, %v7874_v22  ;;  %vm2345_vm4 = vweird.f32 %v7874_v22  ;;  %vm2360_vm5 = vweird.f32 %v7881_v18  ;;  %v2056_v45 = vadd.f32 %v1803_v32, %v7596_v14 }
 0x20f   : > { %2832 = vst [vmem:[%s7868_s28 + $0x18] sm:$0xf] %v2804_v10  ;;  %vm7942_vm6 = vcmp.eq.f32.partialorder %v2349_v19, 8.507059e+37  ;;  %v2352_v20 = vor.u32 1.1754944e-38, %v2351_v31  ;;  %v2356_v60 = vmul.f32 %v6162_v35, %v7881_v18  ;;  %6165 = vrcp.f32 %v7930_v30 }
 0x210   : > { %2888 = vst [vmem:[%s7868_s28 + $0x18] sm:$0xf0] %v2860_v33  ;;  %v2342_v49 = vsub.f32 1.0, %v2341_v9  ;;  %v2364_v36 = vand.u32 2147483647, %v7881_v18  ;;  %v2366_v47 = vand.u32 2147483648, %v7881_v18  ;;  %v2057_v39 = vadd.f32 %v1817_v23, %v7600_v15  ;;  %v1831_v23 = vpop.f32.mrf.mxu0  ;;  %v7956_v33 = vpop.f32.mrf.mxu1 }
 0x211   : > { %v6164_v41 = vpop.eup %6163  ;;  %v2357_v6 = vsub.f32 1.0, %v2356_v60  ;;  %v2148_v14 = vadd.f32 %v7562_v48, %v2082_v56  ;;  %v2149_v32 = vadd.f32 %v7562_v48, %v2083_v25  ;;  %v3233_v24 = vsel %vm469_vm0, %v3162_v3, 0 }
 0x212   : > { %v2343_v21 = vmul.f32 %v6160_v8, %v2342_v49  ;;  %vm2346_vm7 = vweird.f32 %v6160_v8  ;;  %vm2361_vm8 = vweird.f32 %v6162_v35  ;;  %v7954_v53 = vadd.f32 1.0, %v6164_v41  ;;  %3499 = vmatpush.bf16.msrb.mxu0 %v3233_v24  ;;  %v3110_v49 = vld.sshfl [vmem:[#allocation1 + $0x30] sm:$0xff pattern:$0x75316420] }
 0x213   : > { %v2358_v19 = vmul.f32 %v6162_v35, %v2357_v6  ;;  %v5824_v28 = vmul.f32 -1.442695, %v2148_v14  ;;  %v5825_v10 = vmul.f32 -1.442695, %v2149_v32  ;;  %v3163_v15 = vpack.c.bf16 %v3105_v43, %v3105_v43  ;;  %vm2347_vm10 = vmor %vm2345_vm4, %vm2346_vm7 }
 0x214   : > { %v2344_v31 = vadd.f32 %v6160_v8, %v2343_v21  ;;  %vm7958_vm9 = vcmp.eq.f32.partialorder %v2364_v36, 8.507059e+37  ;;  %6167 = vrcp.f32 %v7954_v53  ;;  %v7964_v46 = vadd.f32 %v7677_v13, %v2056_v45  ;;  %vm2362_vm11 = vmor %vm2360_vm5, %vm2361_vm8 }
 0x215   : > { %v7966_v2 = vpop.eup %6165  ;;  %v2359_v34 = vadd.f32 %v6162_v35, %v2358_v19  ;;  %v2367_v56 = vor.u32 1.1754944e-38, %v2366_v47  ;;  %6169 = vpow2.f32 %v5824_v28  ;;  %v3236_v25 = vsel %vm469_vm0, %v3163_v15, 0  ;;  %5894 = vmatmul.msk.bf16.vlgmr.msrb.gmra.mxu0 %vm465_vm1, %v7476_v61  ;;  %v8012_v21 = vpop.f32.mrf.mxu3 }
 0x216   : > { %v2348_v3 = vsel %vm2347_vm10, %v6160_v8, %v2344_v31  ;;  %v2371_v9 = vmul.f32 %v7966_v2, %v7930_v30  ;;  %v2379_v45 = vand.u32 2147483647, %v7930_v30  ;;  %v7981_v22 = vadd.f32 %v7677_v13, %v2057_v39  ;;  %3513 = vmatpush.bf16.msrb.mxu1 %v3236_v25 }
 0x217   : > { %v2353_v60 = vsel %vm7942_vm6, %v2352_v20, %v2348_v3  ;;  %v2363_v43 = vsel %vm2362_vm11, %v6162_v35, %v2359_v34  ;;  %v2381_v8 = vand.u32 2147483648, %v7930_v30  ;;  %6171 = vpow2.f32 %v5825_v10 }
 0x218   : > { %v2805_v18 = vmul.f32 %v7783_v50, %v2353_v60  ;;  %v2861_v36 = vmul.f32 %v2353_v60, %v7736_v42  ;;  %v2368_v47 = vsel %vm7958_vm9, %v2367_v56, %v2363_v43  ;;  %v2372_v39 = vsub.f32 1.0, %v2371_v9  ;;  %v1833_v25 = vpop.f32.mrf.mxu0  ;;  %v1847_v3 = vpop.f32.mrf.mxu1 }
 0x219   : > { %v2806_v41 = vmul.f32 %v7904_v4, %v2368_v47  ;;  %v2862_v7 = vmul.f32 %v2368_v47, %v7786_v27  ;;  %vm2375_vm12 = vweird.f32 %v7930_v30  ;;  %v2084_v35 = vadd.f32 %v1805_v17, %v7614_v1  ;;  %5895 = vmatmul.msk.bf16.vlgmr.msrb.gmra.mxu1 %vm465_vm1, %v7476_v61  ;;  %v3111_v27 = vld.sshfl [vmem:[#allocation1 + $0x38] sm:$0xff pattern:$0x75316420]  ;;  %v8010_v17 = vpop.f32.mrf.mxu2 }
 0x21a   : > { %v7996_v50 = vpop.eup %6167  ;;  %2833 = vst [vmem:[%s7868_s28 + $0x20] sm:$0xf] %v2805_v18  ;;  %v2373_v42 = vmul.f32 %v7966_v2, %v2372_v39  ;;  %vm2376_vm13 = vweird.f32 %v7966_v2  ;;  %v2085_v4 = vadd.f32 %v1819_v37, %v7618_v12  ;;  %v3168_v20 = vpack.c.bf16 %v3110_v49, %v3110_v49  ;;  %v5871_v12 = vld [vmem:[%s6576_s6 + $0xf0] sm:$0xff] }
 0x21b   : > { %v6170_v6 = vpop.eup %6169  ;;  %2889 = vst [vmem:[%s7868_s28 + $0x20] sm:$0xf0] %v2861_v36  ;;  %vm8003_vm14 = vcmp.eq.f32.partialorder %v2379_v45, 8.507059e+37  ;;  %v2382_v14 = vor.u32 1.1754944e-38, %v2381_v8  ;;  %v2386_v32 = vmul.f32 %v7996_v50, %v7954_v53  ;;  %v2150_v24 = vadd.f32 %v7562_v48, %v2084_v35  ;;  %vm2377_vm15 = vmor %vm2375_vm12, %vm2376_vm13  ;;  %v10469_v36 = vld [vmem:[#allocation47_spill] sm:$0xff] }
 0x21c   : > { %2834 = vst [vmem:[%s7868_s28 + $0x28] sm:$0xf] %v2806_v41  ;;  %v2374_v37 = vadd.f32 %v7966_v2, %v2373_v42  ;;  %v2394_v19 = vand.u32 2147483647, %v7954_v53  ;;  %v2396_v28 = vand.u32 2147483648, %v7954_v53  ;;  %v8019_v10 = vadd.f32 1.0, %v6170_v6 }
 0x21d   : > { %v6172_v15 = vpop.eup %6171  ;;  %2890 = vst [vmem:[%s7868_s28 + $0x28] sm:$0xf0] %v2862_v7  ;;  %v2387_v31 = vsub.f32 1.0, %v2386_v32  ;;  %v5826_v5 = vmul.f32 -1.442695, %v2150_v24  ;;  %v2058_v34 = vadd.f32 %v1831_v23, %v7622_v0  ;;  %v3251_v56 = vsel %vm469_vm0, %v3168_v20, 0 }
 0x21e   : > { %v2378_v9 = vsel %vm2377_vm15, %v7966_v2, %v2374_v37  ;;  %vm2391_vm2 = vweird.f32 %v7996_v50  ;;  %6173 = vrcp.f32 %v8019_v10  ;;  %v2151_v45 = vadd.f32 %v7562_v48, %v2085_v4  ;;  %3583 = vmatpush.bf16.msra.mxu2 %v3251_v56  ;;  %3113 = vst [vmem:[#allocation1 + $0x10] ss:$2 sm:$0xff] %v5871_v12  ;;  %v5870_v7 = vld [vmem:[%s6576_s6 + $0xe8] sm:$0xff]  ;;  %v1875_v12 = vpop.f32.mrf.mxu3 }
 0x21f   : > { %v2383_v30 = vsel %vm8003_vm14, %v2382_v14, %v2378_v9  ;;  %v2388_v0 = vmul.f32 %v7996_v50, %v2387_v31  ;;  %v8035_v23 = vadd.f32 1.0, %v6172_v15  ;;  %v3169_v60 = vpack.c.bf16 %v3111_v27, %v3111_v27  ;;  %3112 = vst [vmem:[#allocation1] ss:$2 sm:$0xff] %v5870_v7 }
 0x220   : > { %v2807_v2 = vmul.f32 %v7908_v59, %v2383_v30  ;;  %v2863_v43 = vmul.f32 %v2383_v30, %v7820_v54  ;;  %6175 = vpow2.f32 %v5826_v5  ;;  %v2059_v8 = vadd.f32 %v7956_v33, %v7626_v62  ;;  %v10468_v62 = vld [vmem:[#allocation46_spill] sm:$0xff]  ;;  %v8085_v9 = vpop.f32.mrf.mxu0 }
 0x221   : > { %v2389_v49 = vadd.f32 %v7996_v50, %v2388_v0  ;;  %vm2390_vm3 = vweird.f32 %v7954_v53  ;;  %v2409_v18 = vand.u32 2147483647, %v8019_v10  ;;  %6177 = vrcp.f32 %v8035_v23  ;;  %5900 = vmatmul.msk.bf16.vlgmr.msra.gmra.mxu2 %vm465_vm1, %v7476_v61  ;;  %v1861_v24 = vpop.f32.mrf.mxu2 }
 0x222   : > { %2835 = vst [vmem:[%s7868_s28 + $0x30] sm:$0xf] %v2807_v2  ;;  %vm2392_vm4 = vmor %vm2390_vm3, %vm2391_vm2  ;;  %vm2395_vm5 = vcmp.eq.f32.partialorder %v2394_v19, 8.507059e+37  ;;  %v2397_v54 = vor.u32 1.1754944e-38, %v2396_v28  ;;  %v8052_v59 = vadd.f32 %v10468_v62, %v7964_v46  ;;  %v2411_v33 = vand.u32 2147483648, %v8019_v10 }
 0x223   : > { %2891 = vst [vmem:[%s7868_s28 + $0x30] sm:$0xf0] %v2863_v43  ;;  %v2393_v53 = vsel %vm2392_vm4, %v7996_v50, %v2389_v49  ;;  %v8059_v47 = vadd.f32 %v10469_v36, %v7981_v22  ;;  %v5827_v39 = vmul.f32 -1.442695, %v2151_v45  ;;  %v3254_v41 = vsel %vm469_vm0, %v3169_v60, 0  ;;  %v8087_v45 = vpop.f32.mrf.mxu1 }
 0x224   : > { %v6174_v35 = vpop.eup %6173  ;;  %v2398_v42 = vsel %vm2395_vm5, %v2397_v54, %v2393_v53  ;;  %vm2405_vm6 = vweird.f32 %v8019_v10  ;;  %v8065_v4 = vadd.f32 %v7677_v13, %v2058_v34  ;;  %v8068_v20 = vadd.f32 %v7677_v13, %v2059_v8  ;;  %3597 = vmatpush.bf16.msra.mxu3 %v3254_v41  ;;  %v3108_v50 = vld.sshfl [vmem:[#allocation1 + $0x20] sm:$0xff pattern:$0x75316420] }
 0x225   : > { %v2808_v27 = vmul.f32 %v7918_v52, %v2398_v42  ;;  %v2864_v6 = vmul.f32 %v2398_v42, %v7824_v58  ;;  %v2401_v1 = vmul.f32 %v6174_v35, %v8019_v10  ;;  %vm8073_vm7 = vcmp.eq.f32.partialorder %v2409_v18, 8.507059e+37  ;;  %v3109_v58 = vld.sshfl [vmem:[#allocation1 + $0x28] sm:$0xff pattern:$0x75316420] }
 0x226   : > { %v2426_v32 = vand.u32 2147483648, %v8035_v23  ;;  %v6176_v37 = vpop.eup %6175  ;;  %v2412_v19 = vor.u32 1.1754944e-38, %v2411_v33  ;;  %6179 = vpow2.f32 %v5827_v39  ;;  %v2060_v28 = vadd.f32 %v8010_v17, %v7630_v44  ;;  %v10472_v17 = vld [vmem:[#allocation68_spill] sm:$0xff] }
 0x227   : > { %v2086_v52 = vadd.f32 %v1833_v25, %v7638_v38  ;;  %v6178_v15 = vpop.eup %6177  ;;  %2836 = vst [vmem:[%s7868_s28 + $0x38] sm:$0xf] %v2808_v27  ;;  %v2402_v31 = vsub.f32 1.0, %v2401_v1  ;;  %v8082_v5 = vadd.f32 1.0, %v6176_v37  ;;  %v2087_v34 = vadd.f32 %v1847_v3, %v7642_v57  ;;  %5901 = vmatmul.msk.bf16.vlgmr.msra.gmra.mxu3 %vm465_vm1, %v7476_v61 }
 0x228   : > { %v3166_v56 = vpack.c.bf16 %v3108_v50, %v3108_v50  ;;  %2892 = vst [vmem:[%s7868_s28 + $0x38] sm:$0xf0] %v2864_v6  ;;  %v2416_v44 = vmul.f32 %v6178_v15, %v8035_v23  ;;  %vm2420_vm8 = vweird.f32 %v8035_v23  ;;  %v2424_v38 = vand.u32 2147483647, %v8035_v23  ;;  %v8130_v6 = vpop.f32.mrf.mxu3 }
 0x229   : > { %v8097_v25 = vadd.f32 %v10472_v17, %v8065_v4  ;;  %v2403_v57 = vmul.f32 %v6174_v35, %v2402_v31  ;;  %vm2406_vm9 = vweird.f32 %v6174_v35  ;;  %v2427_v3 = vor.u32 1.1754944e-38, %v2426_v32  ;;  %v8128_v27 = vpop.f32.mrf.mxu2  ;;  %v8144_v32 = vpop.f32.mrf.mxu0  ;;  %v10475_v31 = vld [vmem:[#allocation67_spill] sm:$0xff] }
 0x22a   : > { %6181 = vrcp.f32 %v8082_v5  ;;  %v2417_v30 = vsub.f32 1.0, %v2416_v44  ;;  %v2061_v0 = vadd.f32 %v8012_v21, %v7634_v55  ;;  %v2152_v60 = vadd.f32 %v7562_v48, %v2086_v52  ;;  %vm2407_vm10 = vmor %vm2405_vm6, %vm2406_vm9 }
 0x22b   : > { %v2153_v2 = vadd.f32 %v7562_v48, %v2087_v34  ;;  %v2404_v43 = vadd.f32 %v6174_v35, %v2403_v57  ;;  %v8105_v8 = vadd.f32 %v7677_v13, %v2060_v28  ;;  %v3245_v49 = vsel %vm469_vm0, %v3166_v56, 0  ;;  %v10473_v28 = vld [vmem:[#allocation69_spill] sm:$0xff]  ;;  %v3117_v57 = vld.sshfl [vmem:[#allocation1 + $0x18] sm:$0xff pattern:$0x75316420] }
 0x22c   : > { %v3167_v18 = vpack.c.bf16 %v3109_v58, %v3109_v58  ;;  %v6180_v54 = vpop.eup %6179  ;;  %v2418_v62 = vmul.f32 %v6178_v15, %v2417_v30  ;;  %vm2421_vm11 = vweird.f32 %v6178_v15  ;;  %v5828_v33 = vmul.f32 -1.442695, %v2152_v60  ;;  %3555 = vmatpush.bf16.msra.mxu0 %v3245_v49  ;;  %v10474_v58 = vld [vmem:[#allocation66_spill] sm:$0xff] }
 0x22d   : > { %v5829_v53 = vmul.f32 -1.442695, %v2153_v2  ;;  %v2408_v55 = vsel %vm2407_vm10, %v6174_v35, %v2404_v43  ;;  %v8110_v21 = vadd.f32 1.0, %v6180_v54  ;;  %v2088_v39 = vadd.f32 %v1861_v24, %v7646_v63  ;;  %vm2422_vm12 = vmor %vm2420_vm8, %vm2421_vm11  ;;  %v8146_v24 = vpop.f32.mrf.mxu1 }
 0x22e   : > { %v3248_v36 = vsel %vm469_vm0, %v3167_v18, 0  ;;  %v2413_v41 = vsel %vm8073_vm7, %v2412_v19, %v2408_v55  ;;  %v2419_v7 = vadd.f32 %v6178_v15, %v2418_v62  ;;  %v8117_v42 = vadd.f32 %v7677_v13, %v2061_v0 }
 0x22f   : > { %6183 = vpow2.f32 %v5828_v33  ;;  %3569 = vmatpush.bf16.msra.mxu1 %v3248_v36  ;;  %v2809_v50 = vmul.f32 %v7922_v26, %v2413_v41  ;;  %v2865_v35 = vmul.f32 %v2413_v41, %v7893_v51  ;;  %v2089_v63 = vadd.f32 %v1875_v12, %v7650_v40  ;;  %5898 = vmatmul.msk.bf16.vlgmr.msra.gmra.mxu0 %vm465_vm1, %v7476_v61  ;;  %v8140_v61 = vld [vmem:[%s10243_s1 + $0x8] sm:$0xff] }
 0x230   : > { %v6182_v10 = vpop.eup %6181  ;;  %6185 = vrcp.f32 %v8110_v21  ;;  %v2423_v1 = vsel %vm2422_vm12, %v6178_v15, %v2419_v7  ;;  %vm2425_vm13 = vcmp.eq.f32.partialorder %v2424_v38, 8.507059e+37  ;;  %v2439_v26 = vand.u32 2147483647, %v8082_v5  ;;  %v10478_v7 = vld [vmem:[#allocation70_spill] sm:$0xff] }
 0x231   : > { %v2431_v51 = vmul.f32 %v6182_v10, %v8082_v5  ;;  %2837 = vst [vmem:[%s7868_s28 + $0x40] sm:$0xf] %v2809_v50  ;;  %v2428_v23 = vsel %vm2425_vm13, %v2427_v3, %v2423_v1  ;;  %v2441_v14 = vand.u32 2147483648, %v8082_v5  ;;  %6187 = vpow2.f32 %v5829_v53 }
 0x232   : > { %v2154_v40 = vadd.f32 %v7562_v48, %v2088_v39  ;;  %5899 = vmatmul.msk.bf16.vlgmr.msra.gmra.mxu1 %vm465_vm1, %v8140_v61  ;;  %2893 = vst [vmem:[%s7868_s28 + $0x40] sm:$0xf0] %v2865_v35  ;;  %v2810_v12 = vmul.f32 %v7926_v29, %v2428_v23  ;;  %v2866_v37 = vmul.f32 %v2428_v23, %v7896_v16  ;;  %v3116_v29 = vld.sshfl [vmem:[#allocation1 + $0x10] sm:$0xff pattern:$0x75316420]  ;;  %vm2435_vm14 = vweird.f32 %v8082_v5  ;;  %v8188_v35 = vpop.f32.mrf.mxu2  ;;  %v8201_v23 = vpop.f32.mrf.mxu0 }
 0x233   : > { %v2432_v19 = vsub.f32 1.0, %v2431_v51  ;;  %v8153_v52 = vadd.f32 %v10473_v28, %v8068_v20  ;;  %v8157_v15 = vadd.f32 %v10474_v58, %v8105_v8  ;;  %v8161_v34 = vadd.f32 %v10475_v31, %v8117_v42 }
 0x234   : > { %v5830_v56 = vmul.f32 -1.442695, %v2154_v40  ;;  %v2155_v44 = vadd.f32 %v7562_v48, %v2089_v63  ;;  %2838 = vst [vmem:[%s7868_s28 + $0x48] sm:$0xf] %v2810_v12  ;;  %vm2436_vm15 = vweird.f32 %v6182_v10  ;;  %vm8166_vm2 = vcmp.eq.f32.partialorder %v2439_v26, 8.507059e+37 }
 0x235   : > { %v6184_v38 = vpop.eup %6183  ;;  %v2433_v16 = vmul.f32 %v6182_v10, %v2432_v19  ;;  %2894 = vst [vmem:[%s7868_s28 + $0x48] sm:$0xf0] %v2866_v37  ;;  %v2442_v30 = vor.u32 1.1754944e-38, %v2441_v14  ;;  %v2454_v49 = vand.u32 2147483647, %v8110_v21  ;;  %v2456_v18 = vand.u32 2147483648, %v8110_v21  ;;  %vm2437_vm3 = vmor %vm2435_vm14, %vm2436_vm15  ;;  %v8203_v14 = vpop.f32.mrf.mxu1 }
 0x236   : > { %v6186_v3 = vpop.eup %6185  ;;  %v8171_v0 = vadd.f32 1.0, %v6184_v38  ;;  %6189 = vpow2.f32 %v5830_v56  ;;  %v5831_v60 = vmul.f32 -1.442695, %v2155_v44  ;;  %v2062_v62 = vadd.f32 %v8085_v9, %v7654_v11  ;;  %v8190_v11 = vpop.f32.mrf.mxu3 }
 0x237   : > { %v2434_v2 = vadd.f32 %v6182_v10, %v2433_v16  ;;  %v2446_v43 = vmul.f32 %v6186_v3, %v8110_v21  ;;  %v6188_v54 = vpop.eup %6187  ;;  %v3172_v33 = vpack.c.bf16 %v3116_v29, %v3116_v29  ;;  %v3173_v53 = vpack.c.bf16 %v3117_v57, %v3117_v57 }
 0x238   : > { %6191 = vrcp.f32 %v8171_v0  ;;  %v8181_v39 = vadd.f32 1.0, %v6188_v54  ;;  %vm2451_vm4 = vweird.f32 %v6186_v3  ;;  %v2469_v5 = vand.u32 2147483647, %v8171_v0 }
 0x239   : > { %v2438_v55 = vsel %vm2437_vm3, %v6182_v10, %v2434_v2  ;;  %v2447_v36 = vsub.f32 1.0, %v2446_v43  ;;  %6193 = vpow2.f32 %v5831_v60  ;;  %v2063_v50 = vadd.f32 %v8087_v45, %v10478_v7 }
 0x23a   : > { %v2443_v41 = vsel %vm8166_vm2, %v2442_v30, %v2438_v55  ;;  %6195 = vrcp.f32 %v8181_v39  ;;  %vm2450_vm5 = vweird.f32 %v8110_v21  ;;  %vm8196_vm6 = vcmp.eq.f32.partialorder %v2454_v49, 8.507059e+37 }
 0x23b   : > { %v2811_v9 = vmul.f32 %v8052_v59, %v2443_v41  ;;  %v2867_v10 = vmul.f32 %v2443_v41, %v7964_v46  ;;  %v2448_v63 = vmul.f32 %v6186_v3, %v2447_v36  ;;  %v2457_v45 = vor.u32 1.1754944e-38, %v2456_v18  ;;  %vm2452_vm7 = vmor %vm2450_vm5, %vm2451_vm4  ;;  %v10485_v18 = vld [vmem:[#allocation8_spill] sm:$0xff]  ;;  %v8255_v36 = vpop.f32.mrf.mxu2 }
 0x23c   : > { %v6190_v1 = vpop.eup %6189  ;;  %v2471_v26 = vand.u32 2147483648, %v8171_v0  ;;  %v3263_v40 = vsel %vm469_vm0, %v3172_v33, 0  ;;  %v3266_v12 = vsel %vm469_vm0, %v3173_v53, 0  ;;  %vm2465_vm8 = vweird.f32 %v8171_v0  ;;  %v10486_v53 = vld [vmem:[#allocation77_spill] sm:$0xff] }
 0x23d   : > { %2839 = vst [vmem:[%s7868_s28 + $0x50] sm:$0xf] %v2811_v9  ;;  %v2449_v46 = vadd.f32 %v6186_v3, %v2448_v63  ;;  %v8206_v59 = vadd.f32 1.0, %v6190_v1  ;;  %v2484_v37 = vand.u32 2147483647, %v8181_v39  ;;  %v8215_v19 = vadd.f32 %v7677_v13, %v2062_v62  ;;  %3639 = vmatpush.bf16.msrb.mxu2 %v3263_v40  ;;  %3653 = vmatpush.bf16.msrb.mxu3 %v3266_v12 }
 0x23e   : > { %v6192_v21 = vpop.eup %6191  ;;  %2895 = vst [vmem:[%s7868_s28 + $0x50] sm:$0xf0] %v2867_v10  ;;  %v8218_v28 = vadd.f32 %v7677_v13, %v2063_v50  ;;  %vm8221_vm9 = vcmp.eq.f32.partialorder %v2469_v5, 8.507059e+37  ;;  %v2472_v38 = vor.u32 1.1754944e-38, %v2471_v26  ;;  %vm2480_vm10 = vweird.f32 %v8181_v39  ;;  %v8257_v41 = vpop.f32.mrf.mxu3  ;;  %v10487_v50 = vld [vmem:[#allocation9_spill] sm:$0xff] }
 0x23f   : > { %v6194_v58 = vpop.eup %6193  ;;  %v2453_v31 = vsel %vm2452_vm7, %v6186_v3, %v2449_v46  ;;  %v2461_v56 = vmul.f32 %v6192_v21, %v8171_v0  ;;  %6197 = vrcp.f32 %v8206_v59  ;;  %v2486_v16 = vand.u32 2147483648, %v8181_v39  ;;  %v3114_v26 = vld.sshfl [vmem:[#allocation1] sm:$0xff pattern:$0x75316420]  ;;  %v8272_v46 = vpop.f32.mrf.mxu0 }
 0x240   : > { %v2458_v29 = vsel %vm8196_vm6, %v2457_v45, %v2453_v31  ;;  %v6196_v17 = vpop.eup %6195  ;;  %v8232_v60 = vadd.f32 1.0, %v6194_v58  ;;  %5904 = vmatmul.msk.bf16.vlgmr.msrb.gmra.mxu2 %vm465_vm1, %v8140_v61  ;;  %5905 = vmatmul.msk.bf16.vlgmr.msrb.gmra.mxu3 %vm465_vm1, %v8140_v61  ;;  %vm8239_vm11 = vcmp.eq.f32.partialorder %v2484_v37, 8.507059e+37  ;;  %v2499_v49 = vand.u32 2147483647, %v8206_v59 }
 0x241   : > { %v2812_v57 = vmul.f32 %v8059_v47, %v2458_v29  ;;  %v2868_v3 = vmul.f32 %v2458_v29, %v7981_v22  ;;  %v2462_v30 = vsub.f32 1.0, %v2461_v56  ;;  %v2476_v2 = vmul.f32 %v6196_v17, %v8181_v39 }
 0x242   : > { %v2501_v47 = vand.u32 2147483648, %v8206_v59  ;;  %vm2466_vm12 = vweird.f32 %v6192_v21  ;;  %6199 = vrcp.f32 %v8232_v60  ;;  %v2064_v54 = vadd.f32 %v8128_v27, %v10485_v18  ;;  %v10488_v27 = vld [vmem:[#allocation10_spill] sm:$0xff]  ;;  %v10491_v18 = vld [vmem:[#allocation81_spill] sm:$0xff] }
 0x243   : > { %2840 = vst [vmem:[%s7868_s28 + $0x58] sm:$0xf] %v2812_v57  ;;  %v2463_v22 = vmul.f32 %v6192_v21, %v2462_v30  ;;  %v2477_v62 = vsub.f32 1.0, %v2476_v2  ;;  %v2487_v33 = vor.u32 1.1754944e-38, %v2486_v16  ;;  %vm2495_vm13 = vweird.f32 %v8206_v59  ;;  %vm2467_vm15 = vmor %vm2465_vm8, %vm2466_vm12 }
 0x244   : > { %2896 = vst [vmem:[%s7868_s28 + $0x58] sm:$0xf0] %v2868_v3  ;;  %v8253_v55 = vadd.f32 %v8130_v6, %v10486_v53  ;;  %vm2481_vm14 = vweird.f32 %v6196_v17  ;;  %v2090_v9 = vadd.f32 %v8144_v32, %v10487_v50  ;;  %v2091_v10 = vadd.f32 %v8146_v24, %v10488_v27  ;;  %v8274_v32 = vpop.f32.mrf.mxu1  ;;  %v3115_v2 = vld.sshfl [vmem:[#allocation1 + $0x8] sm:$0xff pattern:$0x75316420] }
 0x245   : > { %v6198_v5 = vpop.eup %6197  ;;  %v2464_v7 = vadd.f32 %v6192_v21, %v2463_v22  ;;  %v2478_v63 = vmul.f32 %v6196_v17, %v2477_v62  ;;  %vm8267_vm2 = vcmp.eq.f32.partialorder %v2499_v49, 8.507059e+37  ;;  %v2502_v51 = vor.u32 1.1754944e-38, %v2501_v47  ;;  %vm2482_vm4 = vmor %vm2480_vm10, %vm2481_vm14  ;;  %v10492_v62 = vld [vmem:[#allocation11_spill] sm:$0xff] }
 0x246   : > { %v2491_v6 = vmul.f32 %v6198_v5, %v8206_v59  ;;  %v2514_v45 = vand.u32 2147483647, %v8232_v60  ;;  %v2516_v40 = vand.u32 2147483648, %v8232_v60  ;;  %v8278_v0 = vadd.f32 %v7677_v13, %v2064_v54  ;;  %v8307_v50 = vpop.f32.mrf.mxu3 }
 0x247   : > { %v2468_v24 = vsel %vm2467_vm15, %v6192_v21, %v2464_v7  ;;  %v2156_v12 = vadd.f32 %v7562_v48, %v2090_v9  ;;  %v2479_v58 = vadd.f32 %v6196_v17, %v2478_v63  ;;  %vm2510_vm3 = vweird.f32 %v8232_v60  ;;  %v8305_v7 = vpop.f32.mrf.mxu2  ;;  %v10493_v63 = vld [vmem:[#allocation82_spill] sm:$0xff]  ;;  %v8321_v1 = vpop.f32.mrf.mxu0 }
 0x248   : > { %v2473_v37 = vsel %vm8221_vm9, %v2472_v38, %v2468_v24  ;;  %v2492_v31 = vsub.f32 1.0, %v2491_v6  ;;  %v2157_v56 = vadd.f32 %v7562_v48, %v2091_v10  ;;  %v6200_v29 = vpop.eup %6199  ;;  %v3170_v44 = vpack.c.bf16 %v3114_v26, %v3114_v26 }
 0x249   : > { %v2813_v21 = vmul.f32 %v8097_v25, %v2473_v37  ;;  %v2869_v16 = vmul.f32 %v2473_v37, %v8065_v4  ;;  %v5832_v57 = vmul.f32 -1.442695, %v2156_v12  ;;  %v2483_v38 = vsel %vm2482_vm4, %v6196_v17, %v2479_v58  ;;  %v10495_v12 = vld [vmem:[#allocation62_spill] sm:$0xff] }
 0x24a   : > { %v2493_v3 = vmul.f32 %v6198_v5, %v2492_v31  ;;  %vm2496_vm5 = vweird.f32 %v6198_v5  ;;  %v2506_v30 = vmul.f32 %v6200_v29, %v8232_v60  ;;  %v2488_v49 = vsel %vm8239_vm11, %v2487_v33, %v2483_v38  ;;  %v10496_v31 = vld [vmem:[#allocation63_spill] sm:$0xff] }
 0x24b   : > { %2841 = vst [vmem:[%s7868_s28 + $0x60] sm:$0xf] %v2813_v21  ;;  %6201 = vpow2.f32 %v5832_v57  ;;  %v5833_v25 = vmul.f32 -1.442695, %v2157_v56  ;;  %v3257_v4 = vsel %vm469_vm0, %v3170_v44, 0  ;;  %v2814_v39 = vmul.f32 %v8153_v52, %v2488_v49  ;;  %vm2497_vm6 = vmor %vm2495_vm13, %vm2496_vm5  ;;  %v8350_v60 = vld [vmem:[%s10243_s1] sm:$0xff] }
 0x24c   : > { %2897 = vst [vmem:[%s7868_s28 + $0x60] sm:$0xf0] %v2869_v16  ;;  %v2870_v47 = vmul.f32 %v2488_v49, %v8068_v20  ;;  %v2494_v17 = vadd.f32 %v6198_v5, %v2493_v3  ;;  %v2507_v22 = vsub.f32 1.0, %v2506_v30  ;;  %3611 = vmatpush.bf16.msrb.mxu0 %v3257_v4  ;;  %v3171_v43 = vpack.c.bf16 %v3115_v2, %v3115_v2  ;;  %v10497_v44 = vld [vmem:[#allocation38_spill] sm:$0xff]  ;;  %v10499_v2 = vld [vmem:[#allocation39_spill] sm:$0xff] }
 0x24d   : > { %6203 = vpow2.f32 %v5833_v25  ;;  %v2092_v54 = vadd.f32 %v8188_v35, %v10491_v18  ;;  %v2093_v33 = vadd.f32 %v8190_v11, %v10492_v62  ;;  %2842 = vst [vmem:[%s7868_s28 + $0x68] sm:$0xf] %v2814_v39  ;;  %vm2511_vm7 = vweird.f32 %v6200_v29  ;;  %v10502_v25 = vld [vmem:[#allocation124_spill] sm:$0xff] }
 0x24e   : > { %v2498_v53 = vsel %vm2497_vm6, %v6198_v5, %v2494_v17  ;;  %v2508_v52 = vmul.f32 %v6200_v29, %v2507_v22  ;;  %v2517_v20 = vor.u32 1.1754944e-38, %v2516_v40  ;;  %2898 = vst [vmem:[%s7868_s28 + $0x68] sm:$0xf0] %v2870_v47  ;;  %v3260_v9 = vsel %vm469_vm0, %v3171_v43, 0  ;;  %vm2512_vm8 = vmor %vm2510_vm3, %vm2511_vm7  ;;  %v10503_v47 = vld [vmem:[#allocation88_spill] sm:$0xff]  ;;  %v10504_v22 = vld [vmem:[#allocation41_spill] sm:$0xff] }
 0x24f   : > { %v2503_v59 = vsel %vm8267_vm2, %v2502_v51, %v2498_v53  ;;  %v2158_v35 = vadd.f32 %v7562_v48, %v2092_v54  ;;  %v2159_v11 = vadd.f32 %v7562_v48, %v2093_v33  ;;  %5902 = vmatmul.msk.bf16.vlgmr.msrb.gmra.mxu0 %vm465_vm1, %v8140_v61  ;;  %3625 = vmatpush.bf16.msrb.mxu1 %v3260_v9  ;;  %v8323_v51 = vpop.f32.mrf.mxu1  ;;  %vm2515_vm9 = vcmp.eq.f32.partialorder %v2514_v45, 8.507059e+37  ;;  %v10505_v43 = vld [vmem:[#allocation125_spill] sm:$0xff]  ;;  %v10506_v54 = vld [vmem:[#allocation52_spill] sm:$0xff] }
 0x250   : > { %v2815_v5 = vmul.f32 %v8157_v15, %v2503_v59  ;;  %v2871_v27 = vmul.f32 %v2503_v59, %v8105_v8  ;;  %v2509_v10 = vadd.f32 %v6200_v29, %v2508_v52  ;;  %v2066_v6 = vadd.f32 %v8201_v23, %v10493_v63  ;;  %v10494_v15 = vld [vmem:[#allocation12_spill] sm:$0xff]  ;;  %v10507_v53 = vld [vmem:[#allocation53_spill] sm:$0xff]  ;;  %v10508_v52 = vld [vmem:[#allocation50_spill] sm:$0xff] }
 0x251   : > { %v6202_v26 = vpop.eup %6201  ;;  %v5834_v24 = vmul.f32 -1.442695, %v2158_v35  ;;  %v5835_v40 = vmul.f32 -1.442695, %v2159_v11  ;;  %v2067_v8 = vadd.f32 %v8203_v14, %v10494_v15  ;;  %v3019_v37 = vpack.c.bf16 %v10495_v12, %v10495_v12  ;;  %v10509_v59 = vld [vmem:[#allocation51_spill] sm:$0xff]  ;;  %v10511_v63 = vld [vmem:[#allocation80_spill] sm:$0xff] }
 0x252   : > { %2843 = vst [vmem:[%s7868_s28 + $0x70] sm:$0xf] %v2815_v5  ;;  %v2513_v58 = vsel %vm2512_vm8, %v6200_v29, %v2509_v10  ;;  %v8335_v23 = vadd.f32 1.0, %v6202_v26  ;;  %v3020_v56 = vpack.c.bf16 %v10496_v31, %v10496_v31  ;;  %v8342_v57 = vadd.f32 %v7677_v13, %v8253_v55  ;;  %5903 = vmatmul.msk.bf16.vlgmr.msrb.gmra.mxu1 %vm465_vm1, %v8140_v61  ;;  %v10498_v61 = vld [vmem:[#allocation122_spill] sm:$0xff]  ;;  %v10510_v35 = vld [vmem:[#allocation79_spill] sm:$0xff]  ;;  %v8408_v5 = vpop.f32.mrf.mxu2  ;;  %v10514_v31 = vld [vmem:[#allocation13_spill] sm:$0xff] }
 0x253   : > { %v6204_v21 = vpop.eup %6203  ;;  %2899 = vst [vmem:[%s7868_s28 + $0x70] sm:$0xf0] %v2871_v27  ;;  %v2518_v16 = vsel %vm2515_vm9, %v2517_v20, %v2513_v58  ;;  %6205 = vpow2.f32 %v5834_v24  ;;  %v3675_v14 = vsel %vm469_vm0, %v3019_v37, 0  ;;  %v8356_v55 = vadd.f32 %v7677_v13, %v2066_v6  ;;  %v8410_v27 = vpop.f32.mrf.mxu3  ;;  %v10512_v24 = vld [vmem:[#allocation14_spill] sm:$0xff]  ;;  %v10513_v37 = vld [vmem:[#allocation87_spill] sm:$0xff] }
 0x254   : > { %v2816_v45 = vmul.f32 %v8161_v34, %v2518_v16  ;;  %v2872_v29 = vmul.f32 %v2518_v16, %v8117_v42  ;;  %6207 = vrcp.f32 %v8335_v23  ;;  %3787 = vmatpush.bf16.msra.mxu2 %v3675_v14  ;;  %v8360_v38 = vadd.f32 %v10498_v61, %v10497_v44  ;;  %v10500_v34 = vld [vmem:[#allocation123_spill] sm:$0xff]  ;;  %v10501_v42 = vld [vmem:[#allocation40_spill] sm:$0xff] }
 0x255   : > { %v8362_v3 = vadd.f32 1.0, %v6204_v21  ;;  %6209 = vpow2.f32 %v5835_v40  ;;  %v8365_v30 = vadd.f32 %v7677_v13, %v2067_v8  ;;  %v8369_v49 = vadd.f32 %v10500_v34, %v10499_v2  ;;  %v8429_v21 = vpop.f32.mrf.mxu0  ;;  %v10518_v2 = vld [vmem:[#allocation65_spill] sm:$0xff] }
 0x256   : > { %v8373_v4 = vadd.f32 %v10502_v25, %v10501_v42  ;;  %2844 = vst [vmem:[%s7868_s28 + $0x78] sm:$0xf] %v2816_v45  ;;  %v3678_v39 = vsel %vm469_vm0, %v3020_v56, 0  ;;  %v2094_v17 = vadd.f32 %v8272_v46, %v10503_v47  ;;  %v8381_v18 = vadd.f32 %v10505_v43, %v10504_v22 }
 0x257   : > { %2900 = vst [vmem:[%s7868_s28 + $0x78] sm:$0xf0] %v2872_v29  ;;  %v8386_v62 = vadd.f32 %v10506_v54, %v8215_v19  ;;  %v2529_v33 = vand.u32 2147483647, %v8335_v23  ;;  %6211 = vrcp.f32 %v8362_v3  ;;  %3801 = vmatpush.bf16.msra.mxu3 %v3678_v39  ;;  %5912 = vmatmul.msk.bf16.vlgmr.msra.gmra.mxu2 %vm465_vm1, %v8350_v60  ;;  %v8394_v46 = vadd.f32 %v10507_v53, %v8218_v28  ;;  %v8431_v16 = vpop.f32.mrf.mxu1 }
 0x258   : > { %v8398_v20 = vadd.f32 %v10508_v52, %v8278_v0  ;;  %v8402_v9 = vadd.f32 %v10509_v59, %v8342_v57  ;;  %v8406_v11 = vadd.f32 %v10510_v35, %v8356_v55  ;;  %vm2525_vm10 = vweird.f32 %v8335_v23 }
 0x259   : > { %v6206_v10 = vpop.eup %6205  ;;  %v8415_v6 = vadd.f32 %v10511_v63, %v8365_v30  ;;  %v2160_v26 = vadd.f32 %v7562_v48, %v2094_v17  ;;  %v2095_v40 = vadd.f32 %v8274_v32, %v10512_v24  ;;  %v2531_v8 = vand.u32 2147483648, %v8335_v23  ;;  %v10521_v24 = vld [vmem:[#allocation91_spill] sm:$0xff] }
 0x25a   : > { %v6208_v15 = vpop.eup %6207  ;;  %v8421_v12 = vadd.f32 1.0, %v6206_v10  ;;  %v2068_v58 = vadd.f32 %v8255_v36, %v10513_v37  ;;  %v2069_v56 = vadd.f32 %v8257_v41, %v10514_v31  ;;  %5913 = vmatmul.msk.bf16.vlgmr.msra.gmra.mxu3 %vm465_vm1, %v8350_v60  ;;  %vm8434_vm11 = vcmp.eq.f32.partialorder %v2529_v33, 8.507059e+37  ;;  %v10517_v41 = vld [vmem:[#allocation64_spill] sm:$0xff] }
 0x25b   : > { %v6210_v14 = vpop.eup %6209  ;;  %v2521_v32 = vmul.f32 %v6208_v15, %v8335_v23  ;;  %v2544_v29 = vand.u32 2147483647, %v8362_v3  ;;  %v5836_v36 = vmul.f32 -1.442695, %v2160_v26  ;;  %v2546_v44 = vand.u32 2147483648, %v8362_v3 }
 0x25c   : > { %6213 = vrcp.f32 %v8421_v12  ;;  %v3017_v61 = vpack.c.bf16 %v10517_v41, %v10517_v41  ;;  %v3018_v34 = vpack.c.bf16 %v10518_v2, %v10518_v2  ;;  %v8445_v39 = vadd.f32 1.0, %v6210_v14  ;;  %v8473_v14 = vpop.f32.mrf.mxu3 }
 0x25d   : > { %v6212_v42 = vpop.eup %6211  ;;  %v2522_v25 = vsub.f32 1.0, %v2521_v32  ;;  %6215 = vpow2.f32 %v5836_v36  ;;  %v2161_v47 = vadd.f32 %v7562_v48, %v2095_v40  ;;  %v2532_v17 = vor.u32 1.1754944e-38, %v2531_v8 }
 0x25e   : > { %v2536_v22 = vmul.f32 %v6212_v42, %v8362_v3  ;;  %vm2540_vm12 = vweird.f32 %v8362_v3  ;;  %v8451_v43 = vadd.f32 %v7677_v13, %v2068_v58  ;;  %vm2526_vm13 = vweird.f32 %v6208_v15  ;;  %v10522_v58 = vld [vmem:[#allocation15_spill] sm:$0xff] }
 0x25f   : > { %v2523_v54 = vmul.f32 %v6208_v15, %v2522_v25  ;;  %6217 = vrcp.f32 %v8445_v39  ;;  %v8455_v33 = vadd.f32 %v7677_v13, %v2069_v56  ;;  %vm8457_vm14 = vcmp.eq.f32.partialorder %v2544_v29, 8.507059e+37  ;;  %vm2527_vm15 = vmor %vm2525_vm10, %vm2526_vm13  ;;  %v8471_v56 = vpop.f32.mrf.mxu2 }
 0x260   : > { %v2537_v53 = vsub.f32 1.0, %v2536_v22  ;;  %v5837_v59 = vmul.f32 -1.442695, %v2161_v47  ;;  %v3669_v35 = vsel %vm469_vm0, %v3017_v61, 0  ;;  %v2547_v63 = vor.u32 1.1754944e-38, %v2546_v44  ;;  %v8488_v61 = vpop.f32.mrf.mxu1 }
 0x261   : > { %v2524_v10 = vadd.f32 %v6208_v15, %v2523_v54  ;;  %3759 = vmatpush.bf16.msra.mxu0 %v3669_v35  ;;  %v3672_v26 = vsel %vm469_vm0, %v3018_v34, 0  ;;  %v2096_v40 = vadd.f32 %v8305_v7, %v10521_v24  ;;  %vm2541_vm2 = vweird.f32 %v6212_v42 }
 0x262   : > { %v8465_v8 = vpop.eup %6213  ;;  %v2538_v37 = vmul.f32 %v6212_v42, %v2537_v53  ;;  %6219 = vpow2.f32 %v5837_v59  ;;  %3773 = vmatpush.bf16.msra.mxu1 %v3672_v26  ;;  %v2097_v31 = vadd.f32 %v8307_v50, %v10522_v58  ;;  %vm2555_vm3 = vweird.f32 %v8421_v12  ;;  %vm2542_vm4 = vmor %vm2540_vm12, %vm2541_vm2 }
 0x263   : > { %v6216_v32 = vpop.eup %6215  ;;  %v2528_v29 = vsel %vm2527_vm15, %v6208_v15, %v2524_v10  ;;  %v2551_v7 = vmul.f32 %v8465_v8, %v8421_v12  ;;  %v2162_v23 = vadd.f32 %v7562_v48, %v2096_v40  ;;  %v2561_v41 = vand.u32 2147483648, %v8421_v12  ;;  %v8486_v15 = vpop.f32.mrf.mxu0 }
 0x264   : > { %v2533_v36 = vsel %vm8434_vm11, %v2532_v17, %v2528_v29  ;;  %v2539_v44 = vadd.f32 %v6212_v42, %v2538_v37  ;;  %v8482_v50 = vadd.f32 1.0, %v6216_v32  ;;  %5910 = vmatmul.msk.bf16.vlgmr.msra.gmra.mxu0 %vm465_vm1, %v8350_v60  ;;  %v2163_v54 = vadd.f32 %v7562_v48, %v2097_v31  ;;  %v10523_v31 = vld [vmem:[#allocation74_spill] sm:$0xff] }
 0x265   : > { %v6218_v2 = vpop.eup %6217  ;;  %v2817_v34 = vmul.f32 %v8386_v62, %v2533_v36  ;;  %v2873_v45 = vmul.f32 %v2533_v36, %v8215_v19  ;;  %v2552_v25 = vsub.f32 1.0, %v2551_v7  ;;  %v5838_v47 = vmul.f32 -1.442695, %v2162_v23  ;;  %5911 = vmatmul.msk.bf16.vlgmr.msra.gmra.mxu1 %vm465_vm1, %v8350_v60 }
 0x266   : > { %v2543_v17 = vsel %vm2542_vm4, %v6212_v42, %v2539_v44  ;;  %v2566_v22 = vmul.f32 %v6218_v2, %v8445_v39  ;;  %6221 = vrcp.f32 %v8482_v50  ;;  %vm2556_vm5 = vweird.f32 %v8465_v8 }
 0x267   : > { %2845 = vst [vmem:[%s7868_s28 + $0x80] sm:$0xf] %v2817_v34  ;;  %v2548_v19 = vsel %vm8457_vm14, %v2547_v63, %v2543_v17  ;;  %v2553_v3 = vmul.f32 %v8465_v8, %v2552_v25  ;;  %v2559_v62 = vand.u32 2147483647, %v8421_v12  ;;  %v2562_v35 = vor.u32 1.1754944e-38, %v2561_v41  ;;  %vm2557_vm6 = vmor %vm2555_vm3, %vm2556_vm5  ;;  %v8517_v37 = vpop.f32.mrf.mxu2  ;;  %v10524_v25 = vld [vmem:[#allocation75_spill] sm:$0xff] }
 0x268   : > { %v6220_v53 = vpop.eup %6219  ;;  %2901 = vst [vmem:[%s7868_s28 + $0x80] sm:$0xf0] %v2873_v45  ;;  %v2818_v42 = vmul.f32 %v8394_v46, %v2548_v19  ;;  %v2874_v59 = vmul.f32 %v2548_v19, %v8218_v28  ;;  %v2567_v10 = vsub.f32 1.0, %v2566_v22  ;;  %v2576_v52 = vand.u32 2147483648, %v8445_v39  ;;  %v8519_v28 = vpop.f32.mrf.mxu3 }
 0x269   : > { %v2554_v26 = vadd.f32 %v8465_v8, %v2553_v3  ;;  %v8511_v63 = vadd.f32 1.0, %v6220_v53  ;;  %6223 = vpow2.f32 %v5838_v47  ;;  %vm2571_vm7 = vweird.f32 %v6218_v2  ;;  %v8531_v36 = vpop.f32.mrf.mxu1 }
 0x26a   : > { %2846 = vst [vmem:[%s7868_s28 + $0x88] sm:$0xf] %v2818_v42  ;;  %v2568_v24 = vmul.f32 %v6218_v2, %v2567_v10  ;;  %v2574_v46 = vand.u32 2147483647, %v8445_v39  ;;  %v5839_v40 = vmul.f32 -1.442695, %v2163_v54  ;;  %v8525_v32 = vadd.f32 %v10523_v31, %v8451_v43 }
 0x26b   : > { %2902 = vst [vmem:[%s7868_s28 + $0x88] sm:$0xf0] %v2874_v59  ;;  %v2558_v58 = vsel %vm2557_vm6, %v8465_v8, %v2554_v26  ;;  %vm2560_vm8 = vcmp.eq.f32.partialorder %v2559_v62, 8.507059e+37  ;;  %6225 = vrcp.f32 %v8511_v63  ;;  %vm2570_vm9 = vweird.f32 %v8445_v39  ;;  %v8529_v23 = vpop.f32.mrf.mxu0  ;;  %v10525_v54 = vld [vmem:[#allocation85_spill] sm:$0xff] }
 0x26c   : > { %v6222_v12 = vpop.eup %6221  ;;  %v2563_v29 = vsel %vm2560_vm8, %v2562_v35, %v2558_v58  ;;  %v2569_v7 = vadd.f32 %v6218_v2, %v2568_v24  ;;  %6227 = vpow2.f32 %v5839_v40  ;;  %vm2572_vm10 = vmor %vm2570_vm9, %vm2571_vm7  ;;  %v2577_v41 = vor.u32 1.1754944e-38, %v2576_v52  ;;  %v10526_v35 = vld [vmem:[#allocation86_spill] sm:$0xff] }
 0x26d   : > { %v2819_v8 = vmul.f32 %v8398_v20, %v2563_v29  ;;  %v2875_v44 = vmul.f32 %v2563_v29, %v8278_v0  ;;  %v2581_v34 = vmul.f32 %v6222_v12, %v8482_v50  ;;  %vm2575_vm11 = vcmp.eq.f32.partialorder %v2574_v46, 8.507059e+37 }
 0x26e   : > { %v2573_v45 = vsel %vm2572_vm10, %v6218_v2, %v2569_v7  ;;  %v8539_v39 = vadd.f32 %v10524_v25, %v8455_v33  ;;  %v2589_v47 = vand.u32 2147483647, %v8482_v50  ;;  %v2591_v0 = vand.u32 2147483648, %v8482_v50 }
 0x26f   : > { %v6224_v17 = vpop.eup %6223  ;;  %2847 = vst [vmem:[%s7868_s28 + $0x90] sm:$0xf] %v2819_v8  ;;  %v2578_v22 = vsel %vm2575_vm11, %v2577_v41, %v2573_v45  ;;  %v2582_v20 = vsub.f32 1.0, %v2581_v34  ;;  %v3023_v19 = vpack.c.bf16 %v10525_v54, %v10525_v54  ;;  %vm2585_vm12 = vweird.f32 %v8482_v50  ;;  %v8566_v24 = vpop.f32.mrf.mxu2  ;;  %v10529_v8 = vld [vmem:[#allocation92_spill] sm:$0xff] }
 0x270   : > { %2903 = vst [vmem:[%s7868_s28 + $0x90] sm:$0xf0] %v2875_v44  ;;  %v2820_v2 = vmul.f32 %v8402_v9, %v2578_v22  ;;  %v2876_v3 = vmul.f32 %v2578_v22, %v8342_v57  ;;  %v8550_v62 = vadd.f32 1.0, %v6224_v17  ;;  %vm2586_vm13 = vweird.f32 %v6222_v12  ;;  %v8568_v46 = vpop.f32.mrf.mxu3  ;;  %v10532_v54 = vld [vmem:[#allocation16_spill] sm:$0xff] }
 0x271   : > { %v8552_v53 = vpop.eup %6225  ;;  %v2583_v42 = vmul.f32 %v6222_v12, %v2582_v20  ;;  %v3687_v59 = vsel %vm469_vm0, %v3023_v19, 0  ;;  %v3024_v10 = vpack.c.bf16 %v10526_v35, %v10526_v35  ;;  %vm8558_vm14 = vcmp.eq.f32.partialorder %v2589_v47, 8.507059e+37  ;;  %vm2587_vm15 = vmor %vm2585_vm12, %vm2586_vm13  ;;  %v8585_v45 = vpop.f32.mrf.mxu1 }
 0x272   : > { %v6228_v26 = vpop.eup %6227  ;;  %2848 = vst [vmem:[%s7868_s28 + $0x98] sm:$0xf] %v2820_v2  ;;  %v2596_v57 = vmul.f32 %v8552_v53, %v8511_v63  ;;  %v2604_v52 = vand.u32 2147483647, %v8511_v63  ;;  %6229 = vrcp.f32 %v8550_v62  ;;  %3843 = vmatpush.bf16.msrb.mxu2 %v3687_v59  ;;  %v2592_v58 = vor.u32 1.1754944e-38, %v2591_v0 }
 0x273   : > { %2904 = vst [vmem:[%s7868_s28 + $0x98] sm:$0xf0] %v2876_v3  ;;  %v2584_v40 = vadd.f32 %v6222_v12, %v2583_v42  ;;  %v2606_v31 = vand.u32 2147483648, %v8511_v63  ;;  %v8572_v29 = vadd.f32 1.0, %v6228_v26  ;;  %vm2600_vm2 = vweird.f32 %v8511_v63  ;;  %v8583_v34 = vpop.f32.mrf.mxu0 }
 0x274   : > { %v2597_v7 = vsub.f32 1.0, %v2596_v57  ;;  %v8580_v44 = vadd.f32 %v8321_v1, %v10529_v8  ;;  %v3690_v41 = vsel %vm469_vm0, %v3024_v10, 0  ;;  %v2619_v47 = vand.u32 2147483647, %v8550_v62 }
 0x275   : > { %v2588_v25 = vsel %vm2587_vm15, %v6222_v12, %v2584_v40  ;;  %v2621_v17 = vand.u32 2147483648, %v8550_v62  ;;  %6231 = vrcp.f32 %v8572_v29  ;;  %3857 = vmatpush.bf16.msrb.mxu3 %v3690_v41  ;;  %5916 = vmatmul.msk.bf16.vlgmr.msrb.gmra.mxu2 %vm465_vm1, %v8350_v60  ;;  %vm2601_vm3 = vweird.f32 %v8552_v53  ;;  %v10535_v40 = vld [vmem:[#allocation89_spill] sm:$0xff] }
 0x276   : > { %v2593_v1 = vsel %vm8558_vm14, %v2592_v58, %v2588_v25  ;;  %v2598_v50 = vmul.f32 %v8552_v53, %v2597_v7  ;;  %vm8596_vm4 = vcmp.eq.f32.partialorder %v2604_v52, 8.507059e+37  ;;  %v2607_v0 = vor.u32 1.1754944e-38, %v2606_v31  ;;  %vm2602_vm5 = vmor %vm2600_vm2, %vm2601_vm3  ;;  %v10536_v58 = vld [vmem:[#allocation90_spill] sm:$0xff] }
 0x277   : > { %v2821_v22 = vmul.f32 %v8406_v11, %v2593_v1  ;;  %v2877_v20 = vmul.f32 %v2593_v1, %v8356_v55  ;;  %v8604_v19 = vadd.f32 %v8323_v51, %v10532_v54  ;;  %v2634_v42 = vand.u32 2147483647, %v8572_v29  ;;  %v8628_v63 = vpop.f32.mrf.mxu2 }
 0x278   : > { %v6230_v2 = vpop.eup %6229  ;;  %v2599_v3 = vadd.f32 %v8552_v53, %v2598_v50  ;;  %v2636_v59 = vand.u32 2147483648, %v8572_v29  ;;  %v2098_v35 = vadd.f32 %v8429_v21, %v8360_v38  ;;  %5917 = vmatmul.msk.bf16.vlgmr.msrb.gmra.mxu3 %vm465_vm1, %v8350_v60  ;;  %vm2615_vm6 = vweird.f32 %v8550_v62  ;;  %v8630_v26 = vpop.f32.mrf.mxu3 }
 0x279   : > { %2849 = vst [vmem:[%s7868_s28 + $0xa0] sm:$0xf] %v2821_v22  ;;  %v2611_v51 = vmul.f32 %v6230_v2, %v8550_v62  ;;  %vm8618_vm7 = vcmp.eq.f32.partialorder %v2619_v47, 8.507059e+37  ;;  %v2622_v11 = vor.u32 1.1754944e-38, %v2621_v17  ;;  %vm2616_vm8 = vweird.f32 %v6230_v2  ;;  %v8648_v50 = vpop.f32.mrf.mxu1 }
 0x27a   : > { %2905 = vst [vmem:[%s7868_s28 + $0xa0] sm:$0xf0] %v2877_v20  ;;  %v2603_v10 = vsel %vm2602_vm5, %v8552_v53, %v2599_v3  ;;  %vm2630_vm9 = vweird.f32 %v8572_v29  ;;  %v2164_v38 = vadd.f32 %v7562_v48, %v2098_v35  ;;  %v2099_v21 = vadd.f32 %v8431_v16, %v8369_v49  ;;  %vm2617_vm12 = vmor %vm2615_vm6, %vm2616_vm8 }
 0x27b   : > { %v6232_v9 = vpop.eup %6231  ;;  %v2608_v57 = vsel %vm8596_vm4, %v2607_v0, %v2603_v10  ;;  %v2612_v52 = vsub.f32 1.0, %v2611_v51  ;;  %v3021_v53 = vpack.c.bf16 %v10535_v40, %v10535_v40  ;;  %v3022_v31 = vpack.c.bf16 %v10536_v58, %v10536_v58  ;;  %v8646_v1 = vpop.f32.mrf.mxu0 }
 0x27c   : > { %v2822_v7 = vmul.f32 %v8415_v6, %v2608_v57  ;;  %v2878_v49 = vmul.f32 %v2608_v57, %v8365_v30  ;;  %v2626_v16 = vmul.f32 %v6232_v9, %v8572_v29  ;;  %vm8641_vm10 = vcmp.eq.f32.partialorder %v2634_v42, 8.507059e+37  ;;  %v10543_v29 = vld [vmem:[#allocation97_spill] sm:$0xff] }
 0x27d   : > { %v2637_v41 = vor.u32 1.1754944e-38, %v2636_v59  ;;  %v2613_v25 = vmul.f32 %v6230_v2, %v2612_v52  ;;  %vm2631_vm11 = vweird.f32 %v6232_v9  ;;  %v5840_v47 = vmul.f32 -1.442695, %v2164_v38  ;;  %v10539_v59 = vld [vmem:[#allocation71_spill] sm:$0xff]  ;;  %v10541_v38 = vld [vmem:[#allocation73_spill] sm:$0xff] }
 0x27e   : > { %v2165_v17 = vadd.f32 %v7562_v48, %v2099_v21  ;;  %2850 = vst [vmem:[%s7868_s28 + $0xa8] sm:$0xf] %v2822_v7  ;;  %v2627_v6 = vsub.f32 1.0, %v2626_v16  ;;  %v3681_v30 = vsel %vm469_vm0, %v3021_v53, 0  ;;  %v3684_v12 = vsel %vm469_vm0, %v3022_v31, 0  ;;  %vm2632_vm13 = vmor %vm2630_vm9, %vm2631_vm11  ;;  %v10542_v7 = vld [vmem:[#allocation76_spill] sm:$0xff] }
 0x27f   : > { %v2100_v22 = vadd.f32 %v8471_v56, %v8373_v4  ;;  %2906 = vst [vmem:[%s7868_s28 + $0xa8] sm:$0xf0] %v2878_v49  ;;  %v2614_v20 = vadd.f32 %v6230_v2, %v2613_v25  ;;  %6233 = vpow2.f32 %v5840_v47  ;;  %3815 = vmatpush.bf16.msrb.mxu0 %v3681_v30  ;;  %3829 = vmatpush.bf16.msrb.mxu1 %v3684_v12  ;;  %v10540_v4 = vld [vmem:[#allocation72_spill] sm:$0xff]  ;;  %v8676_v57 = vpop.f32.mrf.mxu2  ;;  %v10544_v25 = vld [vmem:[#allocation98_spill] sm:$0xff] }
 0x280   : > { %v5841_v0 = vmul.f32 -1.442695, %v2165_v17  ;;  %v2101_v54 = vadd.f32 %v8473_v14, %v8381_v18  ;;  %v2628_v3 = vmul.f32 %v6232_v9, %v2627_v6  ;;  %v3027_v35 = vpack.c.bf16 %v10539_v59, %v10539_v59  ;;  %v8678_v52 = vpop.f32.mrf.mxu3 }
 0x281   : > { %v2166_v42 = vadd.f32 %v7562_v48, %v2100_v22  ;;  %v3028_v56 = vpack.c.bf16 %v10540_v4, %v10540_v4  ;;  %v2618_v51 = vsel %vm2617_vm12, %v6230_v2, %v2614_v20  ;;  %v3025_v18 = vpack.c.bf16 %v10541_v38, %v10541_v38  ;;  %v10545_v22 = vld [vmem:[#allocation99_spill] sm:$0xff] }
 0x282   : > { %6235 = vpow2.f32 %v5841_v0  ;;  %v2167_v10 = vadd.f32 %v7562_v48, %v2101_v54  ;;  %v2623_v14 = vsel %vm8618_vm7, %v2622_v11, %v2618_v51  ;;  %v2629_v62 = vadd.f32 %v6232_v9, %v2628_v3  ;;  %5914 = vmatmul.msk.bf16.vlgmr.msrb.gmra.mxu0 %vm465_vm1, %v8350_v60  ;;  %5915 = vmatmul.msk.bf16.vlgmr.msrb.gmra.mxu1 %vm465_vm1, %v8350_v60  ;;  %v8712_v54 = vpop.f32.mrf.mxu1  ;;  %v10547_v3 = vld [vmem:[#allocation36_spill] sm:$0xff]  ;;  %v10549_v51 = vld [vmem:[#allocation83_spill] sm:$0xff] }
 0x283   : > { %v5842_v21 = vmul.f32 -1.442695, %v2166_v42  ;;  %v3699_v2 = vsel %vm469_vm0, %v3027_v35, 0  ;;  %v2823_v40 = vmul.f32 %v8525_v32, %v2623_v14  ;;  %v2879_v55 = vmul.f32 %v2623_v14, %v8451_v43  ;;  %v8710_v0 = vpop.f32.mrf.mxu0  ;;  %v10548_v42 = vld [vmem:[#allocation120_spill] sm:$0xff]  ;;  %v10551_v14 = vld [vmem:[#allocation121_spill] sm:$0xff] }
 0x284   : > { %v5843_v11 = vmul.f32 -1.442695, %v2167_v10  ;;  %3899 = vmatpush.bf16.msra.mxu2 %v3699_v2  ;;  %v3702_v53 = vsel %vm469_vm0, %v3028_v56, 0  ;;  %v2633_v58 = vsel %vm2632_vm13, %v6232_v9, %v2629_v62  ;;  %v3693_v31 = vsel %vm469_vm0, %v3025_v18, 0  ;;  %v10550_v18 = vld [vmem:[#allocation37_spill] sm:$0xff]  ;;  %v10552_v2 = vld [vmem:[#allocation84_spill] sm:$0xff] }
 0x285   : > { %6237 = vpow2.f32 %v5842_v21  ;;  %3913 = vmatpush.bf16.msra.mxu3 %v3702_v53  ;;  %v3026_v49 = vpack.c.bf16 %v10542_v7, %v10542_v7  ;;  %v6234_v32 = vpop.eup %6233  ;;  %2851 = vst [vmem:[%s7868_s28 + $0xb0] sm:$0xf] %v2823_v40  ;;  %v2638_v43 = vsel %vm8641_vm10, %v2637_v41, %v2633_v58  ;;  %3871 = vmatpush.bf16.msra.mxu0 %v3693_v31 }
 0x286   : > { %6239 = vpow2.f32 %v5843_v11  ;;  %v3031_v16 = vpack.c.bf16 %v10543_v29, %v10543_v29  ;;  %v3032_v9 = vpack.c.bf16 %v10544_v25, %v10544_v25  ;;  %2907 = vst [vmem:[%s7868_s28 + $0xb0] sm:$0xf0] %v2879_v55  ;;  %v2824_v47 = vmul.f32 %v8539_v39, %v2638_v43  ;;  %v10546_v39 = vld [vmem:[#allocation100_spill] sm:$0xff] }
 0x287   : > { %v2880_v17 = vmul.f32 %v2638_v43, %v8455_v33  ;;  %v8699_v6 = vadd.f32 1.0, %v6234_v32  ;;  %v3696_v8 = vsel %vm469_vm0, %v3026_v49, 0  ;;  %5920 = vmatmul.msk.bf16.vlgmr.msra.gmra.mxu2 %vm465_vm1, %v8350_v60  ;;  %v3029_v20 = vpack.c.bf16 %v10545_v22, %v10545_v22  ;;  %v8735_v55 = vpop.f32.mrf.mxu2 }
 0x288   : > { %v6236_v41 = vpop.eup %6235  ;;  %3885 = vmatpush.bf16.msra.mxu1 %v3696_v8  ;;  %v3711_v30 = vsel %vm469_vm0, %v3031_v16, 0  ;;  %v3714_v12 = vsel %vm469_vm0, %v3032_v9, 0  ;;  %v3030_v33 = vpack.c.bf16 %v10546_v39, %v10546_v39  ;;  %v1412_v59 = vadd.f32 %v10548_v42, %v10547_v3  ;;  %2852 = vst [vmem:[%s7868_s28 + $0xb8] sm:$0xf] %v2824_v47  ;;  %5921 = vmatmul.msk.bf16.vlgmr.msra.gmra.mxu3 %vm465_vm1, %v8350_v60  ;;  %v8737_v11 = vpop.f32.mrf.mxu3 }
 0x289   : > { %6241 = vrcp.f32 %v8699_v6  ;;  %3955 = vmatpush.bf16.msrb.mxu2 %v3711_v30  ;;  %2908 = vst [vmem:[%s7868_s28 + $0xb8] sm:$0xf0] %v2880_v17  ;;  %v8721_v35 = vadd.f32 1.0, %v6236_v41  ;;  %3969 = vmatpush.bf16.msrb.mxu3 %v3714_v12  ;;  %v3705_v4 = vsel %vm469_vm0, %v3029_v20, 0  ;;  %v3035_v10 = vpack.c.bf16 %v10549_v51, %v10549_v51  ;;  %v10555_v17 = vld [vmem:[#allocation56_spill] sm:$0xff]  ;;  %v10556_v41 = vld [vmem:[#allocation57_spill] sm:$0xff] }
 0x28a   : > { %v3708_v56 = vsel %vm469_vm0, %v3030_v33, 0  ;;  %v1426_v62 = vadd.f32 %v10551_v14, %v10550_v18  ;;  %v8731_v21 = vadd.f32 %v7677_v13, %v8580_v44  ;;  %3927 = vmatpush.bf16.msrb.mxu0 %v3705_v4  ;;  %v3036_v40 = vpack.c.bf16 %v10552_v2, %v10552_v2  ;;  %v10553_v44 = vld [vmem:[#allocation93_spill] sm:$0xff]  ;;  %v8779_v4 = vpop.f32.mrf.mxu1  ;;  %v10561_v2 = vld [vmem:[#allocation107_spill] sm:$0xff] }
 0x28b   : > { %v6238_v38 = vpop.eup %6237  ;;  %v8741_v58 = vadd.f32 %v7677_v13, %v8604_v19  ;;  %v2072_v31 = vadd.f32 %v8408_v5, %v1412_v59  ;;  %6243 = vrcp.f32 %v8721_v35  ;;  %v3033_v7 = vpack.c.bf16 %v10553_v44, %v10553_v44  ;;  %v10554_v19 = vld [vmem:[#allocation94_spill] sm:$0xff]  ;;  %v8777_v59 = vpop.f32.mrf.mxu0  ;;  %10558 = vst [vmem:[#allocation17_spill] sm:$0xff] %v8779_v4 }
 0x28c   : > { %3941 = vmatpush.bf16.msrb.mxu1 %v3708_v56  ;;  %v6240_v53 = vpop.eup %6239  ;;  %v8747_v49 = vadd.f32 1.0, %v6238_v38  ;;  %v3723_v43 = vsel %vm469_vm0, %v3035_v10, 0  ;;  %v3726_v29 = vsel %vm469_vm0, %v3036_v40, 0  ;;  %v2073_v16 = vadd.f32 %v8410_v27, %v1426_v62  ;;  %10557 = vst [vmem:[#allocation101_spill] sm:$0xff] %v8777_v59 }
 0x28d   : > { %v8749_v32 = vadd.f32 1.0, %v6240_v53  ;;  %4011 = vmatpush.bf16.msra.mxu2 %v3723_v43  ;;  %4025 = vmatpush.bf16.msra.mxu3 %v3726_v29  ;;  %v3034_v5 = vpack.c.bf16 %v10554_v19, %v10554_v19  ;;  %v2649_v9 = vand.u32 2147483647, %v8699_v6  ;;  %v2651_v47 = vand.u32 2147483648, %v8699_v6  ;;  %v10562_v53 = vld [vmem:[#allocation108_spill] sm:$0xff] }
 0x28e   : > { %6245 = vrcp.f32 %v8747_v49  ;;  %v2797_v8 = vadd.f32 %v10555_v17, %v8731_v21  ;;  %v8763_v30 = vadd.f32 %v10556_v41, %v8741_v58  ;;  %v8768_v12 = vadd.f32 %v7677_v13, %v2072_v31 }
 0x28f   : > { %v6242_v25 = vpop.eup %6241  ;;  %6247 = vrcp.f32 %v8749_v32  ;;  %v2664_v22 = vand.u32 2147483647, %v8721_v35  ;;  %v2666_v20 = vand.u32 2147483648, %v8721_v35  ;;  %v3717_v39 = vsel %vm469_vm0, %v3033_v7, 0  ;;  %v8792_v18 = vpop.f32.mrf.mxu2 }
 0x290   : > { %v2641_v27 = vmul.f32 %v6242_v25, %v8699_v6  ;;  %v8774_v3 = vadd.f32 %v7677_v13, %v2073_v16  ;;  %vm2645_vm14 = vweird.f32 %v8699_v6  ;;  %v3720_v56 = vsel %vm469_vm0, %v3034_v5, 0  ;;  %v8794_v14 = vpop.f32.mrf.mxu3 }
 0x291   : > { %v6244_v33 = vpop.eup %6243  ;;  %vm8782_vm15 = vcmp.eq.f32.partialorder %v2649_v9, 8.507059e+37  ;;  %v2652_v10 = vor.u32 1.1754944e-38, %v2651_v47  ;;  %vm2660_vm2 = vweird.f32 %v8721_v35  ;;  %vm2646_vm3 = vweird.f32 %v6242_v25 }
 0x292   : > { %v2642_v42 = vsub.f32 1.0, %v2641_v27  ;;  %v2656_v38 = vmul.f32 %v6244_v33, %v8721_v35  ;;  %5918 = vmatmul.msk.bf16.vlgmr.msra.gmra.mxu0 %vm465_vm1, %v8350_v60  ;;  %5919 = vmatmul.msk.bf16.vlgmr.msra.gmra.mxu1 %vm465_vm1, %v8350_v60  ;;  %v3039_v40 = vpack.c.bf16 %v10561_v2, %v10561_v2  ;;  %v3040_v31 = vpack.c.bf16 %v10562_v53, %v10562_v53  ;;  %vm2647_vm6 = vmor %vm2645_vm14, %vm2646_vm3 }
 0x293   : > { %3983 = vmatpush.bf16.msra.mxu0 %v3717_v39  ;;  %3997 = vmatpush.bf16.msra.mxu1 %v3720_v56  ;;  %vm8800_vm4 = vcmp.eq.f32.partialorder %v2664_v22, 8.507059e+37  ;;  %v2667_v29 = vor.u32 1.1754944e-38, %v2666_v20  ;;  %vm2675_vm5 = vweird.f32 %v8747_v49  ;;  %v2679_v9 = vand.u32 2147483647, %v8747_v49 }
 0x294   : > { %v2643_v62 = vmul.f32 %v6242_v25, %v2642_v42  ;;  %v6246_v44 = vpop.eup %6245  ;;  %v2657_v7 = vsub.f32 1.0, %v2656_v38  ;;  %v3735_v47 = vsel %vm469_vm0, %v3039_v40, 0  ;;  %vm2661_vm7 = vweird.f32 %v6244_v33 }
 0x295   : > { %v6248_v16 = vpop.eup %6247  ;;  %v2671_v5 = vmul.f32 %v6246_v44, %v8747_v49  ;;  %v3738_v27 = vsel %vm469_vm0, %v3040_v31, 0  ;;  %v2681_v39 = vand.u32 2147483648, %v8747_v49  ;;  %vm2690_vm8 = vweird.f32 %v8749_v32  ;;  %vm2662_vm9 = vmor %vm2660_vm2, %vm2661_vm7 }
 0x296   : > { %v2644_v19 = vadd.f32 %v6242_v25, %v2643_v62  ;;  %v2658_v17 = vmul.f32 %v6244_v33, %v2657_v7  ;;  %v2686_v41 = vmul.f32 %v6248_v16, %v8749_v32  ;;  %v2696_v38 = vand.u32 2147483648, %v8749_v32  ;;  %v8834_v7 = vpop.f32.mrf.mxu0 }
 0x297   : > { %5924 = vmatmul.msk.bf16.vlgmr.msrb.gmra.mxu2 %vm465_vm1, %v8350_v60  ;;  %v2672_v20 = vsub.f32 1.0, %v2671_v5  ;;  %vm2676_vm10 = vweird.f32 %v6246_v44  ;;  %vm2691_vm11 = vweird.f32 %v6248_v16  ;;  %v2694_v40 = vand.u32 2147483647, %v8749_v32  ;;  %v8827_v53 = vpop.f32.mrf.mxu2  ;;  %10567 = vst [vmem:[#allocation103_spill] sm:$0xff] %v8834_v7 }
 0x298   : > { %v2648_v22 = vsel %vm2647_vm6, %v6242_v25, %v2644_v19  ;;  %4067 = vmatpush.bf16.msrb.mxu2 %v3735_v47  ;;  %v2659_v42 = vadd.f32 %v6244_v33, %v2658_v17  ;;  %v2687_v56 = vsub.f32 1.0, %v2686_v41  ;;  %5925 = vmatmul.msk.bf16.vlgmr.msrb.gmra.mxu3 %vm465_vm1, %v8350_v60  ;;  %10565 = vst [vmem:[#allocation102_spill] sm:$0xff] %v8827_v53  ;;  %v8829_v31 = vpop.f32.mrf.mxu3  ;;  %v2682_v35 = vor.u32 1.1754944e-38, %v2681_v39  ;;  %v8836_v19 = vpop.f32.mrf.mxu1  ;;  %vm2677_vm12 = vmor %vm2675_vm5, %vm2676_vm10 }
 0x299   : > { %v2653_v6 = vsel %vm8782_vm15, %v2652_v10, %v2648_v22  ;;  %v2673_v2 = vmul.f32 %v6246_v44, %v2672_v20  ;;  %4081 = vmatpush.bf16.msrb.mxu3 %v3738_v27  ;;  %10566 = vst [vmem:[#allocation18_spill] sm:$0xff] %v8829_v31  ;;  %v10571_v27 = vld [vmem:[#allocation54_spill] sm:$0xff]  ;;  %vm2680_vm13 = vcmp.eq.f32.partialorder %v2679_v9, 8.507059e+37  ;;  %vm2692_vm14 = vmor %vm2690_vm8, %vm2691_vm11  ;;  %vm2695_vm15 = vcmp.eq.f32.partialorder %v2694_v40, 8.507059e+37 }
 0x29a   : > { %v2825_v62 = vmul.f32 %v2797_v8, %v2653_v6  ;;  %v2881_v25 = vmul.f32 %v2653_v6, %v8731_v21  ;;  %v2663_v51 = vsel %vm2662_vm9, %v6244_v33, %v2659_v42  ;;  %v2688_v10 = vmul.f32 %v6248_v16, %v2687_v56  ;;  %10568 = vst [vmem:[#allocation19_spill] sm:$0xff] %v8836_v19  ;;  %v10569_v33 = vld [vmem:[#allocation111_spill] sm:$0xff] }
 0x29b   : > { %v2668_v21 = vsel %vm8800_vm4, %v2667_v29, %v2663_v51  ;;  %v2674_v8 = vadd.f32 %v6246_v44, %v2673_v2  ;;  %v3037_v5 = vpack.c.bf16 %v10569_v33, %v10569_v33  ;;  %v10570_v29 = vld [vmem:[#allocation114_spill] sm:$0xff]  ;;  %v2799_v22 = vadd.f32 %v10571_v27, %v8768_v12 }
 0x29c   : > { %2853 = vst [vmem:[%s7868_s28 + $0xc0] sm:$0xf] %v2825_v62  ;;  %v2826_v47 = vmul.f32 %v8763_v30, %v2668_v21  ;;  %v2882_v17 = vmul.f32 %v2668_v21, %v8741_v58  ;;  %v2689_v43 = vadd.f32 %v6248_v16, %v2688_v10  ;;  %v3038_v41 = vpack.c.bf16 %v10570_v29, %v10570_v29  ;;  %v10572_v30 = vld [vmem:[#allocation55_spill] sm:$0xff] }
 0x29d   : > { %2909 = vst [vmem:[%s7868_s28 + $0xc0] sm:$0xf0] %v2881_v25  ;;  %v2678_v20 = vsel %vm2677_vm12, %v6246_v44, %v2674_v8  ;;  %v2697_v58 = vor.u32 1.1754944e-38, %v2696_v38  ;;  %v2800_v49 = vadd.f32 %v10572_v30, %v8774_v3  ;;  %v3729_v62 = vsel %vm469_vm0, %v3037_v5, 0  ;;  %v10575_v25 = vld [vmem:[#allocation95_spill] sm:$0xff]  ;;  %v10581_v5 = vld [vmem:[#allocation105_spill] sm:$0xff] }
 0x29e   : > { %2854 = vst [vmem:[%s7868_s28 + $0xc8] sm:$0xf] %v2826_v47  ;;  %v2683_v39 = vsel %vm2680_vm13, %v2682_v35, %v2678_v20  ;;  %v2693_v6 = vsel %vm2692_vm14, %v6248_v16, %v2689_v43  ;;  %v3732_v38 = vsel %vm469_vm0, %v3038_v41, 0  ;;  %v3043_v2 = vpack.c.bf16 %v10575_v25, %v10575_v25  ;;  %v8878_v40 = vpop.f32.mrf.mxu0  ;;  %v8911_v30 = vld [vmem:[%s6576_s6 + $0x90] sm:$0xff] }
 0x29f   : > { %2910 = vst [vmem:[%s7868_s28 + $0xc8] sm:$0xf0] %v2882_v17  ;;  %v2827_v42 = vmul.f32 %v2799_v22, %v2683_v39  ;;  %v2883_v44 = vmul.f32 %v2683_v39, %v8768_v12  ;;  %v2698_v9 = vsel %vm2695_vm15, %v2697_v58, %v2693_v6  ;;  %v8867_v16 = vpop.f32.mrf.mxu2  ;;  %v3041_v47 = vpack.c.bf16 %v10581_v5, %v10581_v5  ;;  %v10582_v17 = vld [vmem:[#allocation106_spill] sm:$0xff]  ;;  %v8908_v58 = vld [vmem:[%s6576_s6 + $0x98] sm:$0xff] }
 0x2a0   : > { %v2828_v56 = vmul.f32 %v2800_v49, %v2698_v9  ;;  %v2884_v32 = vmul.f32 %v2698_v9, %v8774_v3  ;;  %10573 = vst [vmem:[#allocation104_spill] sm:$0xff] %v8867_v16  ;;  %v8869_v12 = vpop.f32.mrf.mxu3  ;;  %v10576_v3 = vld [vmem:[#allocation96_spill] sm:$0xff]  ;;  %v3747_v10 = vsel %vm469_vm0, %v3043_v2, 0  ;;  %v8880_v21 = vpop.f32.mrf.mxu1  ;;  %v3042_v43 = vpack.c.bf16 %v10582_v17, %v10582_v17 }
 0x2a1   : > { %2855 = vst [vmem:[%s7868_s28 + $0xd0] sm:$0xf] %v2827_v42  ;;  %v3044_v51 = vpack.c.bf16 %v10576_v3, %v10576_v3  ;;  %v3741_v27 = vsel %vm469_vm0, %v3041_v47, 0  ;;  %v8938_v47 = vld [vmem:[%s6576_s6 + $0xa8] sm:$0xff]  ;;  %v8941_v17 = vld [vmem:[%s6576_s6 + $0xa0] sm:$0xff] }
 0x2a2   : > { %2911 = vst [vmem:[%s7868_s28 + $0xd0] sm:$0xf0] %v2883_v44  ;;  %5922 = vmatmul.msk.bf16.vlgmr.msrb.gmra.mxu0 %vm465_vm1, %v8350_v60  ;;  %5923 = vmatmul.msk.bf16.vlgmr.msrb.gmra.mxu1 %vm465_vm1, %v8350_v60  ;;  %v3744_v22 = vsel %vm469_vm0, %v3042_v43, 0 }
 0x2a3   : > { %10574 = vst [vmem:[#allocation20_spill] sm:$0xff] %v8869_v12  ;;  %4039 = vmatpush.bf16.msrb.mxu0 %v3729_v62  ;;  %4053 = vmatpush.bf16.msrb.mxu1 %v3732_v38  ;;  %v3750_v8 = vsel %vm469_vm0, %v3044_v51, 0 }
 0x2a4   : > { %2856 = vst [vmem:[%s7868_s28 + $0xd8] sm:$0xf] %v2828_v56 }
 0x2a5   : > { %2912 = vst [vmem:[%s7868_s28 + $0xd8] sm:$0xf0] %v2884_v32 }
 0x2a6   : > { %10577 = vst [vmem:[#allocation109_spill] sm:$0xff] %v8878_v40  ;;  %v8895_v29 = vpop.f32.mrf.mxu0 }
 0x2a7   : > { %10578 = vst [vmem:[#allocation21_spill] sm:$0xff] %v8880_v21  ;;  %5928 = vmatmul.msk.bf16.vlgmr.msra.gmra.mxu2 %vm465_vm1, %v8350_v60  ;;  %v8887_v35 = vpop.f32.mrf.mxu2 }
 0x2a8   : > { %4123 = vmatpush.bf16.msra.mxu2 %v3747_v10  ;;  %5929 = vmatmul.msk.bf16.vlgmr.msra.gmra.mxu3 %vm465_vm1, %v8350_v60  ;;  %10579 = vst [vmem:[#allocation110_spill] sm:$0xff] %v8887_v35  ;;  %v8889_v33 = vpop.f32.mrf.mxu3  ;;  %v8897_v41 = vpop.f32.mrf.mxu1 }
 0x2a9   : > { %4137 = vmatpush.bf16.msra.mxu3 %v3750_v8  ;;  %10580 = vst [vmem:[#allocation22_spill] sm:$0xff] %v8889_v33 }
 0x2aa   : > { %10583 = vst [vmem:[#allocation112_spill] sm:$0xff] %v8895_v29 }
 0x2ab   : > { %10584 = vst [vmem:[#allocation23_spill] sm:$0xff] %v8897_v41 }
 0x2ac   : > { %4174 = vst [vmem:[#allocation1 + $0x10] ss:$2 sm:$0xff] %v8908_v58 }
 0x2ad   : > { %4172 = vst [vmem:[#allocation1] ss:$2 sm:$0xff] %v8911_v30 }
 0x2ae   : > { %v8921_v39 = vpop.f32.mrf.mxu0  ;;  %4178 = vst [vmem:[#allocation1 + $0x30] ss:$2 sm:$0xff] %v8938_v47 }
 0x2af   : > { %v8905_v20 = vpop.f32.mrf.mxu2  ;;  %10587 = vst [vmem:[#allocation25_spill] sm:$0xff] %v8921_v39 }
 0x2b0   : > { %10585 = vst [vmem:[#allocation113_spill] sm:$0xff] %v8905_v20  ;;  %v8915_v49 = vpop.f32.mrf.mxu3  ;;  %v8923_v6 = vpop.f32.mrf.mxu1 }
 0x2b1   : > { %10586 = vst [vmem:[#allocation24_spill] sm:$0xff] %v8915_v49 }
 0x2b2   : > { %5926 = vmatmul.msk.bf16.vlgmr.msra.gmra.mxu0 %vm465_vm1, %v8350_v60  ;;  %5927 = vmatmul.msk.bf16.vlgmr.msra.gmra.mxu1 %vm465_vm1, %v8350_v60  ;;  %10588 = vst [vmem:[#allocation26_spill] sm:$0xff] %v8923_v6 }
 0x2b3   : > { %4095 = vmatpush.bf16.msra.mxu0 %v3741_v27  ;;  %4109 = vmatpush.bf16.msra.mxu1 %v3744_v22  ;;  %v4181_v42 = vld.sshfl [vmem:[#allocation1 + $0x10] sm:$0xff pattern:$0x75316420]  ;;  %v4182_v44 = vld.sshfl [vmem:[#allocation1 + $0x18] sm:$0xff pattern:$0x75316420] }
 0x2b4   : > { %v4247_v9 = vpack.c.bf16 %v4181_v42, %v4181_v42  ;;  %v4248_v56 = vpack.c.bf16 %v4182_v44, %v4182_v44  ;;  %v4179_v32 = vld.sshfl [vmem:[#allocation1] sm:$0xff pattern:$0x75316420]  ;;  %v4180_v62 = vld.sshfl [vmem:[#allocation1 + $0x8] sm:$0xff pattern:$0x75316420] }
 0x2b5   : > { %v4245_v25 = vpack.c.bf16 %v4179_v32, %v4179_v32  ;;  %v4246_v2 = vpack.c.bf16 %v4180_v62, %v4180_v62  ;;  %4176 = vst [vmem:[#allocation1 + $0x20] ss:$2 sm:$0xff] %v8941_v17  ;;  %v4185_v44 = vld.sshfl [vmem:[#allocation1 + $0x30] sm:$0xff pattern:$0x75316420] }
 0x2b6   : > { %v4290_v3 = vsel %vm469_vm0, %v4247_v9, 0  ;;  %v4293_v51 = vsel %vm469_vm0, %v4248_v56, 0  ;;  %v8943_v43 = vpop.f32.mrf.mxu0  ;;  %v4186_v9 = vld.sshfl [vmem:[#allocation1 + $0x38] sm:$0xff pattern:$0x75316420]  ;;  %v4251_v56 = vpack.c.bf16 %v4185_v44, %v4185_v44 }
 0x2b7   : > { %5932 = vmatmul.msk.bf16.vlgmr.msrb.gmra.mxu2 %vm465_vm1, %v8350_v60  ;;  %v8925_v38 = vpop.f32.mrf.mxu2  ;;  %v4284_v8 = vsel %vm469_vm0, %v4245_v25, 0  ;;  %v4287_v5 = vsel %vm469_vm0, %v4246_v2, 0  ;;  %10591 = vst [vmem:[#allocation29_spill] sm:$0xff] %v8943_v43  ;;  %v4252_v32 = vpack.c.bf16 %v4186_v9, %v4186_v9 }
 0x2b8   : > { %5933 = vmatmul.msk.bf16.vlgmr.msrb.gmra.mxu3 %vm465_vm1, %v8350_v60  ;;  %10589 = vst [vmem:[#allocation27_spill] sm:$0xff] %v8925_v38  ;;  %4402 = vmatpush.bf16.msrb.mxu2 %v4290_v3  ;;  %v8929_v10 = vpop.f32.mrf.mxu3  ;;  %v8945_v27 = vpop.f32.mrf.mxu1 }
 0x2b9   : > { %4416 = vmatpush.bf16.msrb.mxu3 %v4293_v51  ;;  %10590 = vst [vmem:[#allocation28_spill] sm:$0xff] %v8929_v10 }
 0x2ba   : > { %10592 = vst [vmem:[#allocation115_spill] sm:$0xff] %v8945_v27 }
 0x2bc   : > { %v4183_v62 = vld.sshfl [vmem:[#allocation1 + $0x20] sm:$0xff pattern:$0x75316420]  ;;  %v4184_v25 = vld.sshfl [vmem:[#allocation1 + $0x28] sm:$0xff pattern:$0x75316420] }
 0x2bd   : > { %v4249_v2 = vpack.c.bf16 %v4183_v62, %v4183_v62  ;;  %v4250_v3 = vpack.c.bf16 %v4184_v25, %v4184_v25  ;;  %v6362_v62 = vld [vmem:[%s10243_s1] sm:$0xff]  ;;  %v8981_v25 = vld [vmem:[%s6576_s6 + $0xb0] sm:$0xff] }
 0x2be   : > { %v8957_v51 = vpop.f32.mrf.mxu0  ;;  %4187 = vst [vmem:[#allocation1] ss:$2 sm:$0xff] %v8981_v25 }
 0x2bf   : > { %v8951_v22 = vpop.f32.mrf.mxu2  ;;  %10595 = vst [vmem:[#allocation31_spill] sm:$0xff] %v8957_v51  ;;  %v4296_v44 = vsel %vm469_vm0, %v4249_v2, 0  ;;  %v4299_v9 = vsel %vm469_vm0, %v4250_v3, 0 }
 0x2c0   : > { %10593 = vst [vmem:[#allocation30_spill] sm:$0xff] %v8951_v22  ;;  %v8955_v42 = vpop.f32.mrf.mxu3 }
 0x2c1   : > { %10594 = vst [vmem:[#allocation116_spill] sm:$0xff] %v8955_v42 }
 0x2c2   : > { %5930 = vmatmul.msk.bf16.vlgmr.msrb.gmra.mxu0 %vm465_vm1, %v8350_v60  ;;  %5931 = vmatmul.msk.bf16.vlgmr.msrb.gmra.mxu1 %vm465_vm1, %v8350_v60 }
 0x2c3   : > { %4374 = vmatpush.bf16.msrb.mxu0 %v4284_v8  ;;  %4388 = vmatpush.bf16.msrb.mxu1 %v4287_v5  ;;  %v8959_v8 = vpop.f32.mrf.mxu1  ;;  %v4302_v5 = vsel %vm469_vm0, %v4251_v56, 0  ;;  %v8975_v56 = vld [vmem:[%s10243_s1 + $0x10] sm:$0xff] }
 0x2c4   : > { %10596 = vst [vmem:[#allocation32_spill] sm:$0xff] %v8959_v8 }
 0x2c5   : > { %v4192_v8 = vld.sshfl [vmem:[#allocation1 + $0x8] sm:$0xff pattern:$0x75316420] }
 0x2c6   : > { %v4254_v22 = vpack.c.bf16 %v4192_v8, %v4192_v8 }
 0x2c7   : > { %5936 = vmatmul.msk.bf16.vlgmr.msra.gmra.mxu2 %vm465_vm1, %v8350_v60  ;;  %v8963_v42 = vpop.f32.mrf.mxu2 }
 0x2c8   : > { %5937 = vmatmul.msk.bf16.vlgmr.msra.gmra.mxu3 %vm465_vm1, %v8350_v60  ;;  %v4305_v60 = vsel %vm469_vm0, %v4252_v32, 0  ;;  %4458 = vmatpush.bf16.msra.mxu2 %v4302_v5  ;;  %10597 = vst [vmem:[#allocation33_spill] sm:$0xff] %v8963_v42  ;;  %v8978_v32 = vld [vmem:[%s6576_s6 + $0xb8] sm:$0xff]  ;;  %v8983_v2 = vpop.f32.mrf.mxu3  ;;  %v4311_v43 = vsel %vm469_vm0, %v4254_v22, 0 }
 0x2c9   : > { %4472 = vmatpush.bf16.msra.mxu3 %v4305_v60  ;;  %10598 = vst [vmem:[#allocation117_spill] sm:$0xff] %v8983_v2  ;;  %v4191_v42 = vld.sshfl [vmem:[#allocation1] sm:$0xff pattern:$0x75316420] }
 0x2ca   : > { %4188 = vst [vmem:[#allocation1 + $0x10] ss:$2 sm:$0xff] %v8978_v32  ;;  %v4253_v51 = vpack.c.bf16 %v4191_v42, %v4191_v42  ;;  %v9012_v42 = vld [vmem:[%s6576_s6 + $0xc8] sm:$0xff] }
 0x2cb   : > { %4190 = vst [vmem:[#allocation1 + $0x30] ss:$2 sm:$0xff] %v9012_v42 }
 0x2cc   : > { %v8989_v3 = vpop.f32.mrf.mxu0 }
 0x2cd   : > { %10599 = vst [vmem:[#allocation34_spill] sm:$0xff] %v8989_v3 }
 0x2cf   : > { %v8991_v5 = vpop.f32.mrf.mxu1  ;;  %v8995_v60 = vpop.f32.mrf.mxu2 }
 0x2d0   : > { %10600 = vst [vmem:[#allocation118_spill] sm:$0xff] %v8991_v5  ;;  %v8997_v27 = vpop.f32.mrf.mxu3 }
 0x2d1   : > { %10601 = vst [vmem:[#allocation35_spill] sm:$0xff] %v8995_v60  ;;  %v4194_v2 = vld.sshfl [vmem:[#allocation1 + $0x18] sm:$0xff pattern:$0x75316420]  ;;  %v4308_v60 = vsel %vm469_vm0, %v4253_v51, 0  ;;  %v9024_v51 = vld [vmem:[%s6576_s6 + $0xc0] sm:$0xff] }
 0x2d2   : > { %5934 = vmatmul.msk.bf16.vlgmr.msra.gmra.mxu0 %vm465_vm1, %v6362_v62  ;;  %5935 = vmatmul.msk.bf16.vlgmr.msra.gmra.mxu1 %vm465_vm1, %v6362_v62  ;;  %v4193_v62 = vld.sshfl [vmem:[#allocation1 + $0x10] sm:$0xff pattern:$0x75316420]  ;;  %10602 = vst [vmem:[#allocation119_spill] sm:$0xff] %v8997_v27 }
 0x2d3   : > { %4430 = vmatpush.bf16.msra.mxu0 %v4296_v44  ;;  %4444 = vmatpush.bf16.msra.mxu1 %v4299_v9  ;;  %v4255_v44 = vpack.c.bf16 %v4193_v62, %v4193_v62  ;;  %v4256_v9 = vpack.c.bf16 %v4194_v2, %v4194_v2  ;;  %4189 = vst [vmem:[#allocation1 + $0x20] ss:$2 sm:$0xff] %v9024_v51 }
 0x2d4   : > { %v9003_v62 = vpop.f32.mrf.mxu0 }
 0x2d5   : > { %v4314_v3 = vsel %vm469_vm0, %v4255_v44, 0  ;;  %v4317_v5 = vsel %vm469_vm0, %v4256_v9, 0  ;;  %10603 = vst [vmem:[#allocation42_spill] sm:$0xff] %v9003_v62 }
 0x2d7   : > { %5960 = vmatmul.msk.bf16.vlgmr.msrb.gmra.mxu2 %vm465_vm1, %v8975_v56  ;;  %v9005_v2 = vpop.f32.mrf.mxu1 }
 0x2d8   : > { %5961 = vmatmul.msk.bf16.vlgmr.msrb.gmra.mxu3 %vm465_vm1, %v8975_v56  ;;  %4514 = vmatpush.bf16.msrb.mxu2 %v4314_v3  ;;  %10604 = vst [vmem:[#allocation43_spill] sm:$0xff] %v9005_v2  ;;  %v4197_v3 = vld.sshfl [vmem:[#allocation1 + $0x30] sm:$0xff pattern:$0x75316420] }
 0x2d9   : > { %4528 = vmatpush.bf16.msrb.mxu3 %v4317_v5  ;;  %v4198_v5 = vld.sshfl [vmem:[#allocation1 + $0x38] sm:$0xff pattern:$0x75316420]  ;;  %v4259_v44 = vpack.c.bf16 %v4197_v3, %v4197_v3  ;;  %v9042_v3 = vld [vmem:[%s6576_s6 + $0xd8] sm:$0xff] }
 0x2da   : > { %v9015_v8 = vpop.f32.mrf.mxu2  ;;  %v4260_v9 = vpack.c.bf16 %v4198_v5, %v4198_v5  ;;  %v4195_v10 = vld.sshfl [vmem:[#allocation1 + $0x20] sm:$0xff pattern:$0x75316420]  ;;  %v4196_v38 = vld.sshfl [vmem:[#allocation1 + $0x28] sm:$0xff pattern:$0x75316420] }
 0x2db   : > { %v4326_v27 = vsel %vm469_vm0, %v4259_v44, 0  ;;  %v4257_v6 = vpack.c.bf16 %v4195_v10, %v4195_v10  ;;  %v4258_v39 = vpack.c.bf16 %v4196_v38, %v4196_v38  ;;  %10605 = vst [vmem:[#allocation44_spill] sm:$0xff] %v9042_v3  ;;  %v9058_v44 = vld [vmem:[%s6576_s6 + $0xd0] sm:$0xff] }
 0x2dc   : > { %v4329_v2 = vsel %vm469_vm0, %v4260_v9, 0  ;;  %4200 = vst [vmem:[#allocation1 + $0x10] ss:$2 sm:$0xff] %v9042_v3 }
 0x2dd   : > { %v9019_v22 = vpop.f32.mrf.mxu3  ;;  %v4320_v5 = vsel %vm469_vm0, %v4257_v6, 0  ;;  %10606 = vst [vmem:[#allocation45_spill] sm:$0xff] %v9058_v44 }
 0x2de   : > { %4199 = vst [vmem:[#allocation1] ss:$2 sm:$0xff] %v9058_v44 }
 0x2e2   : > { %5958 = vmatmul.msk.bf16.vlgmr.msrb.gmra.mxu0 %vm465_vm1, %v8975_v56  ;;  %5959 = vmatmul.msk.bf16.vlgmr.msrb.gmra.mxu1 %vm465_vm1, %v8975_v56  ;;  %v9033_v62 = vpop.f32.mrf.mxu2 }
 0x2e3   : > { %4486 = vmatpush.bf16.msrb.mxu0 %v4308_v60  ;;  %4500 = vmatpush.bf16.msrb.mxu1 %v4311_v43  ;;  %v9027_v60 = vpop.f32.mrf.mxu0  ;;  %v9029_v43 = vpop.f32.mrf.mxu1  ;;  %v4206_v6 = vld.sshfl [vmem:[#allocation1 + $0x18] sm:$0xff pattern:$0x75316420] }
 0x2e5   : > { %v9035_v49 = vpop.f32.mrf.mxu3  ;;  %v4203_v35 = vld.sshfl [vmem:[#allocation1] sm:$0xff pattern:$0x75316420]  ;;  %v4204_v21 = vld.sshfl [vmem:[#allocation1 + $0x8] sm:$0xff pattern:$0x75316420] }
 0x2e6   : > { %v4261_v12 = vpack.c.bf16 %v4203_v35, %v4203_v35  ;;  %v4262_v40 = vpack.c.bf16 %v4204_v21, %v4204_v21 }
 0x2e7   : > { %5964 = vmatmul.msk.bf16.vlgmr.msra.gmra.mxu2 %vm465_vm1, %v8975_v56 }
 0x2e8   : > { %5965 = vmatmul.msk.bf16.vlgmr.msra.gmra.mxu3 %vm465_vm1, %v8975_v56  ;;  %4570 = vmatpush.bf16.msra.mxu2 %v4326_v27  ;;  %v4323_v27 = vsel %vm469_vm0, %v4258_v39, 0  ;;  %v4205_v39 = vld.sshfl [vmem:[#allocation1 + $0x10] sm:$0xff pattern:$0x75316420] }
 0x2e9   : > { %4584 = vmatpush.bf16.msra.mxu3 %v4329_v2 }
 0x2eb   : > { %v9047_v2 = vpop.f32.mrf.mxu0  ;;  %v9049_v10 = vpop.f32.mrf.mxu1 }
 0x2f2   : > { %5962 = vmatmul.msk.bf16.vlgmr.msra.gmra.mxu0 %vm465_vm1, %v8975_v56  ;;  %5963 = vmatmul.msk.bf16.vlgmr.msra.gmra.mxu1 %vm465_vm1, %v8975_v56 }
 0x2f3   : > { %4542 = vmatpush.bf16.msra.mxu0 %v4320_v5  ;;  %4556 = vmatpush.bf16.msra.mxu1 %v4323_v27  ;;  %v4263_v5 = vpack.c.bf16 %v4205_v39, %v4205_v39  ;;  %v4264_v27 = vpack.c.bf16 %v4206_v6, %v4206_v6  ;;  %v9076_v39 = vld [vmem:[%s6576_s6 + $0xe8] sm:$0xff]  ;;  %v4335_v6 = vsel %vm469_vm0, %v4262_v40, 0 }
 0x2f4   : > { %10607 = vst [vmem:[#allocation60_spill] sm:$0xff] %v9076_v39 }
 0x2f5   : > { %v4338_v20 = vsel %vm469_vm0, %v4263_v5, 0  ;;  %v4341_v41 = vsel %vm469_vm0, %v4264_v27, 0  ;;  %4202 = vst [vmem:[#allocation1 + $0x30] ss:$2 sm:$0xff] %v9076_v39  ;;  %v9092_v5 = vld [vmem:[%s6576_s6 + $0xe0] sm:$0xff] }
 0x2f6   : > { %10608 = vst [vmem:[#allocation61_spill] sm:$0xff] %v9092_v5 }
 0x2f7   : > { %5968 = vmatmul.msk.bf16.vlgmr.msrb.gmra.mxu2 %vm465_vm1, %v8975_v56  ;;  %4201 = vst [vmem:[#allocation1 + $0x20] ss:$2 sm:$0xff] %v9092_v5 }
 0x2f8   : > { %5969 = vmatmul.msk.bf16.vlgmr.msrb.gmra.mxu3 %vm465_vm1, %v8975_v56  ;;  %v9055_v38 = vpop.f32.mrf.mxu2  ;;  %4626 = vmatpush.bf16.msrb.mxu2 %v4338_v20  ;;  %v4332_v20 = vsel %vm469_vm0, %v4261_v12, 0 }
 0x2f9   : > { %4640 = vmatpush.bf16.msrb.mxu3 %v4341_v41 }
 0x2fb   : > { %v9061_v9 = vpop.f32.mrf.mxu3 }
 0x2fc   : > { %v4209_v12 = vld.sshfl [vmem:[#allocation1 + $0x30] sm:$0xff pattern:$0x75316420]  ;;  %v4210_v40 = vld.sshfl [vmem:[#allocation1 + $0x38] sm:$0xff pattern:$0x75316420] }
 0x2fd   : > { %v4268_v39 = vpack.c.bf16 %v4210_v40, %v4210_v40  ;;  %5409 = vst [vmem:[#allocation1 + $0x30] ss:$2 sm:$0xff] %v8938_v47 }
 0x2fe   : > { %v4207_v5 = vld.sshfl [vmem:[#allocation1 + $0x20] sm:$0xff pattern:$0x75316420]  ;;  %v4208_v19 = vld.sshfl [vmem:[#allocation1 + $0x28] sm:$0xff pattern:$0x75316420] }
 0x2ff   : > { %v9065_v29 = vpop.f32.mrf.mxu0  ;;  %v9067_v3 = vpop.f32.mrf.mxu1  ;;  %v4353_v16 = vsel %vm469_vm0, %v4268_v39, 0  ;;  %v4265_v53 = vpack.c.bf16 %v4207_v5, %v4207_v5  ;;  %5407 = vst [vmem:[#allocation1 + $0x20] ss:$2 sm:$0xff] %v8941_v17  ;;  %v9130_v5 = vld [vmem:[%s6576_s6 + $0xf0] sm:$0xff] }
 0x300   : > { %v9069_v33 = vpop.f32.mrf.mxu2  ;;  %10613 = vst [vmem:[#allocation46_spill] sm:$0xff] %v9130_v5 }
 0x301   : > { %v4344_v47 = vsel %vm469_vm0, %v4265_v53, 0  ;;  %4211 = vst [vmem:[#allocation1] ss:$2 sm:$0xff] %v9130_v5 }
 0x302   : > { %5966 = vmatmul.msk.bf16.vlgmr.msrb.gmra.mxu0 %vm465_vm1, %v8975_v56  ;;  %5967 = vmatmul.msk.bf16.vlgmr.msrb.gmra.mxu1 %vm465_vm1, %v8975_v56 }
 0x303   : > { %v9078_v41 = vpop.f32.mrf.mxu3  ;;  %4598 = vmatpush.bf16.msrb.mxu0 %v4332_v20  ;;  %4612 = vmatpush.bf16.msrb.mxu1 %v4335_v6  ;;  %v4267_v6 = vpack.c.bf16 %v4209_v12, %v4209_v12  ;;  %v4266_v12 = vpack.c.bf16 %v4208_v19, %v4208_v19 }
 0x305   : > { %v4350_v13 = vsel %vm469_vm0, %v4267_v6, 0  ;;  %v4347_v39 = vsel %vm469_vm0, %v4266_v12, 0 }
 0x307   : > { %5972 = vmatmul.msk.bf16.vlgmr.msra.gmra.mxu2 %vm465_vm1, %v8975_v56  ;;  %v9085_v21 = vpop.f32.mrf.mxu0  ;;  %v9087_v35 = vpop.f32.mrf.mxu1 }
 0x308   : > { %5973 = vmatmul.msk.bf16.vlgmr.msra.gmra.mxu3 %vm465_vm1, %v8975_v56  ;;  %4682 = vmatpush.bf16.msra.mxu2 %v4350_v13  ;;  %v9114_v13 = vld [vmem:[%s6576_s6 + $0xf8] sm:$0xff]  ;;  %v4214_v5 = vld.sshfl [vmem:[#allocation1 + $0x8] sm:$0xff pattern:$0x75316420]  ;;  %s6084_s6 = smul.u32 448, %s6507_s16 }
 0x309   : > { %4696 = vmatpush.bf16.msra.mxu3 %v4353_v16  ;;  %10609 = vst [vmem:[#allocation58_spill] sm:$0xff] %v9114_v13 }
 0x30a   : > { %v9094_v27 = vpop.f32.mrf.mxu2  ;;  %4212 = vst [vmem:[#allocation1 + $0x10] ss:$2 sm:$0xff] %v9114_v13  ;;  %s5630_s17 = scalar_lea.hbm %s10245_s3, %s6084_s6 }
 0x30b   : > { %v9097_v20 = vpop.f32.mrf.mxu3  ;;  %s5633_s20 = sshll.u32 %s5630_s17, 4  ;;  %s5634_s20 = int_to_ptr.hbm [resolvable:$true] %s5633_s20 }
 0x30c   : > { %s6407_s27 = sshra.s32 %s5634_s20, 4  ;;  %s6408_s27 = int_to_ptr.hbm [resolvable:$true] %s6407_s27 }
 0x30d   : > { %s6409_s26 = scalar_lea.hbm %s6408_s27, 448  ;;  %p6414_p0 = scmp.lt.s32.totalorder %s6408_s27, %s10245_s3 }
 0x30e   : > { %p6410_p6 = scmp.ne.s32.totalorder %s6408_s27, %s6409_s26  ;;  %p6415_p1 = scmp.lt.s32.totalorder %s6413_s23, %s6409_s26 }
 0x30f   : > { %v9102_v44 = vpop.f32.mrf.mxu0  ;;  %v9104_v31 = vpop.f32.mrf.mxu1 }
 0x310   : > { %p6411_p9 = pnand %p6410_p6, %p6536_p11  ;;  %p6416_p3 = por %p6415_p1, %p6414_p0 }
 0x311   : > { %v4215_v53 = vld.sshfl [vmem:[#allocation1 + $0x10] sm:$0xff pattern:$0x75316420]  ;;  %v4216_v6 = vld.sshfl [vmem:[#allocation1 + $0x18] sm:$0xff pattern:$0x75316420] }
 0x312   : > { %v9106_v7 = vpop.f32.mrf.mxu2  ;;  %5970 = vmatmul.msk.bf16.vlgmr.msra.gmra.mxu0 %vm465_vm1, %v8975_v56  ;;  %5971 = vmatmul.msk.bf16.vlgmr.msra.gmra.mxu1 %vm465_vm1, %v8975_v56  ;;  %5405 = vst [vmem:[#allocation1 + $0x10] ss:$2 sm:$0xff] %v8908_v58  ;;  %p6412_p13 = pneg %p6411_p9 }
 0x313   : > { %v9116_v16 = vpop.f32.mrf.mxu3  ;;  %4654 = vmatpush.bf16.msra.mxu0 %v4344_v47  ;;  %4668 = vmatpush.bf16.msra.mxu1 %v4347_v39  ;;  %v4271_v47 = vpack.c.bf16 %v4215_v53, %v4215_v53  ;;  %v4272_v39 = vpack.c.bf16 %v4216_v6, %v4216_v6 }
 0x314   : > { %10610 = vst [vmem:[#allocation59_spill] sm:$0xff] %v9116_v16  ;;  %p6417_p4 = pnand %p6416_p3, %p6412_p13 }
 0x315   : > { %v4362_v13 = vsel %vm469_vm0, %v4271_v47, 0 }
 0x317   : > { %5976 = vmatmul.msk.bf16.vlgmr.msrb.gmra.mxu2 %vm465_vm1, %v8975_v56  ;;  %v9123_v19 = vpop.f32.mrf.mxu0  ;;  %v9125_v17 = vpop.f32.mrf.mxu1 }
 0x318   : > { %10611 = vst [vmem:[#allocation48_spill] sm:$0xff] %v9123_v19  ;;  %5977 = vmatmul.msk.bf16.vlgmr.msrb.gmra.mxu3 %vm465_vm1, %v8975_v56  ;;  %4738 = vmatpush.bf16.msrb.mxu2 %v4362_v13 }
 0x319   : > { %10612 = vst [vmem:[#allocation49_spill] sm:$0xff] %v9125_v17  ;;  %v4365_v17 = vsel %vm469_vm0, %v4272_v39, 0 }
 0x31a   : > { %v9132_v40 = vpop.f32.mrf.mxu2  ;;  %4752 = vmatpush.bf16.msrb.mxu3 %v4365_v17 }
 0x31b   : > { %10614 = vst [vmem:[#allocation47_spill] sm:$0xff] %v9132_v40  ;;  %v9135_v12 = vpop.f32.mrf.mxu3  ;;  %v4213_v40 = vld.sshfl [vmem:[#allocation1] sm:$0xff pattern:$0x75316420] }
 0x31c   : > { %10615 = vst [vmem:[#allocation68_spill] sm:$0xff] %v9135_v12  ;;  %v4269_v16 = vpack.c.bf16 %v4213_v40, %v4213_v40  ;;  %v4270_v12 = vpack.c.bf16 %v4214_v5, %v4214_v5 }
 0x31d   : > { %5403 = vst [vmem:[#allocation1] ss:$2 sm:$0xff] %v8911_v30 }
 0x31e   : > { %v4356_v13 = vsel %vm469_vm0, %v4269_v16, 0  ;;  %v4359_v17 = vsel %vm469_vm0, %v4270_v12, 0 }
 0x31f   : > { %v9140_v4 = vpop.f32.mrf.mxu0  ;;  %v9142_v19 = vpop.f32.mrf.mxu1 }
 0x322   : > { %v9144_v59 = vpop.f32.mrf.mxu2  ;;  %5974 = vmatmul.msk.bf16.vlgmr.msrb.gmra.mxu0 %vm465_vm1, %v8975_v56  ;;  %5975 = vmatmul.msk.bf16.vlgmr.msrb.gmra.mxu1 %vm465_vm1, %v8975_v56 }
 0x323   : > { %v9151_v58 = vpop.f32.mrf.mxu3  ;;  %4710 = vmatpush.bf16.msrb.mxu0 %v4356_v13  ;;  %4724 = vmatpush.bf16.msrb.mxu1 %v4359_v17 }
 0x327   : > { %5980 = vmatmul.msk.bf16.vlgmr.msra.gmra.mxu2 %vm465_vm1, %v8975_v56  ;;  %v9157_v5 = vpop.f32.mrf.mxu0  ;;  %v9159_v30 = vpop.f32.mrf.mxu1 }
 0x328   : > { %5981 = vmatmul.msk.bf16.vlgmr.msra.gmra.mxu3 %vm465_vm1, %v8975_v56 }
 0x32a   : > { %v9163_v40 = vpop.f32.mrf.mxu2 }
 0x32b   : > { %10616 = vst [vmem:[#allocation69_spill] sm:$0xff] %v9163_v40  ;;  %v9165_v53 = vpop.f32.mrf.mxu3 }
 0x32c   : > { %10617 = vst [vmem:[#allocation66_spill] sm:$0xff] %v9165_v53 }
 0x32f   : > { %v9167_v6 = vpop.f32.mrf.mxu0  ;;  %v9169_v16 = vpop.f32.mrf.mxu1 }
 0x330   : > { %10618 = vst [vmem:[#allocation67_spill] sm:$0xff] %v9167_v6 }
 0x331   : > { %10619 = vst [vmem:[#allocation70_spill] sm:$0xff] %v9169_v16 }
 0x332   : > { %v9171_v12 = vpop.f32.mrf.mxu2  ;;  %5978 = vmatmul.msk.bf16.vlgmr.msra.gmra.mxu0 %vm465_vm1, %v8975_v56  ;;  %5979 = vmatmul.msk.bf16.vlgmr.msra.gmra.mxu1 %vm465_vm1, %v8975_v56 }
 0x333   : > { %10620 = vst [vmem:[#allocation8_spill] sm:$0xff] %v9171_v12  ;;  %v9177_v47 = vpop.f32.mrf.mxu3 }
 0x334   : > { %10621 = vst [vmem:[#allocation77_spill] sm:$0xff] %v9177_v47 }
 0x337   : > { %5984 = vmatmul.msk.bf16.vlgmr.msrb.gmra.mxu2 %vm465_vm1, %v8975_v56  ;;  %v9181_v39 = vpop.f32.mrf.mxu0  ;;  %v9183_v13 = vpop.f32.mrf.mxu1 }
 0x338   : > { %10622 = vst [vmem:[#allocation9_spill] sm:$0xff] %v9181_v39  ;;  %5985 = vmatmul.msk.bf16.vlgmr.msrb.gmra.mxu3 %vm465_vm1, %v8975_v56  ;;  %v9205_v39 = vld.sshfl [vmem:[#allocation1 + $0x8] sm:$0xff pattern:$0x75316420] }
 0x339   : > { %10623 = vst [vmem:[#allocation10_spill] sm:$0xff] %v9183_v13  ;;  %v9203_v13 = vld.sshfl [vmem:[#allocation1] sm:$0xff pattern:$0x75316420] }
 0x33a   : > { %v9187_v17 = vpop.f32.mrf.mxu2  ;;  %10630 = vst [vmem:[#allocation38_spill] sm:$0xff] %v9203_v13 }
 0x33b   : > { %10624 = vst [vmem:[#allocation81_spill] sm:$0xff] %v9187_v17  ;;  %v9189_v12 = vpop.f32.mrf.mxu3  ;;  %v9207_v17 = vld.sshfl [vmem:[#allocation1 + $0x10] sm:$0xff pattern:$0x75316420] }
 0x33c   : > { %10625 = vst [vmem:[#allocation11_spill] sm:$0xff] %v9189_v12 }
 0x33d   : > { %10631 = vst [vmem:[#allocation122_spill] sm:$0xff] %v9205_v39 }
 0x33e   : > { %10632 = vst [vmem:[#allocation39_spill] sm:$0xff] %v9207_v17 }
 0x33f   : > { %v9191_v16 = vpop.f32.mrf.mxu0  ;;  %v9193_v6 = vpop.f32.mrf.mxu1  ;;  %5418 = vst [vmem:[#allocation1] ss:$2 sm:$0xff] %v8981_v25 }
 0x340   : > { %10626 = vst [vmem:[#allocation82_spill] sm:$0xff] %v9191_v16  ;;  %v9210_v16 = vld.sshfl [vmem:[#allocation1 + $0x18] sm:$0xff pattern:$0x75316420] }
 0x341   : > { %10627 = vst [vmem:[#allocation12_spill] sm:$0xff] %v9193_v6 }
 0x342   : > { %v9195_v53 = vpop.f32.mrf.mxu2  ;;  %5982 = vmatmul.msk.bf16.vlgmr.msrb.gmra.mxu0 %vm465_vm1, %v8975_v56  ;;  %5983 = vmatmul.msk.bf16.vlgmr.msrb.gmra.mxu1 %vm465_vm1, %v8975_v56  ;;  %10633 = vst [vmem:[#allocation123_spill] sm:$0xff] %v9210_v16 }
 0x343   : > { %10628 = vst [vmem:[#allocation62_spill] sm:$0xff] %v9195_v53  ;;  %v9201_v47 = vpop.f32.mrf.mxu3 }
 0x344   : > { %10629 = vst [vmem:[#allocation63_spill] sm:$0xff] %v9201_v47 }
 0x345   : > { %5419 = vst [vmem:[#allocation1 + $0x10] ss:$2 sm:$0xff] %v8978_v32  ;;  %v9233_v32 = vld.sshfl [vmem:[#allocation1 + $0x20] sm:$0xff pattern:$0x75316420] }
 0x346   : > { %10644 = vst [vmem:[#allocation80_spill] sm:$0xff] %v9233_v32 }
 0x347   : > { %v9213_v53 = vpop.f32.mrf.mxu0  ;;  %v9215_v6 = vpop.f32.mrf.mxu1 }
 0x348   : > { %10634 = vst [vmem:[#allocation40_spill] sm:$0xff] %v9213_v53  ;;  %v9235_v53 = vld.sshfl [vmem:[#allocation1 + $0x28] sm:$0xff pattern:$0x75316420] }
 0x349   : > { %10635 = vst [vmem:[#allocation124_spill] sm:$0xff] %v9215_v6 }
 0x34a   : > { %v9217_v12 = vpop.f32.mrf.mxu2  ;;  %10645 = vst [vmem:[#allocation14_spill] sm:$0xff] %v9235_v53 }
 0x34b   : > { %10636 = vst [vmem:[#allocation88_spill] sm:$0xff] %v9217_v12  ;;  %v9219_v56 = vpop.f32.mrf.mxu3  ;;  %v9238_v12 = vld.sshfl [vmem:[#allocation1 + $0x30] sm:$0xff pattern:$0x75316420] }
 0x34c   : > { %10637 = vst [vmem:[#allocation41_spill] sm:$0xff] %v9219_v56 }
 0x34d   : > { %5420 = vst [vmem:[#allocation1 + $0x20] ss:$2 sm:$0xff] %v9024_v51  ;;  %v3790_v51 = vadd.f32 %v9015_v8, %v8517_v37  ;;  %v3846_v37 = vadd.f32 %v9055_v38, %v8628_v63  ;;  %v10649_v38 = vld [vmem:[#allocation101_spill] sm:$0xff] }
 0x34e   : > { %10646 = vst [vmem:[#allocation87_spill] sm:$0xff] %v9238_v12  ;;  %v3804_v12 = vadd.f32 %v9019_v22, %v8519_v28  ;;  %v3860_v28 = vadd.f32 %v9061_v9, %v8630_v26 }
 0x34f   : > { %v9221_v47 = vpop.f32.mrf.mxu0  ;;  %v9223_v13 = vpop.f32.mrf.mxu1 }
 0x350   : > { %10638 = vst [vmem:[#allocation125_spill] sm:$0xff] %v9221_v47  ;;  %v9240_v47 = vld.sshfl [vmem:[#allocation1 + $0x38] sm:$0xff pattern:$0x75316420] }
 0x351   : > { %10639 = vst [vmem:[#allocation52_spill] sm:$0xff] %v9223_v13 }
 0x352   : > { %v9225_v39 = vpop.f32.mrf.mxu2  ;;  %10647 = vst [vmem:[#allocation13_spill] sm:$0xff] %v9240_v47 }
 0x353   : > { %10640 = vst [vmem:[#allocation53_spill] sm:$0xff] %v9225_v39  ;;  %v9227_v17 = vpop.f32.mrf.mxu3 }
 0x354   : > { %10641 = vst [vmem:[#allocation50_spill] sm:$0xff] %v9227_v17  ;;  %v3792_v17 = vadd.f32 %v9033_v62, %v8566_v24  ;;  %v3776_v24 = vadd.f32 %v9029_v43, %v8488_v61  ;;  %v3832_v61 = vadd.f32 %v9067_v3, %v8585_v45  ;;  %v9283_v45 = vadd.f32 %v9087_v35, %v8648_v50 }
 0x355   : > { %5421 = vst [vmem:[#allocation1 + $0x30] ss:$2 sm:$0xff] %v9012_v42  ;;  %v3762_v42 = vadd.f32 %v9027_v60, %v8486_v15  ;;  %v9267_v15 = vadd.f32 %v9065_v29, %v8583_v34  ;;  %v9279_v34 = vadd.f32 %v9085_v21, %v8646_v1  ;;  %v9295_v29 = vadd.f32 %v9102_v44, %v8710_v0  ;;  %v10650_v44 = vld [vmem:[#allocation48_spill] sm:$0xff] }
 0x356   : > { %v9301_v50 = vadd.f32 %v9104_v31, %v8712_v54  ;;  %v9313_v9 = vadd.f32 %v10650_v44, %v10649_v38  ;;  %v10652_v54 = vld [vmem:[#allocation49_spill] sm:$0xff]  ;;  %v10668_v44 = vld [vmem:[#allocation110_spill] sm:$0xff] }
 0x357   : > { %v9229_v25 = vpop.f32.mrf.mxu0  ;;  %v9231_v16 = vpop.f32.mrf.mxu1 }
 0x358   : > { %10642 = vst [vmem:[#allocation51_spill] sm:$0xff] %v9229_v25  ;;  %v3806_v25 = vadd.f32 %v9035_v49, %v8568_v46  ;;  %v3764_v46 = vadd.f32 %v9047_v2, %v8529_v23  ;;  %v3778_v49 = vadd.f32 %v9049_v10, %v8531_v36  ;;  %v3848_v23 = vadd.f32 %v9069_v33, %v8676_v57 }
 0x359   : > { %10643 = vst [vmem:[#allocation79_spill] sm:$0xff] %v9231_v16  ;;  %v9275_v36 = vadd.f32 %v9078_v41, %v8678_v52  ;;  %v9287_v57 = vadd.f32 %v9094_v27, %v8735_v55  ;;  %v9291_v52 = vadd.f32 %v9097_v20, %v8737_v11  ;;  %v9305_v55 = vadd.f32 %v9106_v7, %v8792_v18  ;;  %v10648_v11 = vld [vmem:[#allocation59_spill] sm:$0xff]  ;;  %v10651_v27 = vld [vmem:[#allocation17_spill] sm:$0xff]  ;;  %v10653_v20 = vld [vmem:[#allocation102_spill] sm:$0xff] }
 0x35a   : > { %v4404_v6 = vpop.f32.mrf.mxu2  ;;  %v9309_v2 = vadd.f32 %v10648_v11, %v8794_v14  ;;  %v9317_v31 = vadd.f32 %v10652_v54, %v10651_v27  ;;  %v10654_v18 = vld [vmem:[#allocation47_spill] sm:$0xff] }
 0x35b   : > { %v4418_v56 = vpop.f32.mrf.mxu3  ;;  %v4761_v10 = vadd.f32 %v4404_v6, %v3790_v51  ;;  %v9321_v7 = vadd.f32 %v10654_v18, %v10653_v20  ;;  %v9325_v6 = vld.sshfl [vmem:[#allocation1 + $0x8] sm:$0xff pattern:$0x75316420]  ;;  %v10674_v54 = vld [vmem:[#allocation39_spill] sm:$0xff] }
 0x35c   : > { %v4762_v41 = vadd.f32 %v4418_v56, %v3804_v12 }
 0x35f   : > { %v4376_v13 = vpop.f32.mrf.mxu0  ;;  %v4390_v39 = vpop.f32.mrf.mxu1 }
 0x360   : > { %v4760_v14 = vadd.f32 %v4390_v39, %v3776_v24  ;;  %v10660_v39 = vld [vmem:[#allocation104_spill] sm:$0xff]  ;;  %v10662_v24 = vld [vmem:[#allocation78_spill] sm:$0xff] }
 0x362   : > { %v4406_v16 = vpop.f32.mrf.mxu2  ;;  %v9368_v11 = vadd.f32 %v4760_v14, %v10662_v24  ;;  %v10675_v14 = vld [vmem:[#allocation123_spill] sm:$0xff] }
 0x363   : > { %v4789_v32 = vadd.f32 %v4406_v16, %v3792_v17  ;;  %v4420_v53 = vpop.f32.mrf.mxu3  ;;  %v10656_v17 = vld [vmem:[#allocation19_spill] sm:$0xff] }
 0x364   : > { %v4790_v40 = vadd.f32 %v4420_v53, %v3806_v25  ;;  %v9323_v53 = vld.sshfl [vmem:[#allocation1] sm:$0xff pattern:$0x75316420]  ;;  %v9333_v56 = vadd.f32 %v9142_v19, %v10656_v17  ;;  %v10657_v25 = vld [vmem:[#allocation18_spill] sm:$0xff] }
 0x365   : > { %v4845_v47 = vadd.f32 %v4789_v32, %v7562_v48  ;;  %v10658_v32 = vld [vmem:[#allocation68_spill] sm:$0xff] }
 0x366   : > { %v4846_v8 = vadd.f32 %v4790_v40, %v7562_v48  ;;  %v4759_v40 = vadd.f32 %v4376_v13, %v3762_v42  ;;  %v9337_v51 = vadd.f32 %v10658_v32, %v10657_v25  ;;  %v10659_v13 = vld [vmem:[#allocation45_spill] sm:$0xff]  ;;  %v9342_v42 = vadd.f32 %v9144_v59, %v10660_v39  ;;  %v10677_v32 = vld [vmem:[#allocation14_spill] sm:$0xff] }
 0x367   : > { %v5988_v62 = vmul.f32 -1.442695, %v4845_v47  ;;  %v4378_v63 = vpop.f32.mrf.mxu0  ;;  %v4392_v22 = vpop.f32.mrf.mxu1  ;;  %v10655_v47 = vld [vmem:[#allocation103_spill] sm:$0xff]  ;;  %5430 = vst [vmem:[#allocation1] ss:$2 sm:$0xff] %v10659_v13  ;;  %v9358_v59 = vadd.f32 %v4762_v41, %v10662_v24  ;;  %v10669_v41 = vld [vmem:[#allocation69_spill] sm:$0xff] }
 0x368   : > { %v4787_v26 = vadd.f32 %v4378_v63, %v3764_v46  ;;  %v4788_v60 = vadd.f32 %v4392_v22, %v3778_v49  ;;  %v5989_v43 = vmul.f32 -1.442695, %v4846_v8  ;;  %v9329_v12 = vadd.f32 %v9140_v4, %v10655_v47  ;;  %10661 = vst [vmem:[#allocation64_spill] sm:$0xff] %v9342_v42  ;;  %v10663_v8 = vld [vmem:[#allocation109_spill] sm:$0xff]  ;;  %v10664_v22 = vld [vmem:[#allocation20_spill] sm:$0xff]  ;;  %v10676_v47 = vld [vmem:[#allocation38_spill] sm:$0xff] }
 0x369   : > { %6249 = vpow2.f32 %v5988_v62  ;;  %v9345_v46 = vadd.f32 %v4761_v10, %v10662_v24  ;;  %v9351_v63 = vadd.f32 %v9157_v5, %v10663_v8 }
 0x36a   : > { %v4460_v33 = vpop.f32.mrf.mxu2  ;;  %v4843_v1 = vadd.f32 %v4787_v26, %v7562_v48  ;;  %v4844_v3 = vadd.f32 %v4788_v60, %v7562_v48  ;;  %6251 = vpow2.f32 %v5989_v43  ;;  %v9355_v26 = vadd.f32 %v9151_v58, %v10664_v22  ;;  %v10666_v43 = vld [vmem:[#allocation21_spill] sm:$0xff] }
 0x36b   : > { %v4474_v0 = vpop.f32.mrf.mxu3  ;;  %v4765_v38 = vadd.f32 %v4460_v33, %v3846_v37  ;;  %v9386_v20 = vadd.f32 %v10674_v54, %v9345_v46  ;;  %v9395_v33 = vld.sshfl [vmem:[#allocation1 + $0x10] sm:$0xff pattern:$0x75316420] }
 0x36c   : > { %v5986_v21 = vmul.f32 -1.442695, %v4843_v1  ;;  %v5987_v35 = vmul.f32 -1.442695, %v4844_v3  ;;  %10665 = vst [vmem:[#allocation65_spill] sm:$0xff] %v9355_v26  ;;  %v9362_v1 = vadd.f32 %v9159_v30, %v10666_v43  ;;  %v9365_v3 = vadd.f32 %v4759_v40, %v10662_v24 }
 0x36d   : > { %v9378_v30 = vadd.f32 %v10669_v41, %v10668_v44  ;;  %v9468_v26 = vld.sshfl [vmem:[#allocation1 + $0x20] sm:$0xff pattern:$0x75316420] }
 0x36e   : > { %6253 = vpow2.f32 %v5986_v21  ;;  %10667 = vst [vmem:[#allocation91_spill] sm:$0xff] %v9362_v1  ;;  %v10671_v21 = vld [vmem:[#allocation22_spill] sm:$0xff]  ;;  %v9399_v17 = vadd.f32 %v10676_v47, %v9365_v3  ;;  %v9470_v1 = vld.sshfl [vmem:[#allocation1 + $0x28] sm:$0xff pattern:$0x75316420] }
 0x36f   : > { %v6250_v16 = vpop.eup %6249  ;;  %6255 = vpow2.f32 %v5987_v35  ;;  %v4432_v49 = vpop.f32.mrf.mxu0  ;;  %10670 = vst [vmem:[#allocation15_spill] sm:$0xff] %v9378_v30  ;;  %v10672_v35 = vld [vmem:[#allocation66_spill] sm:$0xff] }
 0x370   : > { %v9347_v4 = vadd.f32 1.0, %v6250_v16  ;;  %v4446_v19 = vpop.f32.mrf.mxu1  ;;  %v6252_v62 = vpop.eup %6251  ;;  %v9382_v27 = vadd.f32 %v10672_v35, %v10671_v21  ;;  %v9390_v16 = vadd.f32 %v10675_v14, %v9358_v59  ;;  %v9426_v21 = vadd.f32 %v4432_v49, %v9267_v15 }
 0x371   : > { %v4764_v60 = vadd.f32 %v4446_v19, %v3832_v61  ;;  %v9371_v10 = vadd.f32 1.0, %v6252_v62  ;;  %v4766_v61 = vadd.f32 %v4474_v0, %v3860_v28  ;;  %v9408_v19 = vld.sshfl [vmem:[#allocation1 + $0x18] sm:$0xff pattern:$0x75316420] }
 0x372   : > { %6257 = vrcp.f32 %v9347_v4  ;;  %v4462_v5 = vpop.f32.mrf.mxu2  ;;  %10673 = vst [vmem:[#allocation74_spill] sm:$0xff] %v9382_v27  ;;  %v5022_v37 = vand.u32 2147483647, %v9347_v4  ;;  %v5024_v28 = vand.u32 2147483648, %v9347_v4  ;;  %v10678_v62 = vld [vmem:[#allocation122_spill] sm:$0xff]  ;;  %vm5018_vm0 = vweird.f32 %v9347_v4 }
 0x373   : > { %v9374_v58 = vadd.f32 %v4764_v60, %v10662_v24  ;;  %v4793_v18 = vadd.f32 %v4462_v5, %v3848_v23  ;;  %6259 = vrcp.f32 %v9371_v10  ;;  %v5039_v23 = vand.u32 2147483648, %v9371_v10  ;;  %v4476_v39 = vpop.f32.mrf.mxu3  ;;  %v10679_v5 = vld [vmem:[#allocation44_spill] sm:$0xff] }
 0x374   : > { %v6254_v40 = vpop.eup %6253  ;;  %v9412_v8 = vadd.f32 %v10678_v62, %v9368_v11  ;;  %v9417_v60 = vadd.f32 %v4765_v38, %v10662_v24  ;;  %v9420_v43 = vadd.f32 %v4766_v61, %v10662_v24  ;;  %5431 = vst [vmem:[#allocation1 + $0x10] ss:$2 sm:$0xff] %v10679_v5  ;;  %v5037_v41 = vand.u32 2147483647, %v9371_v10 }
 0x375   : > { %v6256_v0 = vpop.eup %6255  ;;  %v9401_v25 = vadd.f32 1.0, %v6254_v40  ;;  %v9406_v13 = vadd.f32 %v10677_v32, %v9374_v58  ;;  %v4849_v40 = vadd.f32 %v4793_v18, %v7562_v48  ;;  %v5025_v38 = vor.u32 1.1754944e-38, %v5024_v28 }
 0x376   : > { %v9414_v22 = vadd.f32 1.0, %v6256_v0  ;;  %v4794_v61 = vadd.f32 %v4476_v39, %v9275_v36  ;;  %vm9434_vm1 = vcmp.eq.f32.partialorder %v5022_v37, 8.507059e+37  ;;  %vm5033_vm2 = vweird.f32 %v9371_v10 }
 0x377   : > { %6261 = vrcp.f32 %v9401_v25  ;;  %v4434_v35 = vpop.f32.mrf.mxu0  ;;  %v4992_v14 = vand.u32 2147483647, %v9401_v25  ;;  %v5040_v15 = vor.u32 1.1754944e-38, %v5039_v23  ;;  %v4994_v18 = vand.u32 2147483648, %v9401_v25 }
 0x378   : > { %v6258_v44 = vpop.eup %6257  ;;  %v4448_v54 = vpop.f32.mrf.mxu1  ;;  %6263 = vrcp.f32 %v9414_v22  ;;  %v4791_v28 = vadd.f32 %v4434_v35, %v9279_v34  ;;  %vm9445_vm3 = vcmp.eq.f32.partialorder %v5037_v41, 8.507059e+37  ;;  %v5992_v27 = vmul.f32 -1.442695, %v4849_v40 }
 0x379   : > { %v5014_v0 = vmul.f32 %v6258_v44, %v9347_v4  ;;  %v6260_v49 = vpop.eup %6259  ;;  %v4792_v36 = vadd.f32 %v4448_v54, %v9283_v45  ;;  %vm4988_vm4 = vweird.f32 %v9401_v25  ;;  %vm5019_vm5 = vweird.f32 %v6258_v44  ;;  %v10686_v4 = vld [vmem:[#allocation61_spill] sm:$0xff] }
 0x37a   : > { %v5029_v37 = vmul.f32 %v6260_v49, %v9371_v10  ;;  %v4847_v23 = vadd.f32 %v4791_v28, %v7562_v48  ;;  %v4850_v34 = vadd.f32 %v4794_v61, %v7562_v48  ;;  %vm5003_vm6 = vweird.f32 %v9414_v22  ;;  %vm5020_vm11 = vmor %vm5018_vm0, %vm5019_vm5  ;;  %5432 = vst [vmem:[#allocation1 + $0x20] ss:$2 sm:$0xff] %v10686_v4  ;;  %v9503_v5 = vpop.f32.mrf.mxu2 }
 0x37b   : > { %v5015_v62 = vsub.f32 1.0, %v5014_v0  ;;  %v4848_v32 = vadd.f32 %v4792_v36, %v7562_v48  ;;  %vm5034_vm7 = vweird.f32 %v6260_v49  ;;  %6265 = vpow2.f32 %v5992_v27 }
 0x37c   : > { %v5030_v54 = vsub.f32 1.0, %v5029_v37  ;;  %vm9457_vm9 = vcmp.eq.f32.partialorder %v4992_v14, 8.507059e+37  ;;  %v5990_v28 = vmul.f32 -1.442695, %v4847_v23  ;;  %v5993_v14 = vmul.f32 -1.442695, %v4850_v34  ;;  %vm5035_vm12 = vmor %vm5033_vm2, %vm5034_vm7 }
 0x37d   : > { %v6262_v45 = vpop.eup %6261  ;;  %v5016_v35 = vmul.f32 %v6258_v44, %v5015_v62  ;;  %v5991_v36 = vmul.f32 -1.442695, %v4848_v32 }
 0x37e   : > { %v9454_v41 = vpop.eup %6263  ;;  %v4984_v40 = vmul.f32 %v6262_v45, %v9401_v25  ;;  %vm4989_vm8 = vweird.f32 %v6262_v45  ;;  %v5031_v37 = vmul.f32 %v6260_v49, %v5030_v54  ;;  %6267 = vpow2.f32 %v5990_v28 }
 0x37f   : > { %v4999_v61 = vmul.f32 %v9454_v41, %v9414_v22  ;;  %vm5004_vm10 = vweird.f32 %v9454_v41  ;;  %v5017_v62 = vadd.f32 %v6258_v44, %v5016_v35  ;;  %v4488_v39 = vpop.f32.mrf.mxu0  ;;  %6269 = vpow2.f32 %v5991_v36  ;;  %vm9495_vm13 = vmor %vm4988_vm4, %vm4989_vm8 }
 0x380   : > { %v4985_v27 = vsub.f32 1.0, %v4984_v40  ;;  %v4767_v30 = vadd.f32 %v4488_v39, %v9295_v29  ;;  %v5032_v42 = vadd.f32 %v6260_v49, %v5031_v37  ;;  %6271 = vpow2.f32 %v5993_v14  ;;  %v4502_v36 = vpop.f32.mrf.mxu1  ;;  %vm9511_vm14 = vmor %vm5003_vm6, %vm5004_vm10 }
 0x381   : > { %v5000_v32 = vsub.f32 1.0, %v4999_v61  ;;  %v5021_v23 = vsel %vm5020_vm11, %v6258_v44, %v5017_v62  ;;  %v6266_v44 = vpop.eup %6265  ;;  %v4530_v62 = vpop.f32.mrf.mxu3 }
 0x382   : > { %v4986_v35 = vmul.f32 %v6262_v45, %v4985_v27  ;;  %v5026_v54 = vsel %vm9434_vm1, %v5025_v38, %v5021_v23  ;;  %v9478_v29 = vadd.f32 %v4767_v30, %v10662_v24  ;;  %v5036_v47 = vsel %vm5035_vm12, %v6260_v49, %v5032_v42 }
 0x383   : > { %v5001_v39 = vmul.f32 %v9454_v41, %v5000_v32  ;;  %v5506_v34 = vmul.f32 %v9386_v20, %v5026_v54  ;;  %v5563_v40 = vmul.f32 %v5026_v54, %v9345_v46  ;;  %v5041_v10 = vsel %vm9445_vm3, %v5040_v15, %v5036_v47 }
 0x384   : > { %v4987_v38 = vadd.f32 %v6262_v45, %v4986_v35  ;;  %v9486_v28 = vadd.f32 1.0, %v6266_v44  ;;  %v9490_v30 = vadd.f32 %v9323_v53, %v9478_v29  ;;  %v4995_v42 = vor.u32 1.1754944e-38, %v4994_v18  ;;  %v6268_v53 = vpop.eup %6267 }
 0x385   : > { %v5002_v46 = vadd.f32 %v9454_v41, %v5001_v39  ;;  %6016 = vst [vmem:[%s7868_s28 + $0xf0] sm:$0xf] %v5506_v34  ;;  %v5507_v15 = vmul.f32 %v9390_v16, %v5041_v10  ;;  %v5564_v49 = vmul.f32 %v5041_v10, %v9358_v59  ;;  %v10691_v18 = vand.u32 2147483647, %v9414_v22  ;;  %v10694_v34 = vld [vmem:[#allocation67_spill] sm:$0xff] }
 0x386   : > { %v4991_v61 = vsel %vm9495_vm13, %v6262_v45, %v4987_v38  ;;  %v10692_v16 = vand.u32 2147483648, %v9414_v22  ;;  %6044 = vst [vmem:[%s7868_s28 + $0xf0] sm:$0xf0] %v5563_v40  ;;  %6273 = vrcp.f32 %v9486_v28  ;;  %v6270_v45 = vpop.eup %6269  ;;  %v9527_v14 = vadd.f32 1.0, %v6268_v53 }
 0x387   : > { %vm5008_vm15 = vcmp.eq.f32.partialorder %v10691_v18, 8.507059e+37  ;;  %v4996_v37 = vsel %vm9457_vm9, %v4995_v42, %v4991_v61  ;;  %v5006_v27 = vsel %vm9511_vm14, %v9454_v41, %v5002_v46  ;;  %6017 = vst [vmem:[%s7868_s28 + $0xf8] sm:$0xf] %v5507_v15  ;;  %v4768_v22 = vadd.f32 %v4502_v36, %v9301_v50  ;;  %v4490_v32 = vpop.f32.mrf.mxu0  ;;  %v6272_v23 = vpop.eup %6271  ;;  %v10693_v50 = vld [vmem:[#allocation112_spill] sm:$0xff]  ;;  %v10697_v42 = vld [vmem:[#allocation13_spill] sm:$0xff] }
 0x388   : > { %v5010_v59 = vor.u32 1.1754944e-38, %v10692_v16  ;;  %v5504_v35 = vmul.f32 %v9399_v17, %v4996_v37  ;;  %v5561_v54 = vmul.f32 %v4996_v37, %v9365_v3  ;;  %6045 = vst [vmem:[%s7868_s28 + $0xf8] sm:$0xf0] %v5564_v49  ;;  %v9533_v0 = vadd.f32 1.0, %v6270_v45  ;;  %v10698_v61 = vld [vmem:[#allocation80_spill] sm:$0xff] }
 0x389   : > { %v9539_v39 = vadd.f32 %v9426_v21, %v10662_v24  ;;  %6275 = vrcp.f32 %v9527_v14  ;;  %v9544_v17 = vadd.f32 %v10694_v34, %v10693_v50  ;;  %v5054_v3 = vand.u32 2147483648, %v9527_v14  ;;  %v9560_v10 = vld.sshfl [vmem:[#allocation1 + $0x30] sm:$0xff pattern:$0x75316420] }
 0x38a   : > { %v5011_v4 = vsel %vm5008_vm15, %v5010_v59, %v5006_v27  ;;  %6014 = vst [vmem:[%s7868_s28 + $0xe0] sm:$0xf] %v5504_v35  ;;  %6277 = vrcp.f32 %v9533_v0  ;;  %v5084_v21 = vand.u32 2147483648, %v9486_v28  ;;  %v9557_v47 = vadd.f32 %v4768_v22, %v10662_v24  ;;  %v9562_v36 = vld.sshfl [vmem:[#allocation1 + $0x38] sm:$0xff pattern:$0x75316420]  ;;  %v4504_v35 = vpop.f32.mrf.mxu1 }
 0x38b   : > { %v5505_v44 = vmul.f32 %v9412_v8, %v5011_v4  ;;  %v5562_v41 = vmul.f32 %v5011_v4, %v9368_v11  ;;  %v5082_v8 = vand.u32 2147483647, %v9486_v28  ;;  %6042 = vst [vmem:[%s7868_s28 + $0xe0] sm:$0xf0] %v5561_v54  ;;  %v10695_v11 = vld [vmem:[#allocation87_spill] sm:$0xff]  ;;  %v4770_v38 = vadd.f32 %v4530_v62, %v9291_v52  ;;  %v10701_v62 = vld [vmem:[#allocation60_spill] sm:$0xff]  ;;  %v4518_v54 = vpop.f32.mrf.mxu2 }
 0x38c   : > { %v9553_v40 = vadd.f32 %v10695_v11, %v9417_v60  ;;  %10696 = vst [vmem:[#allocation75_spill] sm:$0xff] %v9560_v10  ;;  %v6274_v20 = vpop.eup %6273  ;;  %v9567_v46 = vadd.f32 %v10697_v42, %v9420_v43  ;;  %v5052_v15 = vand.u32 2147483647, %v9527_v14  ;;  %v5069_v49 = vand.u32 2147483648, %v9533_v0 }
 0x38d   : > { %6015 = vst [vmem:[%s7868_s28 + $0xe8] sm:$0xf] %v5505_v44  ;;  %v9571_v53 = vadd.f32 1.0, %v6272_v23  ;;  %v9576_v52 = vadd.f32 %v10698_v61, %v9539_v39  ;;  %v5067_v25 = vand.u32 2147483647, %v9533_v0  ;;  %v5074_v18 = vmul.f32 %v6274_v20, %v9486_v28 }
 0x38e   : > { %6043 = vst [vmem:[%s7868_s28 + $0xe8] sm:$0xf0] %v5562_v41  ;;  %vm5078_vm0 = vweird.f32 %v9486_v28  ;;  %vm5048_vm1 = vweird.f32 %v9527_v14  ;;  %v5055_v16 = vor.u32 1.1754944e-38, %v5054_v3  ;;  %vm9582_vm2 = vcmp.eq.f32.partialorder %v5082_v8, 8.507059e+37  ;;  %v4532_v3 = vpop.f32.mrf.mxu3 }
 0x38f   : > { %6279 = vrcp.f32 %v9571_v53  ;;  %5433 = vst [vmem:[#allocation1 + $0x30] ss:$2 sm:$0xff] %v10701_v62  ;;  %v6276_v45 = vpop.eup %6275  ;;  %vm5063_vm3 = vweird.f32 %v9533_v0  ;;  %v5075_v37 = vsub.f32 1.0, %v5074_v18  ;;  %v5085_v27 = vor.u32 1.1754944e-38, %v5084_v21  ;;  %v9602_v8 = vpop.f32.mrf.mxu0 }
 0x390   : > { %v9591_v22 = vadd.f32 %v9325_v6, %v9557_v47  ;;  %v9594_v23 = vadd.f32 %v4770_v38, %v10662_v24  ;;  %v6278_v4 = vpop.eup %6277  ;;  %v5044_v44 = vmul.f32 %v6276_v45, %v9527_v14  ;;  %vm9597_vm4 = vcmp.eq.f32.partialorder %v5052_v15, 8.507059e+37 }
 0x391   : > { %v5070_v50 = vor.u32 1.1754944e-38, %v5069_v49  ;;  %vm5079_vm5 = vweird.f32 %v6274_v20  ;;  %v5097_v34 = vand.u32 2147483647, %v9571_v53  ;;  %vm5049_vm6 = vweird.f32 %v6276_v45 }
 0x392   : > { %v5059_v6 = vmul.f32 %v6278_v4, %v9533_v0  ;;  %vm9605_vm7 = vcmp.eq.f32.partialorder %v5067_v25, 8.507059e+37  ;;  %v5076_v21 = vmul.f32 %v6274_v20, %v5075_v37  ;;  %v5099_v38 = vand.u32 2147483648, %v9571_v53  ;;  %vm5080_vm10 = vmor %vm5078_vm0, %vm5079_vm5 }
 0x393   : > { %v5045_v42 = vsub.f32 1.0, %v5044_v44  ;;  %v9612_v15 = vadd.f32 %v9408_v19, %v9594_v23  ;;  %v4795_v49 = vadd.f32 %v4490_v32, %v9313_v9  ;;  %v4796_v61 = vadd.f32 %v4504_v35, %v9317_v31  ;;  %vm5050_vm12 = vmor %vm5048_vm1, %vm5049_vm6 }
 0x394   : > { %v5060_v18 = vsub.f32 1.0, %v5059_v6  ;;  %vm5064_vm8 = vweird.f32 %v6278_v4  ;;  %v5077_v62 = vadd.f32 %v6274_v20, %v5076_v21  ;;  %vm5093_vm9 = vweird.f32 %v9571_v53 }
 0x395   : > { %v4797_v25 = vadd.f32 %v4518_v54, %v9305_v55  ;;  %v6280_v10 = vpop.eup %6279  ;;  %v5046_v37 = vmul.f32 %v6276_v45, %v5045_v42  ;;  %v4851_v19 = vadd.f32 %v4795_v49, %v7562_v48  ;;  %v4852_v44 = vadd.f32 %v4796_v61, %v7562_v48  ;;  %vm5065_vm13 = vmor %vm5063_vm3, %vm5064_vm8 }
 0x396   : > { %v4798_v9 = vadd.f32 %v4532_v3, %v9309_v2  ;;  %v5061_v31 = vmul.f32 %v6278_v4, %v5060_v18  ;;  %v5081_v32 = vsel %vm5080_vm10, %v6274_v20, %v5077_v62  ;;  %v5089_v35 = vmul.f32 %v6280_v10, %v9571_v53  ;;  %v4586_v62 = vpop.f32.mrf.mxu3 }
 0x397   : > { %vm5094_vm11 = vweird.f32 %v6280_v10  ;;  %v5047_v6 = vadd.f32 %v6276_v45, %v5046_v37  ;;  %v5086_v55 = vsel %vm9582_vm2, %v5085_v27, %v5081_v32  ;;  %v5994_v54 = vmul.f32 -1.442695, %v4851_v19 }
 0x398   : > { %v5995_v21 = vmul.f32 -1.442695, %v4852_v44  ;;  %v5062_v28 = vadd.f32 %v6278_v4, %v5061_v31  ;;  %v5510_v42 = vmul.f32 %v9553_v40, %v5086_v55  ;;  %v5567_v2 = vmul.f32 %v5086_v55, %v9417_v60  ;;  %v4558_v60 = vpop.f32.mrf.mxu1  ;;  %vm5095_vm14 = vmor %vm5093_vm9, %vm5094_vm11  ;;  %v10706_v44 = vld [vmem:[#allocation23_spill] sm:$0xff] }
 0x399   : > { %v5090_v20 = vsub.f32 1.0, %v5089_v35  ;;  %v5051_v3 = vsel %vm5050_vm12, %v6276_v45, %v5047_v6  ;;  %6281 = vpow2.f32 %v5994_v54  ;;  %v4853_v59 = vadd.f32 %v4797_v25, %v7562_v48  ;;  %v4546_v25 = vpop.f32.mrf.mxu0  ;;  %v9675_v6 = vld.sshfl [vmem:[#allocation1 + $0x8] sm:$0xff pattern:$0x75316420] }
 0x39a   : > { %v4854_v27 = vadd.f32 %v4798_v9, %v7562_v48  ;;  %v5056_v14 = vsel %vm9597_vm4, %v5055_v16, %v5051_v3  ;;  %v5066_v49 = vsel %vm5065_vm13, %v6278_v4, %v5062_v28  ;;  %6020 = vst [vmem:[%s7868_s28 + $0x110] sm:$0xf] %v5510_v42  ;;  %6283 = vpow2.f32 %v5995_v21  ;;  %v10707_v9 = vld [vmem:[#allocation70_spill] sm:$0xff]  ;;  %v10711_v28 = vld [vmem:[#allocation25_spill] sm:$0xff] }
 0x39b   : > { %v5091_v40 = vmul.f32 %v6280_v10, %v5090_v20  ;;  %v5508_v45 = vmul.f32 %v9576_v52, %v5056_v14  ;;  %v5565_v61 = vmul.f32 %v5056_v14, %v9539_v39  ;;  %v5071_v0 = vsel %vm9605_vm7, %v5070_v50, %v5066_v49  ;;  %6048 = vst [vmem:[%s7868_s28 + $0x110] sm:$0xf0] %v5567_v2  ;;  %v4572_v50 = vpop.f32.mrf.mxu2  ;;  %v10712_v42 = vld [vmem:[#allocation9_spill] sm:$0xff]  ;;  %v10713_v20 = vld [vmem:[#allocation26_spill] sm:$0xff] }
 0x39c   : > { %v5996_v18 = vmul.f32 -1.442695, %v4853_v59  ;;  %v5509_v16 = vmul.f32 %v9406_v13, %v5071_v0  ;;  %v5566_v4 = vmul.f32 %v5071_v0, %v9374_v58  ;;  %v5997_v37 = vmul.f32 -1.442695, %v4854_v27  ;;  %v10714_v3 = vld [vmem:[#allocation10_spill] sm:$0xff]  ;;  %v10715_v27 = vld [vmem:[#allocation24_spill] sm:$0xff] }
 0x39d   : > { %v5092_v41 = vadd.f32 %v6280_v10, %v5091_v40  ;;  %6018 = vst [vmem:[%s7868_s28 + $0x100] sm:$0xf] %v5508_v45  ;;  %vm5098_vm15 = vcmp.eq.f32.partialorder %v5097_v34, 8.507059e+37  ;;  %v5100_v39 = vor.u32 1.1754944e-38, %v5099_v38  ;;  %v4772_v52 = vadd.f32 %v4558_v60, %v9333_v56  ;;  %v10716_v14 = vld [vmem:[#allocation77_spill] sm:$0xff] }
 0x39e   : > { %6285 = vpow2.f32 %v5996_v18  ;;  %6046 = vst [vmem:[%s7868_s28 + $0x100] sm:$0xf0] %v5565_v61  ;;  %v4774_v58 = vadd.f32 %v4586_v62, %v9337_v51  ;;  %v4799_v13 = vadd.f32 %v4546_v25, %v9351_v63  ;;  %v9657_v31 = vadd.f32 %v10707_v9, %v10706_v44  ;;  %v9665_v38 = vld.sshfl [vmem:[#allocation1] sm:$0xff pattern:$0x75316420]  ;;  %v10722_v44 = vld [vmem:[#allocation82_spill] sm:$0xff] }
 0x39f   : > { %v5096_v11 = vsel %vm5095_vm14, %v6280_v10, %v5092_v41  ;;  %6287 = vpow2.f32 %v5997_v37  ;;  %v6282_v19 = vpop.eup %6281  ;;  %6019 = vst [vmem:[%s7868_s28 + $0x108] sm:$0xf] %v5509_v16  ;;  %v4769_v34 = vadd.f32 %v9503_v5, %v9287_v57  ;;  %v9663_v56 = vadd.f32 %v4772_v52, %v10662_v24  ;;  %v10708_v57 = vld [vmem:[#allocation113_spill] sm:$0xff]  ;;  %v10709_v5 = vld [vmem:[#allocation8_spill] sm:$0xff]  ;;  %v10717_v41 = vld [vmem:[#allocation27_spill] sm:$0xff] }
 0x3a0   : > { %v5101_v53 = vsel %vm5098_vm15, %v5100_v39, %v5096_v11  ;;  %v6284_v10 = vpop.eup %6283  ;;  %6047 = vst [vmem:[%s7868_s28 + $0x108] sm:$0xf0] %v5566_v4  ;;  %v9670_v32 = vadd.f32 1.0, %v6282_v19  ;;  %v9673_v35 = vadd.f32 %v4774_v58, %v10662_v24  ;;  %v9679_v55 = vadd.f32 %v10709_v5, %v10708_v57  ;;  %v4560_v16 = vpop.f32.mrf.mxu1  ;;  %v9719_v4 = vld.sshfl [vmem:[#allocation1 + $0x10] sm:$0xff pattern:$0x75316420] }
 0x3a1   : > { %v5511_v51 = vmul.f32 %v9567_v46, %v5101_v53  ;;  %v5568_v63 = vmul.f32 %v5101_v53, %v9420_v43  ;;  %v9681_v54 = vadd.f32 1.0, %v6284_v10  ;;  %v9685_v21 = vadd.f32 %v9470_v1, %v9663_v56  ;;  %v10710_v43 = vld [vmem:[#allocation46_spill] sm:$0xff]  ;;  %v10718_v37 = vld [vmem:[#allocation81_spill] sm:$0xff]  ;;  %v10719_v52 = vld [vmem:[#allocation28_spill] sm:$0xff] }
 0x3a2   : > { %v4855_v46 = vadd.f32 %v4799_v13, %v7562_v48  ;;  %5442 = vst [vmem:[#allocation1] ss:$2 sm:$0xff] %v10710_v43  ;;  %v9691_v2 = vadd.f32 %v10712_v42, %v10711_v28  ;;  %v9695_v59 = vadd.f32 %v10714_v3, %v10713_v20  ;;  %v9699_v49 = vadd.f32 %v10716_v14, %v10715_v27  ;;  %v9731_v13 = vld.sshfl [vmem:[#allocation1 + $0x18] sm:$0xff pattern:$0x75316420]  ;;  %v10721_v19 = vld [vmem:[#allocation29_spill] sm:$0xff]  ;;  %v4588_v20 = vpop.f32.mrf.mxu3 }
 0x3a3   : > { %6021 = vst [vmem:[%s7868_s28 + $0x118] sm:$0xf] %v5511_v51  ;;  %6289 = vrcp.f32 %v9670_v32  ;;  %v9705_v40 = vadd.f32 %v4769_v34, %v10662_v24  ;;  %v5112_v60 = vand.u32 2147483647, %v9670_v32  ;;  %v4771_v45 = vadd.f32 %v9602_v8, %v9329_v12  ;;  %v10720_v12 = vld [vmem:[#allocation11_spill] sm:$0xff]  ;;  %v10724_v53 = vld [vmem:[#allocation12_spill] sm:$0xff] }
 0x3a4   : > { %v6286_v1 = vpop.eup %6285  ;;  %6049 = vst [vmem:[%s7868_s28 + $0x118] sm:$0xf0] %v5568_v63  ;;  %6291 = vrcp.f32 %v9681_v54  ;;  %v5114_v0 = vand.u32 2147483648, %v9670_v32  ;;  %v5129_v18 = vand.u32 2147483648, %v9681_v54  ;;  %v9717_v25 = vadd.f32 %v9562_v36, %v9673_v35  ;;  %v10723_v9 = vld [vmem:[#allocation115_spill] sm:$0xff]  ;;  %v10725_v51 = vld [vmem:[#allocation58_spill] sm:$0xff] }
 0x3a5   : > { %v6288_v61 = vpop.eup %6287  ;;  %v9713_v62 = vadd.f32 1.0, %v6286_v1  ;;  %v9723_v39 = vadd.f32 %v10718_v37, %v10717_v41  ;;  %v9727_v8 = vadd.f32 %v10720_v12, %v10719_v52  ;;  %v5998_v58 = vmul.f32 -1.442695, %v4855_v46  ;;  %5443 = vst [vmem:[#allocation1 + $0x10] ss:$2 sm:$0xff] %v10725_v51  ;;  %v4574_v46 = vpop.f32.mrf.mxu2  ;;  %v10726_v28 = vld [vmem:[#allocation91_spill] sm:$0xff] }
 0x3a6   : > { %v9729_v11 = vadd.f32 1.0, %v6288_v61  ;;  %v9735_v36 = vadd.f32 %v10722_v44, %v10721_v19  ;;  %v9739_v34 = vadd.f32 %v10724_v53, %v10723_v9  ;;  %v5127_v10 = vand.u32 2147483647, %v9681_v54 }
 0x3a7   : > { %6293 = vrcp.f32 %v9713_v62  ;;  %v9746_v63 = vadd.f32 %v9395_v33, %v9705_v40  ;;  %v9750_v57 = vadd.f32 %v4771_v45, %v10662_v24  ;;  %v9753_v5 = vadd.f32 %v4572_v50, %v9321_v7 }
 0x3a8   : > { %6295 = vrcp.f32 %v9729_v11  ;;  %vm5108_vm0 = vweird.f32 %v9670_v32  ;;  %vm5123_vm1 = vweird.f32 %v9681_v54  ;;  %v4800_v42 = vadd.f32 %v4560_v16, %v10726_v28  ;;  %v10731_v16 = vld [vmem:[#allocation64_spill] sm:$0xff] }
 0x3a9   : > { %v6290_v43 = vpop.eup %6289  ;;  %6297 = vpow2.f32 %v5998_v58  ;;  %vm9759_vm2 = vcmp.eq.f32.partialorder %v5112_v60, 8.507059e+37  ;;  %v5115_v14 = vor.u32 1.1754944e-38, %v5114_v0  ;;  %v5130_v7 = vor.u32 1.1754944e-38, %v5129_v18  ;;  %v10732_v18 = vld [vmem:[#allocation65_spill] sm:$0xff] }
 0x3aa   : > { %v6292_v33 = vpop.eup %6291  ;;  %v5104_v3 = vmul.f32 %v6290_v43, %v9670_v32  ;;  %vm9764_vm3 = vcmp.eq.f32.partialorder %v5127_v10, 8.507059e+37  ;;  %v5142_v45 = vand.u32 2147483647, %v9713_v62  ;;  %v4856_v61 = vadd.f32 %v4800_v42, %v7562_v48 }
 0x3ab   : > { %v5119_v50 = vmul.f32 %v6292_v33, %v9681_v54  ;;  %v4801_v41 = vadd.f32 %v4574_v46, %v10731_v16  ;;  %vm5138_vm4 = vweird.f32 %v9713_v62  ;;  %v5144_v60 = vand.u32 2147483648, %v9713_v62 }
 0x3ac   : > { %v5105_v37 = vsub.f32 1.0, %v5104_v3  ;;  %v5157_v0 = vand.u32 2147483647, %v9729_v11  ;;  %v4802_v52 = vadd.f32 %v4588_v20, %v10732_v18  ;;  %vm5109_vm5 = vweird.f32 %v6290_v43  ;;  %v4600_v3 = vpop.f32.mrf.mxu0 }
 0x3ad   : > { %v6294_v12 = vpop.eup %6293  ;;  %v5120_v58 = vsub.f32 1.0, %v5119_v50  ;;  %vm5153_vm6 = vweird.f32 %v9729_v11  ;;  %v5159_v19 = vand.u32 2147483648, %v9729_v11  ;;  %v5999_v44 = vmul.f32 -1.442695, %v4856_v61  ;;  %v9781_v50 = vpop.f32.mrf.mxu1  ;;  %vm5110_vm9 = vmor %vm5108_vm0, %vm5109_vm5  ;;  %v10736_v61 = vld [vmem:[#allocation62_spill] sm:$0xff] }
 0x3ae   : > { %v6296_v9 = vpop.eup %6295  ;;  %v5106_v53 = vmul.f32 %v6290_v43, %v5105_v37  ;;  %vm5124_vm7 = vweird.f32 %v6292_v33  ;;  %v5134_v10 = vmul.f32 %v6294_v12, %v9713_v62  ;;  %v4857_v51 = vadd.f32 %v4801_v41, %v7562_v48  ;;  %v4628_v62 = vpop.f32.mrf.mxu2 }
 0x3af   : > { %v6298_v46 = vpop.eup %6297  ;;  %v5121_v28 = vmul.f32 %v6292_v33, %v5120_v58  ;;  %v5149_v42 = vmul.f32 %v6296_v9, %v9729_v11  ;;  %6299 = vpow2.f32 %v5999_v44  ;;  %v4858_v20 = vadd.f32 %v4802_v52, %v7562_v48  ;;  %vm5125_vm12 = vmor %vm5123_vm1, %vm5124_vm7 }
 0x3b0   : > { %v5107_v16 = vadd.f32 %v6290_v43, %v5106_v53  ;;  %v5135_v18 = vsub.f32 1.0, %v5134_v10  ;;  %vm9783_vm8 = vcmp.eq.f32.partialorder %v5142_v45, 8.507059e+37  ;;  %v9787_v37 = vadd.f32 1.0, %v6298_v46 }
 0x3b1   : > { %v5122_v41 = vadd.f32 %v6292_v33, %v5121_v28  ;;  %vm5139_vm10 = vweird.f32 %v6294_v12  ;;  %v5150_v58 = vsub.f32 1.0, %v5149_v42  ;;  %vm5154_vm11 = vweird.f32 %v6296_v9 }
 0x3b2   : > { %v5111_v52 = vsel %vm5110_vm9, %v6290_v43, %v5107_v16  ;;  %v5136_v44 = vmul.f32 %v6294_v12, %v5135_v18  ;;  %6301 = vrcp.f32 %v9787_v37  ;;  %v6000_v45 = vmul.f32 -1.442695, %v4857_v51  ;;  %vm5140_vm13 = vmor %vm5138_vm4, %vm5139_vm10 }
 0x3b3   : > { %v5116_v53 = vsel %vm9759_vm2, %v5115_v14, %v5111_v52  ;;  %v5126_v10 = vsel %vm5125_vm12, %v6292_v33, %v5122_v41  ;;  %v5151_v32 = vmul.f32 %v6296_v9, %v5150_v58  ;;  %v6001_v46 = vmul.f32 -1.442695, %v4858_v20  ;;  %vm5155_vm14 = vmor %vm5153_vm6, %vm5154_vm11  ;;  %v10735_v20 = vld [vmem:[#allocation30_spill] sm:$0xff]  ;;  %v10737_v52 = vld [vmem:[#allocation31_spill] sm:$0xff] }
 0x3b4   : > { %v5512_v28 = vmul.f32 %v9490_v30, %v5116_v53  ;;  %v5569_v43 = vmul.f32 %v5116_v53, %v9478_v29  ;;  %v5131_v54 = vsel %vm9764_vm3, %v5130_v7, %v5126_v10  ;;  %v5137_v42 = vadd.f32 %v6294_v12, %v5136_v44  ;;  %v10738_v44 = vld [vmem:[#allocation40_spill] sm:$0xff]  ;;  %v10740_v53 = vld [vmem:[#allocation63_spill] sm:$0xff] }
 0x3b5   : > { %v6300_v16 = vpop.eup %6299  ;;  %v5513_v18 = vmul.f32 %v9591_v22, %v5131_v54  ;;  %v5570_v51 = vmul.f32 %v5131_v54, %v9557_v47  ;;  %v5145_v33 = vor.u32 1.1754944e-38, %v5144_v60  ;;  %v5152_v27 = vadd.f32 %v6296_v9, %v5151_v32  ;;  %v4616_v58 = vpop.f32.mrf.mxu1  ;;  %v10741_v32 = vld [vmem:[#allocation32_spill] sm:$0xff] }
 0x3b6   : > { %6022 = vst [vmem:[%s7868_s28 + $0x120] sm:$0xf] %v5512_v28  ;;  %v5141_v30 = vsel %vm5140_vm13, %v6294_v12, %v5137_v42  ;;  %v5160_v29 = vor.u32 1.1754944e-38, %v5159_v19  ;;  %v9811_v14 = vadd.f32 1.0, %v6300_v16  ;;  %6303 = vpow2.f32 %v6000_v45  ;;  %v4642_v19 = vpop.f32.mrf.mxu3  ;;  %v10743_v16 = vld [vmem:[#allocation75_spill] sm:$0xff] }
 0x3b7   : > { %6050 = vst [vmem:[%s7868_s28 + $0x120] sm:$0xf0] %v5569_v43  ;;  %v5146_v47 = vsel %vm9783_vm8, %v5145_v33, %v5141_v30  ;;  %v5156_v22 = vsel %vm5155_vm14, %v6296_v9, %v5152_v27  ;;  %vm5158_vm15 = vcmp.eq.f32.partialorder %v5157_v0, 8.507059e+37  ;;  %6305 = vpow2.f32 %v6001_v46 }
 0x3b8   : > { %v6302_v7 = vpop.eup %6301  ;;  %6023 = vst [vmem:[%s7868_s28 + $0x128] sm:$0xf] %v5513_v18  ;;  %v5514_v1 = vmul.f32 %v9746_v63, %v5146_v47  ;;  %v5571_v11 = vmul.f32 %v5146_v47, %v9705_v40  ;;  %v5161_v60 = vsel %vm5158_vm15, %v5160_v29, %v5156_v22  ;;  %v9821_v12 = vadd.f32 %v9753_v5, %v10662_v24  ;;  %v4602_v40 = vpop.f32.mrf.mxu0  ;;  %v10739_v5 = vld [vmem:[#allocation116_spill] sm:$0xff] }
 0x3b9   : > { %v9825_v9 = vadd.f32 %v10736_v61, %v10735_v20  ;;  %6051 = vst [vmem:[%s7868_s28 + $0x128] sm:$0xf0] %v5570_v51  ;;  %v5515_v0 = vmul.f32 %v9612_v15, %v5161_v60  ;;  %v5572_v41 = vmul.f32 %v5161_v60, %v9594_v23  ;;  %v5164_v63 = vmul.f32 %v6302_v7, %v9787_v37  ;;  %v10742_v23 = vld [vmem:[#allocation124_spill] sm:$0xff]  ;;  %v10745_v61 = vld [vmem:[#allocation74_spill] sm:$0xff] }
 0x3ba   : > { %v9833_v45 = vadd.f32 %v10738_v44, %v10737_v52  ;;  %v9837_v10 = vadd.f32 %v10740_v53, %v10739_v5  ;;  %6024 = vst [vmem:[%s7868_s28 + $0x130] sm:$0xf] %v5514_v1  ;;  %6307 = vrcp.f32 %v9811_v14  ;;  %v4775_v15 = vadd.f32 %v4600_v3, %v9544_v17 }
 0x3bb   : > { %v9844_v46 = vadd.f32 %v10742_v23, %v10741_v32  ;;  %6052 = vst [vmem:[%s7868_s28 + $0x130] sm:$0xf0] %v5571_v11  ;;  %v5488_v28 = vadd.f32 %v9468_v26, %v9750_v57  ;;  %v5165_v43 = vsub.f32 1.0, %v5164_v63  ;;  %v5174_v54 = vand.u32 2147483648, %v9787_v37 }
 0x3bc   : > { %v6304_v42 = vpop.eup %6303  ;;  %6025 = vst [vmem:[%s7868_s28 + $0x138] sm:$0xf] %v5515_v0  ;;  %v9853_v18 = vadd.f32 %v10743_v16, %v9821_v12  ;;  %v4776_v17 = vadd.f32 %v9781_v50, %v9657_v31  ;;  %v4803_v3 = vadd.f32 %v4602_v40, %v9691_v2  ;;  %v4804_v51 = vadd.f32 %v4616_v58, %v9695_v59  ;;  %v10744_v31 = vld [vmem:[#allocation15_spill] sm:$0xff] }
 0x3bd   : > { %v6306_v33 = vpop.eup %6305  ;;  %6053 = vst [vmem:[%s7868_s28 + $0x138] sm:$0xf0] %v5572_v41  ;;  %v5166_v27 = vmul.f32 %v6302_v7, %v5165_v43  ;;  %vm5169_vm0 = vweird.f32 %v6302_v7  ;;  %v5172_v26 = vand.u32 2147483647, %v9787_v37  ;;  %v9861_v30 = vadd.f32 1.0, %v6304_v42  ;;  %v4630_v41 = vpop.f32.mrf.mxu2 }
 0x3be   : > { %vm5168_vm1 = vweird.f32 %v9787_v37  ;;  %v9864_v29 = vadd.f32 1.0, %v6306_v33  ;;  %v9867_v47 = vadd.f32 %v4775_v15, %v10662_v24  ;;  %v4777_v50 = vadd.f32 %v4628_v62, %v10744_v31  ;;  %v4644_v52 = vpop.f32.mrf.mxu3 }
 0x3bf   : > { %v5167_v2 = vadd.f32 %v6302_v7, %v5166_v27  ;;  %v5175_v22 = vor.u32 1.1754944e-38, %v5174_v54  ;;  %v5187_v59 = vand.u32 2147483647, %v9811_v14  ;;  %6309 = vrcp.f32 %v9861_v30  ;;  %vm5170_vm2 = vmor %vm5168_vm1, %vm5169_vm0  ;;  %v9893_v54 = vpop.f32.mrf.mxu1 }
 0x3c0   : > { %v6308_v1 = vpop.eup %6307  ;;  %v5189_v11 = vand.u32 2147483648, %v9811_v14  ;;  %6311 = vrcp.f32 %v9864_v29  ;;  %v4859_v37 = vadd.f32 %v4803_v3, %v7562_v48  ;;  %v4860_v60 = vadd.f32 %v4804_v51, %v7562_v48 }
 0x3c1   : > { %v5171_v20 = vsel %vm5170_vm2, %v6302_v7, %v5167_v2  ;;  %vm5173_vm3 = vcmp.eq.f32.partialorder %v5172_v26, 8.507059e+37  ;;  %v5179_v62 = vmul.f32 %v6308_v1, %v9811_v14  ;;  %v4778_v0 = vadd.f32 %v4642_v19, %v10745_v61  ;;  %v9890_v19 = vpop.f32.mrf.mxu0 }
 0x3c2   : > { %v5176_v63 = vsel %vm5173_vm3, %v5175_v22, %v5171_v20  ;;  %vm5183_vm4 = vweird.f32 %v9811_v14  ;;  %v9880_v40 = vadd.f32 %v4776_v17, %v10662_v24  ;;  %v9883_v58 = vadd.f32 %v4777_v50, %v10662_v24 }
 0x3c3   : > { %v5516_v44 = vmul.f32 %v5488_v28, %v5176_v63  ;;  %v5573_v7 = vmul.f32 %v5176_v63, %v9750_v57  ;;  %v5180_v5 = vsub.f32 1.0, %v5179_v62  ;;  %vm9886_vm5 = vcmp.eq.f32.partialorder %v5187_v59, 8.507059e+37 }
 0x3c4   : > { %v5190_v15 = vor.u32 1.1754944e-38, %v5189_v11  ;;  %v6002_v32 = vmul.f32 -1.442695, %v4859_v37  ;;  %v6003_v23 = vmul.f32 -1.442695, %v4860_v60  ;;  %v4805_v43 = vadd.f32 %v4630_v41, %v9679_v55 }
 0x3c5   : > { %v6310_v42 = vpop.eup %6309  ;;  %6026 = vst [vmem:[%s7868_s28 + $0x140] sm:$0xf] %v5516_v44  ;;  %v5181_v28 = vmul.f32 %v6308_v1, %v5180_v5  ;;  %vm5184_vm6 = vweird.f32 %v6308_v1  ;;  %v9897_v57 = vadd.f32 %v4778_v0, %v10662_v24  ;;  %v4806_v16 = vadd.f32 %v4644_v52, %v9699_v49  ;;  %v4684_v41 = vpop.f32.mrf.mxu2 }
 0x3c6   : > { %v6312_v17 = vpop.eup %6311  ;;  %6054 = vst [vmem:[%s7868_s28 + $0x140] sm:$0xf0] %v5573_v7  ;;  %v5194_v3 = vmul.f32 %v6310_v42, %v9861_v30  ;;  %v5202_v51 = vand.u32 2147483647, %v9861_v30  ;;  %6313 = vpow2.f32 %v6002_v32  ;;  %v4861_v55 = vadd.f32 %v4805_v43, %v7562_v48  ;;  %vm5185_vm7 = vmor %vm5183_vm4, %vm5184_vm6 }
 0x3c7   : > { %v5182_v33 = vadd.f32 %v6308_v1, %v5181_v28  ;;  %v5204_v27 = vand.u32 2147483648, %v9861_v30  ;;  %v5209_v26 = vmul.f32 %v6312_v17, %v9864_v29  ;;  %6315 = vpow2.f32 %v6003_v23  ;;  %v4672_v53 = vpop.f32.mrf.mxu1 }
 0x3c8   : > { %v5195_v31 = vsub.f32 1.0, %v5194_v3  ;;  %v5217_v49 = vand.u32 2147483647, %v9864_v29  ;;  %v6004_v50 = vmul.f32 -1.442695, %v4861_v55  ;;  %v4862_v2 = vadd.f32 %v4806_v16, %v7562_v48 }
 0x3c9   : > { %v5186_v22 = vsel %vm5185_vm7, %v6308_v1, %v5182_v33  ;;  %vm5199_vm8 = vweird.f32 %v6310_v42  ;;  %v5210_v59 = vsub.f32 1.0, %v5209_v26  ;;  %v5219_v11 = vand.u32 2147483648, %v9864_v29  ;;  %v4658_v7 = vpop.f32.mrf.mxu0 }
 0x3ca   : > { %v5191_v37 = vsel %vm9886_vm5, %v5190_v15, %v5186_v22  ;;  %v5196_v60 = vmul.f32 %v6310_v42, %v5195_v31  ;;  %6317 = vpow2.f32 %v6004_v50  ;;  %v6005_v20 = vmul.f32 -1.442695, %v4862_v2 }
 0x3cb   : > { %v5517_v14 = vmul.f32 %v9685_v21, %v5191_v37  ;;  %v5574_v62 = vmul.f32 %v5191_v37, %v9663_v56  ;;  %v5211_v61 = vmul.f32 %v6312_v17, %v5210_v59  ;;  %vm5214_vm9 = vweird.f32 %v6312_v17  ;;  %v9921_v56 = vpop.f32.mrf.mxu3 }
 0x3cc   : > { %v6314_v0 = vpop.eup %6313  ;;  %v5197_v1 = vadd.f32 %v6310_v42, %v5196_v60  ;;  %vm5198_vm10 = vweird.f32 %v9861_v30  ;;  %vm5213_vm11 = vweird.f32 %v9864_v29  ;;  %6319 = vpow2.f32 %v6005_v20 }
 0x3cd   : > { %v6316_v63 = vpop.eup %6315  ;;  %6027 = vst [vmem:[%s7868_s28 + $0x148] sm:$0xf] %v5517_v14  ;;  %vm5200_vm12 = vmor %vm5198_vm10, %vm5199_vm8  ;;  %vm5203_vm13 = vcmp.eq.f32.partialorder %v5202_v51, 8.507059e+37  ;;  %v5205_v52 = vor.u32 1.1754944e-38, %v5204_v27  ;;  %v5212_v21 = vadd.f32 %v6312_v17, %v5211_v61  ;;  %v9919_v44 = vadd.f32 1.0, %v6314_v0  ;;  %v4686_v60 = vpop.f32.mrf.mxu2 }
 0x3ce   : > { %6055 = vst [vmem:[%s7868_s28 + $0x148] sm:$0xf0] %v5574_v62  ;;  %v5201_v5 = vsel %vm5200_vm12, %v6310_v42, %v5197_v1  ;;  %vm5215_vm14 = vmor %vm5213_vm11, %vm5214_vm9  ;;  %vm5218_vm15 = vcmp.eq.f32.partialorder %v5217_v49, 8.507059e+37  ;;  %v5220_v30 = vor.u32 1.1754944e-38, %v5219_v11  ;;  %v9925_v29 = vadd.f32 1.0, %v6316_v63 }
 0x3cf   : > { %v5206_v15 = vsel %vm5203_vm13, %v5205_v52, %v5201_v5  ;;  %v5216_v32 = vsel %vm5215_vm14, %v6312_v17, %v5212_v21  ;;  %6321 = vrcp.f32 %v9919_v44  ;;  %v4779_v23 = vadd.f32 %v9890_v19, %v9735_v36  ;;  %v10748_v36 = vld [vmem:[#allocation42_spill] sm:$0xff]  ;;  %v10749_v19 = vld [vmem:[#allocation51_spill] sm:$0xff] }
 0x3d0   : > { %v6318_v43 = vpop.eup %6317  ;;  %v5518_v28 = vmul.f32 %v9853_v18, %v5206_v15  ;;  %v5575_v42 = vmul.f32 %v5206_v15, %v9821_v12  ;;  %v5221_v16 = vsel %vm5218_vm15, %v5220_v30, %v5216_v32  ;;  %v4807_v3 = vadd.f32 %v4658_v7, %v9833_v45  ;;  %v5438_v61 = vld.sshfl [vmem:[#allocation1 + $0x20] sm:$0xff pattern:$0x75316420] }
 0x3d1   : > { %v5519_v51 = vmul.f32 %v9717_v25, %v5221_v16  ;;  %v5576_v55 = vmul.f32 %v5221_v16, %v9673_v35  ;;  %6323 = vrcp.f32 %v9925_v29  ;;  %v4808_v17 = vadd.f32 %v4672_v53, %v9844_v46 }
 0x3d2   : > { %v6320_v33 = vpop.eup %6319  ;;  %v9939_v27 = vadd.f32 %v10749_v19, %v10748_v36  ;;  %6028 = vst [vmem:[%s7868_s28 + $0x150] sm:$0xf] %v5518_v28  ;;  %v9944_v12 = vadd.f32 %v9665_v38, %v9867_v47  ;;  %v5232_v45 = vand.u32 2147483647, %v9919_v44  ;;  %v4780_v35 = vadd.f32 %v9893_v54, %v9739_v34 }
 0x3d3   : > { %6056 = vst [vmem:[%s7868_s28 + $0x150] sm:$0xf0] %v5575_v42  ;;  %v9952_v25 = vadd.f32 %v9675_v6, %v9880_v40  ;;  %v5234_v46 = vand.u32 2147483648, %v9919_v44  ;;  %v9955_v18 = vadd.f32 1.0, %v6318_v43  ;;  %v9957_v26 = vadd.f32 1.0, %v6320_v33  ;;  %v4700_v20 = vpop.f32.mrf.mxu3  ;;  %v10004_v42 = vpop.f32.mrf.mxu0 }
 0x3d4   : > { %6029 = vst [vmem:[%s7868_s28 + $0x158] sm:$0xf] %v5519_v51  ;;  %v9962_v38 = vadd.f32 %v9719_v4, %v9883_v58  ;;  %v9966_v31 = vadd.f32 %v9731_v13, %v9897_v57  ;;  %v5247_v34 = vand.u32 2147483647, %v9925_v29  ;;  %v5249_v6 = vand.u32 2147483648, %v9925_v29 }
 0x3d5   : > { %v6322_v54 = vpop.eup %6321  ;;  %6057 = vst [vmem:[%s7868_s28 + $0x158] sm:$0xf0] %v5576_v55  ;;  %6325 = vrcp.f32 %v9955_v18  ;;  %v9973_v49 = vadd.f32 %v4779_v23, %v10662_v24  ;;  %v4863_v50 = vadd.f32 %v4807_v3, %v7562_v48  ;;  %v4864_v4 = vadd.f32 %v4808_v17, %v7562_v48 }
 0x3d6   : > { %v5224_v2 = vmul.f32 %v6322_v54, %v9919_v44  ;;  %6327 = vrcp.f32 %v9957_v26  ;;  %v9980_v13 = vadd.f32 %v4780_v35, %v10662_v24  ;;  %v9983_v22 = vadd.f32 %v4684_v41, %v9723_v39 }
 0x3d7   : > { %v6324_v59 = vpop.eup %6323  ;;  %vm5228_vm0 = vweird.f32 %v9919_v44  ;;  %vm9986_vm1 = vcmp.eq.f32.partialorder %v5232_v45, 8.507059e+37  ;;  %v5235_v37 = vor.u32 1.1754944e-38, %v5234_v46  ;;  %vm5243_vm2 = vweird.f32 %v9925_v29  ;;  %v10018_v46 = vpop.f32.mrf.mxu1 }
 0x3d8   : > { %v5225_v14 = vsub.f32 1.0, %v5224_v2  ;;  %v5239_v62 = vmul.f32 %v6324_v59, %v9925_v29  ;;  %vm9992_vm3 = vcmp.eq.f32.partialorder %v5247_v34, 8.507059e+37  ;;  %v5250_v39 = vor.u32 1.1754944e-38, %v5249_v6 }
 0x3d9   : > { %vm5229_vm4 = vweird.f32 %v6322_v54  ;;  %v5262_v0 = vand.u32 2147483647, %v9955_v18  ;;  %v6006_v1 = vmul.f32 -1.442695, %v4863_v50  ;;  %v6007_v41 = vmul.f32 -1.442695, %v4864_v4 }
 0x3da   : > { %v5226_v63 = vmul.f32 %v6322_v54, %v5225_v14  ;;  %v5240_v52 = vsub.f32 1.0, %v5239_v62  ;;  %vm5258_vm5 = vweird.f32 %v9955_v18  ;;  %v4809_v21 = vadd.f32 %v4686_v60, %v9825_v9  ;;  %vm5230_vm7 = vmor %vm5228_vm0, %vm5229_vm4 }
 0x3db   : > { %v4810_v7 = vadd.f32 %v4700_v20, %v9837_v10  ;;  %v6326_v5 = vpop.eup %6325  ;;  %v5264_v30 = vand.u32 2147483648, %v9955_v18  ;;  %v5277_v53 = vand.u32 2147483647, %v9957_v26  ;;  %v5279_v15 = vand.u32 2147483648, %v9957_v26 }
 0x3dc   : > { %6329 = vpow2.f32 %v6006_v1  ;;  %v6328_v32 = vpop.eup %6327  ;;  %v5227_v23 = vadd.f32 %v6322_v54, %v5226_v63  ;;  %v5241_v43 = vmul.f32 %v6324_v59, %v5240_v52  ;;  %vm5244_vm6 = vweird.f32 %v6324_v59  ;;  %v4714_v1 = vpop.f32.mrf.mxu0 }
 0x3dd   : > { %v5254_v28 = vmul.f32 %v6326_v5, %v9955_v18  ;;  %vm5259_vm8 = vweird.f32 %v6326_v5  ;;  %v5269_v9 = vmul.f32 %v6328_v32, %v9957_v26  ;;  %6331 = vpow2.f32 %v6007_v41  ;;  %vm5245_vm9 = vmor %vm5243_vm2, %vm5244_vm6 }
 0x3de   : > { %v4865_v10 = vadd.f32 %v4809_v21, %v7562_v48  ;;  %v5231_v16 = vsel %vm5230_vm7, %v6322_v54, %v5227_v23  ;;  %v5242_v3 = vadd.f32 %v6324_v59, %v5241_v43  ;;  %v4866_v55 = vadd.f32 %v4810_v7, %v7562_v48  ;;  %vm5260_vm11 = vmor %vm5258_vm5, %vm5259_vm8  ;;  %v5439_v21 = vld.sshfl [vmem:[#allocation1 + $0x28] sm:$0xff pattern:$0x75316420]  ;;  %v10754_v7 = vld [vmem:[#allocation35_spill] sm:$0xff] }
 0x3df   : > { %v5255_v51 = vsub.f32 1.0, %v5254_v28  ;;  %v5236_v17 = vsel %vm9986_vm1, %v5235_v37, %v5231_v16  ;;  %v5270_v44 = vsub.f32 1.0, %v5269_v9  ;;  %vm5274_vm10 = vweird.f32 %v6328_v32  ;;  %v10032_v37 = vpop.f32.mrf.mxu2  ;;  %v10758_v43 = vld [vmem:[#allocation119_spill] sm:$0xff]  ;;  %v10759_v28 = vld [vmem:[#allocation50_spill] sm:$0xff] }
 0x3e0   : > { %v6008_v33 = vmul.f32 -1.442695, %v4865_v10  ;;  %v5520_v36 = vmul.f32 %v9944_v12, %v5236_v17  ;;  %v5577_v19 = vmul.f32 %v5236_v17, %v9867_v47  ;;  %v5246_v45 = vsel %vm5245_vm9, %v6324_v59, %v5242_v3 }
 0x3e1   : > { %v5256_v35 = vmul.f32 %v6326_v5, %v5255_v51  ;;  %v5251_v6 = vsel %vm9992_vm3, %v5250_v39, %v5246_v45  ;;  %v5271_v54 = vmul.f32 %v6328_v32, %v5270_v44  ;;  %v6009_v29 = vmul.f32 -1.442695, %v4866_v55  ;;  %v4728_v55 = vpop.f32.mrf.mxu1 }
 0x3e2   : > { %v6330_v34 = vpop.eup %6329  ;;  %6333 = vpow2.f32 %v6008_v33  ;;  %6030 = vst [vmem:[%s7868_s28 + $0x160] sm:$0xf] %v5520_v36  ;;  %v5521_v50 = vmul.f32 %v9952_v25, %v5251_v6  ;;  %v5578_v12 = vmul.f32 %v5251_v6, %v9880_v40  ;;  %v5265_v59 = vor.u32 1.1754944e-38, %v5264_v30  ;;  %v10766_v33 = vld [vmem:[#allocation34_spill] sm:$0xff] }
 0x3e3   : > { %v5257_v4 = vadd.f32 %v6326_v5, %v5256_v35  ;;  %v10025_v47 = vadd.f32 1.0, %v6330_v34  ;;  %v6332_v2 = vpop.eup %6331  ;;  %6058 = vst [vmem:[%s7868_s28 + $0x160] sm:$0xf0] %v5577_v19  ;;  %v5272_v11 = vadd.f32 %v6328_v32, %v5271_v54  ;;  %vm5273_vm12 = vweird.f32 %v9957_v26 }
 0x3e4   : > { %6335 = vpow2.f32 %v6009_v29  ;;  %6031 = vst [vmem:[%s7868_s28 + $0x168] sm:$0xf] %v5521_v50  ;;  %vm5263_vm13 = vcmp.eq.f32.partialorder %v5262_v0, 8.507059e+37  ;;  %vm5275_vm14 = vmor %vm5273_vm12, %vm5274_vm10  ;;  %v5280_v40 = vor.u32 1.1754944e-38, %v5279_v15  ;;  %vm5278_vm15 = vcmp.eq.f32.partialorder %v5277_v53, 8.507059e+37  ;;  %v10046_v0 = vpop.f32.mrf.mxu3  ;;  %v10756_v15 = vld [vmem:[#allocation43_spill] sm:$0xff] }
 0x3e5   : > { %v5261_v25 = vsel %vm5260_vm11, %v6326_v5, %v5257_v4  ;;  %6337 = vrcp.f32 %v10025_v47  ;;  %6059 = vst [vmem:[%s7868_s28 + $0x168] sm:$0xf0] %v5578_v12  ;;  %v5276_v20 = vsel %vm5275_vm14, %v6328_v32, %v5272_v11  ;;  %v10038_v18 = vadd.f32 1.0, %v6332_v2  ;;  %v10757_v32 = vld [vmem:[#allocation79_spill] sm:$0xff] }
 0x3e6   : > { %v5266_v60 = vsel %vm5263_vm13, %v5265_v59, %v5261_v25  ;;  %v5281_v62 = vsel %vm5278_vm15, %v5280_v40, %v5276_v20  ;;  %v10044_v39 = vadd.f32 %v9983_v22, %v10662_v24  ;;  %v10755_v22 = vld [vmem:[#allocation53_spill] sm:$0xff]  ;;  %v5292_v30 = vand.u32 2147483647, %v10025_v47 }
 0x3e7   : > { %v5522_v26 = vmul.f32 %v9962_v38, %v5266_v60  ;;  %v5579_v14 = vmul.f32 %v5266_v60, %v9883_v58  ;;  %v5523_v63 = vmul.f32 %v9966_v31, %v5281_v62  ;;  %v5580_v52 = vmul.f32 %v5281_v62, %v9897_v57  ;;  %v5440_v38 = vld.sshfl [vmem:[#allocation1 + $0x30] sm:$0xff pattern:$0x75316420]  ;;  %v4742_v50 = vpop.f32.mrf.mxu2 }
 0x3e8   : > { %v6334_v41 = vpop.eup %6333  ;;  %v4782_v58 = vadd.f32 %v9921_v56, %v9727_v8  ;;  %6339 = vrcp.f32 %v10038_v18  ;;  %v4128_v5 = vadd.f32 %v10755_v22, %v10754_v7  ;;  %v5294_v53 = vand.u32 2147483648, %v10025_v47 }
 0x3e9   : > { %6032 = vst [vmem:[%s7868_s28 + $0x170] sm:$0xf] %v5522_v26  ;;  %v10058_v31 = vadd.f32 1.0, %v6334_v41  ;;  %v4114_v23 = vadd.f32 %v10757_v32, %v10756_v15  ;;  %v4142_v8 = vadd.f32 %v10759_v28, %v10758_v43  ;;  %v5496_v56 = vadd.f32 %v5438_v61, %v9973_v49  ;;  %v10772_v61 = vld [vmem:[#allocation117_spill] sm:$0xff] }
 0x3ea   : > { %v6336_v57 = vpop.eup %6335  ;;  %6060 = vst [vmem:[%s7868_s28 + $0x170] sm:$0xf0] %v5579_v14  ;;  %v4811_v9 = vadd.f32 %v4714_v1, %v9939_v27  ;;  %v10069_v16 = vadd.f32 %v5439_v21, %v9980_v13  ;;  %v10072_v3 = vadd.f32 %v5440_v38, %v10044_v39  ;;  %v5307_v51 = vand.u32 2147483647, %v10038_v18 }
 0x3eb   : > { %v6338_v10 = vpop.eup %6337  ;;  %6033 = vst [vmem:[%s7868_s28 + $0x178] sm:$0xf] %v5523_v63  ;;  %6341 = vrcp.f32 %v10058_v31  ;;  %v10078_v17 = vadd.f32 %v4782_v58, %v10662_v24  ;;  %vm5288_vm0 = vweird.f32 %v10025_v47  ;;  %v5309_v27 = vand.u32 2147483648, %v10038_v18 }
 0x3ec   : > { %6061 = vst [vmem:[%s7868_s28 + $0x178] sm:$0xf0] %v5580_v52  ;;  %v5284_v44 = vmul.f32 %v6338_v10, %v10025_v47  ;;  %vm10083_vm1 = vcmp.eq.f32.partialorder %v5292_v30, 8.507059e+37  ;;  %v5295_v36 = vor.u32 1.1754944e-38, %v5294_v53  ;;  %v10087_v19 = vadd.f32 1.0, %v6336_v57  ;;  %v4756_v26 = vpop.f32.mrf.mxu3 }
 0x3ed   : > { %v4867_v45 = vadd.f32 %v4811_v9, %v7562_v48  ;;  %v5322_v6 = vand.u32 2147483647, %v10058_v31  ;;  %v5324_v54 = vand.u32 2147483648, %v10058_v31  ;;  %v4812_v29 = vadd.f32 %v4728_v55, %v4114_v23 }
 0x3ee   : > { %v6340_v35 = vpop.eup %6339  ;;  %v5285_v34 = vsub.f32 1.0, %v5284_v44  ;;  %vm5303_vm2 = vweird.f32 %v10038_v18  ;;  %vm10094_vm3 = vcmp.eq.f32.partialorder %v5307_v51, 8.507059e+37  ;;  %6343 = vrcp.f32 %v10087_v19 }
 0x3ef   : > { %v5299_v12 = vmul.f32 %v6340_v35, %v10038_v18  ;;  %vm5289_vm4 = vweird.f32 %v6338_v10  ;;  %v5310_v59 = vor.u32 1.1754944e-38, %v5309_v27  ;;  %vm5318_vm5 = vweird.f32 %v10058_v31 }
 0x3f0   : > { %v5286_v2 = vmul.f32 %v6338_v10, %v5285_v34  ;;  %v6010_v40 = vmul.f32 -1.442695, %v4867_v45  ;;  %v4868_v60 = vadd.f32 %v4812_v29, %v7562_v48  ;;  %v4813_v20 = vadd.f32 %v4742_v50, %v4128_v5  ;;  %vm5290_vm7 = vmor %vm5288_vm0, %vm5289_vm4 }
 0x3f1   : > { %v6342_v11 = vpop.eup %6341  ;;  %v5300_v25 = vsub.f32 1.0, %v5299_v12  ;;  %vm10102_vm6 = vcmp.eq.f32.partialorder %v5322_v6, 8.507059e+37  ;;  %v5325_v1 = vor.u32 1.1754944e-38, %v5324_v54  ;;  %vm5304_vm8 = vweird.f32 %v6340_v35  ;;  %v10768_v6 = vld [vmem:[#allocation118_spill] sm:$0xff]  ;;  %v10769_v54 = vld [vmem:[#allocation52_spill] sm:$0xff] }
 0x3f2   : > { %v5287_v14 = vadd.f32 %v6338_v10, %v5286_v2  ;;  %v5314_v62 = vmul.f32 %v6342_v11, %v10058_v31  ;;  %6345 = vpow2.f32 %v6010_v40  ;;  %v6011_v63 = vmul.f32 -1.442695, %v4868_v60  ;;  %vm5305_vm10 = vmor %vm5303_vm2, %vm5304_vm8 }
 0x3f3   : > { %v5301_v41 = vmul.f32 %v6340_v35, %v5300_v25  ;;  %v4869_v38 = vadd.f32 %v4813_v20, %v7562_v48  ;;  %v4814_v58 = vadd.f32 %v4756_v26, %v4142_v8  ;;  %vm5319_vm9 = vweird.f32 %v6342_v11  ;;  %v10770_v26 = vld [vmem:[#allocation33_spill] sm:$0xff] }
 0x3f4   : > { %v5291_v52 = vsel %vm5290_vm7, %v6338_v10, %v5287_v14  ;;  %v5315_v21 = vsub.f32 1.0, %v5314_v62  ;;  %v6344_v7 = vpop.eup %6343  ;;  %6347 = vpow2.f32 %v6011_v63  ;;  %v5337_v32 = vand.u32 2147483647, %v10087_v19  ;;  %vm5320_vm11 = vmor %vm5318_vm5, %vm5319_vm9  ;;  %v10771_v14 = vld [vmem:[#allocation88_spill] sm:$0xff] }
 0x3f5   : > { %v5296_v22 = vsel %vm10083_vm1, %v5295_v36, %v5291_v52  ;;  %v5302_v5 = vadd.f32 %v6340_v35, %v5301_v41  ;;  %v5329_v57 = vmul.f32 %v6344_v7, %v10087_v19  ;;  %v6012_v23 = vmul.f32 -1.442695, %v4869_v38  ;;  %v10767_v36 = vld [vmem:[#allocation125_spill] sm:$0xff]  ;;  %v5444_v52 = vld.sshfl [vmem:[#allocation1] sm:$0xff pattern:$0x75316420] }
 0x3f6   : > { %v5524_v47 = vmul.f32 %v5496_v56, %v5296_v22  ;;  %v5581_v30 = vmul.f32 %v5296_v22, %v9973_v49  ;;  %v5316_v53 = vmul.f32 %v6342_v11, %v5315_v21  ;;  %v4870_v43 = vadd.f32 %v4814_v58, %v7562_v48  ;;  %v5445_v21 = vld.sshfl [vmem:[#allocation1 + $0x8] sm:$0xff pattern:$0x75316420] }
 0x3f7   : > { %v5306_v15 = vsel %vm5305_vm10, %v6340_v35, %v5302_v5  ;;  %v5330_v56 = vsub.f32 1.0, %v5329_v57  ;;  %v5339_v49 = vand.u32 2147483648, %v10087_v19  ;;  %6349 = vpow2.f32 %v6012_v23 }
 0x3f8   : > { %6034 = vst [vmem:[%s7868_s28 + $0x180] sm:$0xf] %v5524_v47  ;;  %v5311_v28 = vsel %vm10094_vm3, %v5310_v59, %v5306_v15  ;;  %v5317_v8 = vadd.f32 %v6342_v11, %v5316_v53  ;;  %v6346_v18 = vpop.eup %6345  ;;  %v6013_v48 = vmul.f32 -1.442695, %v4870_v43  ;;  %vm5334_vm12 = vweird.f32 %v6344_v7 }
 0x3f9   : > { %6062 = vst [vmem:[%s7868_s28 + $0x180] sm:$0xf0] %v5581_v30  ;;  %v5525_v9 = vmul.f32 %v10069_v16, %v5311_v28  ;;  %v5582_v10 = vmul.f32 %v5311_v28, %v9980_v13  ;;  %v5331_v55 = vmul.f32 %v6344_v7, %v5330_v56  ;;  %v10127_v44 = vadd.f32 1.0, %v6346_v18  ;;  %v5441_v16 = vld.sshfl [vmem:[#allocation1 + $0x38] sm:$0xff pattern:$0x75316420] }
 0x3fa   : > { %v5321_v51 = vsel %vm5320_vm11, %v6342_v11, %v5317_v8  ;;  %v6348_v27 = vpop.eup %6347  ;;  %v4098_v45 = vadd.f32 %v10767_v36, %v10766_v33  ;;  %vm5333_vm13 = vweird.f32 %v10087_v19  ;;  %6351 = vpow2.f32 %v6013_v48 }
 0x3fb   : > { %6035 = vst [vmem:[%s7868_s28 + $0x188] sm:$0xf] %v5525_v9  ;;  %v5326_v13 = vsel %vm10102_vm6, %v5325_v1, %v5321_v51  ;;  %v5332_v34 = vadd.f32 %v6344_v7, %v5331_v55  ;;  %6353 = vrcp.f32 %v10127_v44  ;;  %v4112_v29 = vadd.f32 %v10769_v54, %v10768_v6  ;;  %vm5335_vm14 = vmor %vm5333_vm13, %vm5334_vm12 }
 0x3fc   : > { %6063 = vst [vmem:[%s7868_s28 + $0x188] sm:$0xf0] %v5582_v10  ;;  %v5526_v31 = vmul.f32 %v10072_v3, %v5326_v13  ;;  %v5583_v35 = vmul.f32 %v5326_v13, %v10044_v39  ;;  %v5340_v50 = vor.u32 1.1754944e-38, %v5339_v49  ;;  %v10142_v12 = vadd.f32 1.0, %v6348_v27 }
 0x3fd   : > { %v5499_v19 = vadd.f32 %v5441_v16, %v10078_v17  ;;  %v5336_v4 = vsel %vm5335_vm14, %v6344_v7, %v5332_v34  ;;  %vm5338_vm15 = vcmp.eq.f32.partialorder %v5337_v32, 8.507059e+37  ;;  %v4783_v3 = vadd.f32 %v10004_v42, %v4098_v45  ;;  %v6350_v39 = vpop.eup %6349  ;;  %v10773_v42 = vld [vmem:[#allocation41_spill] sm:$0xff] }
 0x3fe   : > { %6036 = vst [vmem:[%s7868_s28 + $0x190] sm:$0xf] %v5526_v31  ;;  %v5341_v2 = vsel %vm5338_vm15, %v5340_v50, %v5336_v4  ;;  %6355 = vrcp.f32 %v10142_v12  ;;  %v4784_v25 = vadd.f32 %v10018_v46, %v4112_v29  ;;  %v10151_v60 = vadd.f32 1.0, %v6350_v39  ;;  %v5446_v31 = vld.sshfl [vmem:[#allocation1 + $0x10] sm:$0xff pattern:$0x75316420] }
 0x3ff   : > { %6064 = vst [vmem:[%s7868_s28 + $0x190] sm:$0xf0] %v5583_v35  ;;  %v5527_v59 = vmul.f32 %v5499_v19, %v5341_v2  ;;  %v5584_v11 = vmul.f32 %v5341_v2, %v10078_v17  ;;  %v4126_v62 = vadd.f32 %v10771_v14, %v10770_v26  ;;  %v4140_v1 = vadd.f32 %v10773_v42, %v10772_v61 }
 0x400   : > { %v6352_v40 = vpop.eup %6351  ;;  %v4839_v41 = vadd.f32 %v4783_v3, %v10662_v24  ;;  %6357 = vrcp.f32 %v10151_v60  ;;  %v4840_v46 = vadd.f32 %v4784_v25, %v10662_v24  ;;  %v5352_v5 = vand.u32 2147483647, %v10127_v44 }
 0x401   : > { %v6354_v20 = vpop.eup %6353  ;;  %6037 = vst [vmem:[%s7868_s28 + $0x198] sm:$0xf] %v5527_v59  ;;  %v10159_v63 = vadd.f32 1.0, %v6352_v40  ;;  %v4785_v38 = vadd.f32 %v10032_v37, %v4126_v62  ;;  %v4786_v58 = vadd.f32 %v10046_v0, %v4140_v1  ;;  %v5354_v47 = vand.u32 2147483648, %v10127_v44 }
 0x402   : > { %6065 = vst [vmem:[%s7868_s28 + $0x198] sm:$0xf0] %v5584_v11  ;;  %v5344_v17 = vmul.f32 %v6354_v20, %v10127_v44  ;;  %v5500_v30 = vadd.f32 %v5444_v52, %v4839_v41  ;;  %vm5349_vm0 = vweird.f32 %v6354_v20  ;;  %v5367_v15 = vand.u32 2147483647, %v10142_v12 }
 0x403   : > { %6359 = vrcp.f32 %v10159_v63  ;;  %v5369_v32 = vand.u32 2147483648, %v10142_v12  ;;  %v5501_v37 = vadd.f32 %v5445_v21, %v4840_v46  ;;  %v10174_v0 = vadd.f32 %v4785_v38, %v10662_v24 }
 0x404   : > { %v6356_v7 = vpop.eup %6355  ;;  %v5345_v22 = vsub.f32 1.0, %v5344_v17  ;;  %v10177_v23 = vadd.f32 %v4786_v58, %v10662_v24  ;;  %vm5348_vm1 = vweird.f32 %v10127_v44  ;;  %vm5353_vm2 = vcmp.eq.f32.partialorder %v5352_v5, 8.507059e+37 }
 0x405   : > { %v5359_v53 = vmul.f32 %v6356_v7, %v10142_v12  ;;  %v5355_v56 = vor.u32 1.1754944e-38, %v5354_v47  ;;  %vm5350_vm3 = vmor %vm5348_vm1, %vm5349_vm0  ;;  %vm5363_vm4 = vweird.f32 %v10142_v12  ;;  %vm5364_vm5 = vweird.f32 %v6356_v7  ;;  %v5447_v12 = vld.sshfl [vmem:[#allocation1 + $0x18] sm:$0xff pattern:$0x75316420] }
 0x406   : > { %v5346_v57 = vmul.f32 %v6354_v20, %v5345_v22  ;;  %v6358_v28 = vpop.eup %6357  ;;  %vm10182_vm6 = vcmp.eq.f32.partialorder %v5367_v15, 8.507059e+37  ;;  %v5370_v48 = vor.u32 1.1754944e-38, %v5369_v32  ;;  %v5382_v33 = vand.u32 2147483647, %v10151_v60  ;;  %vm5365_vm7 = vmor %vm5363_vm4, %vm5364_vm5 }
 0x407   : > { %v5360_v43 = vsub.f32 1.0, %v5359_v53  ;;  %v5374_v9 = vmul.f32 %v6358_v28, %v10151_v60  ;;  %v5384_v16 = vand.u32 2147483648, %v10151_v60  ;;  %vm5379_vm8 = vweird.f32 %v6358_v28 }
 0x408   : > { %v5347_v8 = vadd.f32 %v6354_v20, %v5346_v57  ;;  %v5399_v6 = vand.u32 2147483648, %v10159_v63  ;;  %v5397_v50 = vand.u32 2147483647, %v10159_v63  ;;  %vm5378_vm10 = vweird.f32 %v10151_v60 }
 0x409   : > { %v6360_v49 = vpop.eup %6359  ;;  %v5361_v18 = vmul.f32 %v6356_v7, %v5360_v43  ;;  %v5375_v27 = vsub.f32 1.0, %v5374_v9  ;;  %vm5380_vm11 = vmor %vm5378_vm10, %vm5379_vm8  ;;  %v5385_v39 = vor.u32 1.1754944e-38, %v5384_v16  ;;  %vm5393_vm12 = vweird.f32 %v10159_v63 }
 0x40a   : > { %v5351_v10 = vsel %vm5350_vm3, %v6354_v20, %v5347_v8  ;;  %v5389_v51 = vmul.f32 %v6360_v49, %v10159_v63  ;;  %vm5394_vm9 = vweird.f32 %v6360_v49  ;;  %v5502_v59 = vadd.f32 %v5446_v31, %v10174_v0 }
 0x40b   : > { %v5356_v55 = vsel %vm5353_vm2, %v5355_v56, %v5351_v10  ;;  %v5362_v44 = vadd.f32 %v6356_v7, %v5361_v18  ;;  %v5376_v34 = vmul.f32 %v6358_v28, %v5375_v27  ;;  %vm5383_vm13 = vcmp.eq.f32.partialorder %v5382_v33, 8.507059e+37  ;;  %vm5395_vm14 = vmor %vm5393_vm12, %vm5394_vm9 }
 0x40c   : > { %v5528_v36 = vmul.f32 %v5500_v30, %v5356_v55  ;;  %v5585_v45 = vmul.f32 %v5356_v55, %v4839_v41  ;;  %v5390_v13 = vsub.f32 1.0, %v5389_v51  ;;  %v5400_v25 = vor.u32 1.1754944e-38, %v5399_v6 }
 0x40d   : > { %v5366_v35 = vsel %vm5365_vm7, %v6356_v7, %v5362_v44  ;;  %v5377_v3 = vadd.f32 %v6358_v28, %v5376_v34  ;;  %v5503_v40 = vadd.f32 %v5447_v12, %v10177_v23  ;;  %vm5398_vm15 = vcmp.eq.f32.partialorder %v5397_v50, 8.507059e+37 }
 0x40e   : > { %6038 = vst [vmem:[%s7868_s28 + $0x1a0] sm:$0xf] %v5528_v36  ;;  %v5371_v54 = vsel %vm10182_vm6, %v5370_v48, %v5366_v35  ;;  %v5391_v29 = vmul.f32 %v6360_v49, %v5390_v13 }
 0x40f   : > { %6066 = vst [vmem:[%s7868_s28 + $0x1a0] sm:$0xf0] %v5585_v45  ;;  %v5529_v19 = vmul.f32 %v5501_v37, %v5371_v54  ;;  %v5586_v4 = vmul.f32 %v5371_v54, %v4840_v46  ;;  %v5381_v11 = vsel %vm5380_vm11, %v6358_v28, %v5377_v3 }
 0x410   : > { %v5392_v2 = vadd.f32 %v6360_v49, %v5391_v29  ;;  %v5386_v60 = vsel %vm5383_vm13, %v5385_v39, %v5381_v11 }
 0x411   : > { %6039 = vst [vmem:[%s7868_s28 + $0x1a8] sm:$0xf] %v5529_v19  ;;  %v5530_v26 = vmul.f32 %v5502_v59, %v5386_v60  ;;  %v5587_v14 = vmul.f32 %v5386_v60, %v10174_v0 }
 0x412   : > { %6067 = vst [vmem:[%s7868_s28 + $0x1a8] sm:$0xf0] %v5586_v4  ;;  %v5396_v20 = vsel %vm5395_vm14, %v6360_v49, %v5392_v2 }
 0x413   : > { %v5401_v62 = vsel %vm5398_vm15, %v5400_v25, %v5396_v20  ;;  %6040 = vst [vmem:[%s7868_s28 + $0x1b0] sm:$0xf] %v5530_v26 }
 0x414   : > { %v5531_v61 = vmul.f32 %v5503_v40, %v5401_v62  ;;  %v5588_v42 = vmul.f32 %v5401_v62, %v10177_v23  ;;  %6068 = vst [vmem:[%s7868_s28 + $0x1b0] sm:$0xf0] %v5587_v14 }
 0x416   : > { %6041 = vst [vmem:[%s7868_s28 + $0x1b8] sm:$0xf] %v5531_v61 }
 0x417   : > { %6069 = vst [vmem:[%s7868_s28 + $0x1b8] sm:$0xf0] %v5588_v42 }
 0x418   : > { %6420 = shalt.err (!%p6417_p4)
}
 0x419   : > { %s6464_s29 = smov 3584   ;;  %s6465_s28 = smov 224  }
 0x41a   : > { %6087 = dma.vmem_to_hbm [thread:$0]  (%p6536_p11), %s5632_s19, 7168, %s5634_s20, %s5618_s22, %s6464_s29, %s6464_s29, %s6465_s28  }
 0x41b PF: > { %s5648_s8 = sand.u32 1, %s6447_s12   ;;  %p10776_p7 = scmp.ge.s32.totalorder %s6459_s15, 2 }
 0x41c   : > { %s5649_s9 = scalar_lea.sflag [#allocation4], %s5648_s8 }
 0x41d   : > { %p6094_p5 = pnand %p10776_p7, %p6540_p12 }
 0x41f   : > { %p6095_p8 = pneg %p6094_p5 }
 0x421   : > { %6442 = dma.done.wait (%p6095_p8), %s5649_s9, 7168  }
 0x422   : > { %6444 = vsyncadd (%p6095_p8), %s5649_s9, 4294960128  ;;  %p16_p10 = scmp.ge.s32.totalorder %s6511_s18, 4   ;;  %s10777_s12 = smov %s6451_s13 }
 0x423   : > { %s10778_s13 = smov %s6455_s14  ;;  %s10779_s14 = smov %s6523_s21 }
 0x424   : > { %s10780_s15 = smov %s6511_s18  ;;  %18 = sbr.rel (!%p16_p10) target bundleno = 5 (0x5), region = 105 }
 0x429   :  { %5655 = vsyncpa [#allocation3], 1 }
 0x42a   :  { %5657 = vsyncpa [#allocation3 + $0x1], 1 }
 0x42b   :  { %5658 = vsyncpa [#allocation4], 1 }
 0x42c   :  { %5660 = vsyncpa [#allocation4 + $0x1], 1 }

</bundles_post_ra>
